<compile_context>
chip_gen: v5e
topology: v5e:2x2
jax: 0.10.0
libtpu: 0.0.40
codegen_flags: <defaults>
</compile_context>

<pallas_src>
import jax
import jax.numpy as jnp
from jax import lax
from jax.experimental import pallas as pl
from jax.experimental.pallas import tpu as pltpu


# ----------------------------------------------------------------------------
# Fused kernel: one grid step == one image.
# ----------------------------------------------------------------------------
def _fused_bottleneck_kernel(x_ref, s1_ref, b1_ref, w1_ref, s2_ref, b2_ref,
                             w2_ref, o_ref, apad_ref):
    # x_ref:   (1, H*W, Cin)        f32   flattened NHWC pixels of this image
    # s1/b1:   (1, Cin)             f32   folded BN1 scale / shift
    # w1_ref:  (Cin, Cmid_p)        bf16  1x1 conv weight (channel-padded)
    # s2/b2:   (1, Cmid_p)          f32   folded BN2 scale / shift (padded)
    # w2_ref:  (9*Cmid_p, Cout_p)   bf16  3x3 taps packed along K, tap=dy*3+dx
    # o_ref:   (1, H*W, Cout_p)     f32   conv2 output (lane-dense, padded)
    # apad_ref:(H+2, W+2, Cmid_p)   f32   VMEM scratch: zero-padded activations
    Hp, Wp, Cmid_p = apad_ref.shape
    H, W = Hp - 2, Wp - 2

    # ---- Stage 1: bn1 -> relu -> 1x1 conv (MXU) -> bn2 -> relu -------------
    x2d = x_ref[0]                                              # (H*W, Cin)
    a1 = jnp.maximum(x2d * s1_ref[...] + b1_ref[...], 0.0)
    y = jnp.dot(a1.astype(jnp.bfloat16), w1_ref[...],
                preferred_element_type=jnp.float32)             # (H*W, Cmid_p)
    a2 = jnp.maximum(y * s2_ref[...] + b2_ref[...], 0.0)

    # ---- Zero only the 1-wide halo border strips, then write the interior --
    # (padding must be applied AFTER bn/relu, so it cannot be done on x in
    # HBM).  The interior [1:H+1, 1:W+1] is fully overwritten every step, so
    # only the four border strips need (re-)zeroing.
    zrow = jnp.zeros((1, Wp, Cmid_p), jnp.float32)
    zcol = jnp.zeros((H, 1, Cmid_p), jnp.float32)
    apad_ref[pl.ds(0, 1), :, :] = zrow                          # top row
    apad_ref[pl.ds(H + 1, 1), :, :] = zrow                      # bottom row
    apad_ref[pl.ds(1, H), pl.ds(0, 1), :] = zcol                # left column
    apad_ref[pl.ds(1, H), pl.ds(W + 1, 1), :] = zcol            # right column
    apad_ref[pl.ds(1, H), pl.ds(1, W), :] = a2.reshape(H, W, Cmid_p)

    # ---- Stage 2: 3x3 conv as ONE im2col matmul, K = 9*Cmid_p --------------
    # Read each shifted window straight from the scratch Ref (static slices),
    # cast to bf16 per-window, and pack along K.
    cols = []
    for dy in range(3):
        for dx in range(3):
            win = apad_ref[pl.ds(dy, H), pl.ds(dx, W), :]       # (H, W, Cmid_p)
            cols.append(win.reshape(H * W, Cmid_p).astype(jnp.bfloat16))
    col = jnp.concatenate(cols, axis=1)                         # (H*W, 9*Cmid_p)
    o_ref[0] = jnp.dot(col, w2_ref[...], preferred_element_type=jnp.float32)


def _round_up(x, m):
    return ((x + m - 1) // m) * m


# ----------------------------------------------------------------------------
# Wrapper
# ----------------------------------------------------------------------------
def bottleneck_block_forward(x_nchw, params):
    N, Cin, H, W = x_nchw.shape
    w1 = params["w1"]                        # (Cin, Cmid)
    w2 = params["w2"]                        # (9, Cmid, Cout), tap = dy*3+dx
    Cmid = w1.shape[1]
    Cout = w2.shape[2]
    eps = 1e-5
    LANE = 128
    Cmid_p = _round_up(Cmid, LANE)
    Cout_p = _round_up(Cout, LANE)

    # Fold inference-mode BatchNorm into per-channel scale / shift (f32).
    s1 = params["gamma1"] / jnp.sqrt(params["var1"] + eps)
    b1 = params["beta1"] - params["mean1"] * s1
    s2 = params["gamma2"] / jnp.sqrt(params["var2"] + eps)
    b2 = params["beta2"] - params["mean2"] * s2

    # Pad the lane/MXU channel dims to 128 once; weights pre-cast to bf16.
    w1_p = (jnp.zeros((Cin, Cmid_p), jnp.float32)
            .at[:, :Cmid].set(w1).astype(jnp.bfloat16))
    s2_p = jnp.zeros((1, Cmid_p), jnp.float32).at[0, :Cmid].set(s2)
    b2_p = jnp.zeros((1, Cmid_p), jnp.float32).at[0, :Cmid].set(b2)
    w2_p = (jnp.zeros((9, Cmid_p, Cout_p), jnp.float32)
            .at[:, :Cmid, :Cout].set(w2)
            .reshape(9 * Cmid_p, Cout_p).astype(jnp.bfloat16))

    # NCHW -> NHWC (TPU-friendly), flatten pixels.
    x_nhwc = jnp.transpose(x_nchw, (0, 2, 3, 1)).astype(jnp.float32)
    x3d = x_nhwc.reshape(N, H * W, Cin)

    out3d = pl.pallas_call(
        _fused_bottleneck_kernel,
        out_shape=jax.ShapeDtypeStruct((N, H * W, Cout_p), jnp.float32),
        grid_spec=pltpu.PrefetchScalarGridSpec(
            num_scalar_prefetch=0,
            grid=(N,),
            in_specs=[
                pl.BlockSpec((1, H * W, Cin), lambda n: (n, 0, 0)),
                pl.BlockSpec((1, Cin), lambda n: (0, 0)),
                pl.BlockSpec((1, Cin), lambda n: (0, 0)),
                pl.BlockSpec((Cin, Cmid_p), lambda n: (0, 0)),
                pl.BlockSpec((1, Cmid_p), lambda n: (0, 0)),
                pl.BlockSpec((1, Cmid_p), lambda n: (0, 0)),
                pl.BlockSpec((9 * Cmid_p, Cout_p), lambda n: (0, 0)),
            ],
            out_specs=pl.BlockSpec((1, H * W, Cout_p), lambda n: (n, 0, 0)),
            scratch_shapes=[pltpu.VMEM((H + 2, W + 2, Cmid_p), jnp.float32)],
        ),
        compiler_params=pltpu.CompilerParams(
            dimension_semantics=("parallel",),
            vmem_limit_bytes=32 * 1024 * 1024,
        ),
    )(x3d, s1.reshape(1, Cin), b1.reshape(1, Cin), w1_p, s2_p, b2_p, w2_p)

    # Slice valid output channels; convert back to NCHW and concat (wrapper
    # glue kept to exactly match torch.cat([x, out], 1)).
    out_nhwc = out3d.reshape(N, H, W, Cout_p)[..., :Cout]
    out_nchw = jnp.transpose(out_nhwc, (0, 3, 1, 2))
    return jnp.concatenate([x_nchw, out_nchw], axis=1)


# ----------------------------------------------------------------------------
# Pure-JAX reference (lax.conv) for correctness checking.
# ----------------------------------------------------------------------------
def _reference_forward(x_nchw, params):
    eps = 1e-5
    Cin = x_nchw.shape[1]
    Cmid = params["w1"].shape[1]
    Cout = params["w2"].shape[2]

    x = jnp.transpose(x_nchw, (0, 2, 3, 1)).astype(jnp.float32)
    a = (x - params["mean1"]) / jnp.sqrt(params["var1"] + eps)
    a = jnp.maximum(a * params["gamma1"] + params["beta1"], 0.0)
    w1_hwio = params["w1"].reshape(1, 1, Cin, Cmid)
    y = lax.conv_general_dilated(a, w1_hwio, (1, 1), "VALID",
                                 dimension_numbers=("NHWC", "HWIO", "NHWC"))
    b = (y - params["mean2"]) / jnp.sqrt(params["var2"] + eps)
    b = jnp.maximum(b * params["gamma2"] + params["beta2"], 0.0)
    w2_hwio = params["w2"].reshape(3, 3, Cmid, Cout)
    out = lax.conv_general_dilated(b, w2_hwio, (1, 1), "SAME",
                                   dimension_numbers=("NHWC", "HWIO", "NHWC"))
    out = jnp.transpose(out, (0, 3, 1, 2))
    return jnp.concatenate([x_nchw, out], axis=1)


def _init_params(key, in_planes, out_planes):
    inter_planes = out_planes * 4
    ks = jax.random.split(key, 10)
    return {
        # BN1 over in_planes channels
        "gamma1": jax.random.uniform(ks[0], (in_planes,), jnp.float32, 0.5, 1.5),
        "beta1":  jax.random.normal(ks[1], (in_planes,), jnp.float32) * 0.1,
        "mean1":  jax.random.normal(ks[2], (in_planes,), jnp.float32) * 0.1,
        "var1":   jax.random.uniform(ks[3], (in_planes,), jnp.float32, 0.5, 1.5),
        # conv1: PyTorch (inter, in, 1, 1) -> ours (in, inter)
        "w1": jax.random.normal(ks[4], (in_planes, inter_planes), jnp.float32)
              * (1.0 / jnp.sqrt(in_planes)),
        # BN2 over inter_planes channels
        "gamma2": jax.random.uniform(ks[5], (inter_planes,), jnp.float32, 0.5, 1.5),
        "beta2":  jax.random.normal(ks[6], (inter_planes,), jnp.float32) * 0.1,
        "mean2":  jax.random.normal(ks[7], (inter_planes,), jnp.float32) * 0.1,
        "var2":   jax.random.uniform(ks[8], (inter_planes,), jnp.float32, 0.5, 1.5),
        # conv2: PyTorch (out, inter, 3, 3) -> ours (9, inter, out), tap = dy*3+dx
        "w2": jax.random.normal(ks[9], (9, inter_planes, out_planes), jnp.float32)
              * (1.0 / jnp.sqrt(9.0 * inter_planes)),
    }


if __name__ == "__main__":
    key = jax.random.PRNGKey(0)
    k_x, k_p = jax.random.split(key)

    N, in_planes, H, W = 2, 4, 16, 16
    out_planes = 4
    x = jax.random.normal(k_x, (N, in_planes, H, W), jnp.float32)
    params = _init_params(k_p, in_planes, out_planes)

    out = bottleneck_block_forward(x, params)
    out = jax.block_until_ready(out)

    assert out.shape == (N, in_planes + out_planes, H, W), out.shape

    ref = jax.block_until_ready(_reference_forward(x, params))
    # bf16 MXU operands (f32 accumulation) -> relaxed tolerance vs f32 ref.
    assert jnp.allclose(out, ref, atol=5e-2, rtol=5e-2), \
        float(jnp.max(jnp.abs(out - ref)))

    print("KERNEL_OK")
</pallas_src>

<mosaic_0001>
module attributes {stable_mosaic.version = 11 : i64} {
  func.func @_fused_bottleneck_kernel(%arg0: i32, %arg1: memref<1x256x4xf32, #tpu.memory_space<vmem>>, %arg2: memref<1x4xf32, #tpu.memory_space<vmem>>, %arg3: memref<1x4xf32, #tpu.memory_space<vmem>>, %arg4: memref<4x128xbf16, #tpu.memory_space<vmem>>, %arg5: memref<1x128xf32, #tpu.memory_space<vmem>>, %arg6: memref<1x128xf32, #tpu.memory_space<vmem>>, %arg7: memref<1152x128xbf16, #tpu.memory_space<vmem>>, %arg8: memref<1x256x128xf32, #tpu.memory_space<vmem>>, %arg9: memref<18x18x128xf32, #tpu.memory_space<vmem>>) attributes {dimension_semantics = [#tpu.dimension_semantics<parallel>], iteration_bounds = array<i64: 2>, scalar_prefetch = 0 : i64, scratch_operands = 1 : i64, tpu.core_type = #tpu.core_type<tc>, window_params = [{transform_indices = @transform_0, window_bounds = array<i64: 1, 256, 4>}, {pipeline_mode = #tpu.pipeline_mode<synchronous>, transform_indices = @transform_1, window_bounds = array<i64: 1, 4>}, {pipeline_mode = #tpu.pipeline_mode<synchronous>, transform_indices = @transform_2, window_bounds = array<i64: 1, 4>}, {pipeline_mode = #tpu.pipeline_mode<synchronous>, transform_indices = @transform_3, window_bounds = array<i64: 4, 128>}, {pipeline_mode = #tpu.pipeline_mode<synchronous>, transform_indices = @transform_4, window_bounds = array<i64: 1, 128>}, {pipeline_mode = #tpu.pipeline_mode<synchronous>, transform_indices = @transform_5, window_bounds = array<i64: 1, 128>}, {pipeline_mode = #tpu.pipeline_mode<synchronous>, transform_indices = @transform_6, window_bounds = array<i64: 1152, 128>}, {transform_indices = @transform_7, window_bounds = array<i64: 1, 256, 128>}]} {
    %c0 = arith.constant 0 : index
    %c0_0 = arith.constant 0 : index
    %c0_1 = arith.constant 0 : index
    %0 = vector.load %arg1[%c0, %c0_0, %c0_1] : memref<1x256x4xf32, #tpu.memory_space<vmem>>, vector<1x256x4xf32>
    %1 = vector.shape_cast %0 : vector<1x256x4xf32> to vector<256x4xf32>
    %c0_2 = arith.constant 0 : index
    %c0_3 = arith.constant 0 : index
    %2 = vector.load %arg2[%c0_2, %c0_3] : memref<1x4xf32, #tpu.memory_space<vmem>>, vector<1x4xf32>
    %3 = vector.broadcast %2 : vector<1x4xf32> to vector<256x4xf32>
    %4 = arith.mulf %1, %3 : vector<256x4xf32>
    %c0_4 = arith.constant 0 : index
    %c0_5 = arith.constant 0 : index
    %5 = vector.load %arg3[%c0_4, %c0_5] : memref<1x4xf32, #tpu.memory_space<vmem>>, vector<1x4xf32>
    %6 = vector.broadcast %5 : vector<1x4xf32> to vector<256x4xf32>
    %7 = arith.addf %4, %6 : vector<256x4xf32>
    %cst = arith.constant 0.000000e+00 : f32
    %8 = vector.broadcast %cst : f32 to vector<256x4xf32>
    %9 = arith.maximumf %7, %8 : vector<256x4xf32>
    %10 = arith.truncf %9 : vector<256x4xf32> to vector<256x4xbf16>
    %c0_6 = arith.constant 0 : index
    %c0_7 = arith.constant 0 : index
    %11 = vector.load %arg4[%c0_6, %c0_7] : memref<4x128xbf16, #tpu.memory_space<vmem>>, vector<4x128xbf16>
    %cst_8 = arith.constant dense<0.000000e+00> : vector<256x128xf32>
    %12 = tpu.matmul %10, %11, %cst_8 {dimension_numbers = #tpu.dot_dimension_numbers<[1], [0], [0], [1], [0, 0, 1, 1], [], []>} : vector<256x4xbf16>, vector<4x128xbf16>, vector<256x128xf32> -> vector<256x128xf32>
    %c0_9 = arith.constant 0 : index
    %c0_10 = arith.constant 0 : index
    %13 = vector.load %arg5[%c0_9, %c0_10] : memref<1x128xf32, #tpu.memory_space<vmem>>, vector<1x128xf32>
    %14 = vector.broadcast %13 : vector<1x128xf32> to vector<256x128xf32>
    %15 = arith.mulf %12, %14 : vector<256x128xf32>
    %c0_11 = arith.constant 0 : index
    %c0_12 = arith.constant 0 : index
    %16 = vector.load %arg6[%c0_11, %c0_12] : memref<1x128xf32, #tpu.memory_space<vmem>>, vector<1x128xf32>
    %17 = vector.broadcast %16 : vector<1x128xf32> to vector<256x128xf32>
    %18 = arith.addf %15, %17 : vector<256x128xf32>
    %cst_13 = arith.constant 0.000000e+00 : f32
    %19 = vector.broadcast %cst_13 : f32 to vector<256x128xf32>
    %20 = arith.maximumf %18, %19 : vector<256x128xf32>
    %cst_14 = arith.constant 0.000000e+00 : f32
    %21 = vector.broadcast %cst_14 : f32 to vector<1x18x128xf32>
    %cst_15 = arith.constant 0.000000e+00 : f32
    %22 = vector.broadcast %cst_15 : f32 to vector<16x1x128xf32>
    %c0_16 = arith.constant 0 : index
    %c0_17 = arith.constant 0 : index
    %c0_18 = arith.constant 0 : index
    %23 = vector.load %arg9[%c0_16, %c0_17, %c0_18] : memref<18x18x128xf32, #tpu.memory_space<vmem>>, vector<1x18x128xf32>
    tpu.vector_store %arg9[%c0_16, %c0_17, %c0_18], %21 {strides = array<i32>} : memref<18x18x128xf32, #tpu.memory_space<vmem>>, vector<1x18x128xf32>,
    %c17 = arith.constant 17 : index
    %c0_19 = arith.constant 0 : index
    %c0_20 = arith.constant 0 : index
    %24 = vector.load %arg9[%c17, %c0_19, %c0_20] : memref<18x18x128xf32, #tpu.memory_space<vmem>>, vector<1x18x128xf32>
    tpu.vector_store %arg9[%c17, %c0_19, %c0_20], %21 {strides = array<i32>} : memref<18x18x128xf32, #tpu.memory_space<vmem>>, vector<1x18x128xf32>,
    %c1 = arith.constant 1 : index
    %c0_21 = arith.constant 0 : index
    %c0_22 = arith.constant 0 : index
    %25 = vector.load %arg9[%c1, %c0_21, %c0_22] : memref<18x18x128xf32, #tpu.memory_space<vmem>>, vector<16x1x128xf32>
    tpu.vector_store %arg9[%c1, %c0_21, %c0_22], %22 {strides = array<i32>} : memref<18x18x128xf32, #tpu.memory_space<vmem>>, vector<16x1x128xf32>,
    %c1_23 = arith.constant 1 : index
    %c17_24 = arith.constant 17 : index
    %c0_25 = arith.constant 0 : index
    %26 = vector.load %arg9[%c1_23, %c17_24, %c0_25] : memref<18x18x128xf32, #tpu.memory_space<vmem>>, vector<16x1x128xf32>
    tpu.vector_store %arg9[%c1_23, %c17_24, %c0_25], %22 {strides = array<i32>} : memref<18x18x128xf32, #tpu.memory_space<vmem>>, vector<16x1x128xf32>,
    %27 = vector.shape_cast %20 : vector<256x128xf32> to vector<16x16x128xf32>
    %c1_26 = arith.constant 1 : index
    %c1_27 = arith.constant 1 : index
    %c0_28 = arith.constant 0 : index
    %28 = vector.load %arg9[%c1_26, %c1_27, %c0_28] : memref<18x18x128xf32, #tpu.memory_space<vmem>>, vector<16x16x128xf32>
    tpu.vector_store %arg9[%c1_26, %c1_27, %c0_28], %27 {strides = array<i32>} : memref<18x18x128xf32, #tpu.memory_space<vmem>>, vector<16x16x128xf32>,
    %c0_29 = arith.constant 0 : index
    %c0_30 = arith.constant 0 : index
    %c0_31 = arith.constant 0 : index
    %29 = vector.load %arg9[%c0_29, %c0_30, %c0_31] : memref<18x18x128xf32, #tpu.memory_space<vmem>>, vector<16x16x128xf32>
    %30 = vector.shape_cast %29 : vector<16x16x128xf32> to vector<256x128xf32>
    %31 = arith.truncf %30 : vector<256x128xf32> to vector<256x128xbf16>
    %c0_32 = arith.constant 0 : index
    %c1_33 = arith.constant 1 : index
    %c0_34 = arith.constant 0 : index
    %32 = vector.load %arg9[%c0_32, %c1_33, %c0_34] : memref<18x18x128xf32, #tpu.memory_space<vmem>>, vector<16x16x128xf32>
    %33 = vector.shape_cast %32 : vector<16x16x128xf32> to vector<256x128xf32>
    %34 = arith.truncf %33 : vector<256x128xf32> to vector<256x128xbf16>
    %c0_35 = arith.constant 0 : index
    %c2 = arith.constant 2 : index
    %c0_36 = arith.constant 0 : index
    %35 = vector.load %arg9[%c0_35, %c2, %c0_36] : memref<18x18x128xf32, #tpu.memory_space<vmem>>, vector<16x16x128xf32>
    %36 = vector.shape_cast %35 : vector<16x16x128xf32> to vector<256x128xf32>
    %37 = arith.truncf %36 : vector<256x128xf32> to vector<256x128xbf16>
    %c1_37 = arith.constant 1 : index
    %c0_38 = arith.constant 0 : index
    %c0_39 = arith.constant 0 : index
    %38 = vector.load %arg9[%c1_37, %c0_38, %c0_39] : memref<18x18x128xf32, #tpu.memory_space<vmem>>, vector<16x16x128xf32>
    %39 = vector.shape_cast %38 : vector<16x16x128xf32> to vector<256x128xf32>
    %40 = arith.truncf %39 : vector<256x128xf32> to vector<256x128xbf16>
    %c1_40 = arith.constant 1 : index
    %c1_41 = arith.constant 1 : index
    %c0_42 = arith.constant 0 : index
    %41 = vector.load %arg9[%c1_40, %c1_41, %c0_42] : memref<18x18x128xf32, #tpu.memory_space<vmem>>, vector<16x16x128xf32>
    %42 = vector.shape_cast %41 : vector<16x16x128xf32> to vector<256x128xf32>
    %43 = arith.truncf %42 : vector<256x128xf32> to vector<256x128xbf16>
    %c1_43 = arith.constant 1 : index
    %c2_44 = arith.constant 2 : index
    %c0_45 = arith.constant 0 : index
    %44 = vector.load %arg9[%c1_43, %c2_44, %c0_45] : memref<18x18x128xf32, #tpu.memory_space<vmem>>, vector<16x16x128xf32>
    %45 = vector.shape_cast %44 : vector<16x16x128xf32> to vector<256x128xf32>
    %46 = arith.truncf %45 : vector<256x128xf32> to vector<256x128xbf16>
    %c2_46 = arith.constant 2 : index
    %c0_47 = arith.constant 0 : index
    %c0_48 = arith.constant 0 : index
    %47 = vector.load %arg9[%c2_46, %c0_47, %c0_48] : memref<18x18x128xf32, #tpu.memory_space<vmem>>, vector<16x16x128xf32>
    %48 = vector.shape_cast %47 : vector<16x16x128xf32> to vector<256x128xf32>
    %49 = arith.truncf %48 : vector<256x128xf32> to vector<256x128xbf16>
    %c2_49 = arith.constant 2 : index
    %c1_50 = arith.constant 1 : index
    %c0_51 = arith.constant 0 : index
    %50 = vector.load %arg9[%c2_49, %c1_50, %c0_51] : memref<18x18x128xf32, #tpu.memory_space<vmem>>, vector<16x16x128xf32>
    %51 = vector.shape_cast %50 : vector<16x16x128xf32> to vector<256x128xf32>
    %52 = arith.truncf %51 : vector<256x128xf32> to vector<256x128xbf16>
    %c2_52 = arith.constant 2 : index
    %c2_53 = arith.constant 2 : index
    %c0_54 = arith.constant 0 : index
    %53 = vector.load %arg9[%c2_52, %c2_53, %c0_54] : memref<18x18x128xf32, #tpu.memory_space<vmem>>, vector<16x16x128xf32>
    %54 = vector.shape_cast %53 : vector<16x16x128xf32> to vector<256x128xf32>
    %55 = arith.truncf %54 : vector<256x128xf32> to vector<256x128xbf16>
    %56 = tpu.concatenate %31, %34, %37, %40, %43, %46, %49, %52, %55 in 1 : vector<256x128xbf16>, vector<256x128xbf16>, vector<256x128xbf16>, vector<256x128xbf16>, vector<256x128xbf16>, vector<256x128xbf16>, vector<256x128xbf16>, vector<256x128xbf16>, vector<256x128xbf16> -> vector<256x1152xbf16>
    %c0_55 = arith.constant 0 : index
    %c0_56 = arith.constant 0 : index
    %57 = vector.load %arg7[%c0_55, %c0_56] : memref<1152x128xbf16, #tpu.memory_space<vmem>>, vector<1152x128xbf16>
    %cst_57 = arith.constant dense<0.000000e+00> : vector<256x128xf32>
    %58 = tpu.matmul %56, %57, %cst_57 {dimension_numbers = #tpu.dot_dimension_numbers<[1], [0], [0], [1], [0, 0, 1, 1], [], []>} : vector<256x1152xbf16>, vector<1152x128xbf16>, vector<256x128xf32> -> vector<256x128xf32>
    %c0_58 = arith.constant 0 : index
    %c0_59 = arith.constant 0 : index
    %c0_60 = arith.constant 0 : index
    %59 = vector.load %arg8[%c0_58, %c0_59, %c0_60] : memref<1x256x128xf32, #tpu.memory_space<vmem>>, vector<1x256x128xf32>
    %60 = vector.shape_cast %59 : vector<1x256x128xf32> to vector<256x128xf32>
    %61 = vector.shape_cast %58 : vector<256x128xf32> to vector<1x256x128xf32>
    tpu.vector_store %arg8[%c0_58, %c0_59, %c0_60], %61 {strides = array<i32>} : memref<1x256x128xf32, #tpu.memory_space<vmem>>, vector<1x256x128xf32>,
    return
  }
  func.func @transform_0(%arg0: i32) -> (i32, i32, i32) {
    %c0_i32 = arith.constant 0 : i32
    %c0_i32_0 = arith.constant 0 : i32
    %c0_i32_1 = arith.constant 0 : i32
    return %arg0, %c0_i32, %c0_i32_0 : i32, i32, i32
  }
  func.func @transform_1(%arg0: i32) -> (i32, i32) {
    %c0_i32 = arith.constant 0 : i32
    %c0_i32_0 = arith.constant 0 : i32
    %c0_i32_1 = arith.constant 0 : i32
    return %c0_i32, %c0_i32_0 : i32, i32
  }
  func.func @transform_2(%arg0: i32) -> (i32, i32) {
    %c0_i32 = arith.constant 0 : i32
    %c0_i32_0 = arith.constant 0 : i32
    %c0_i32_1 = arith.constant 0 : i32
    return %c0_i32, %c0_i32_0 : i32, i32
  }
  func.func @transform_3(%arg0: i32) -> (i32, i32) {
    %c0_i32 = arith.constant 0 : i32
    %c0_i32_0 = arith.constant 0 : i32
    %c0_i32_1 = arith.constant 0 : i32
    return %c0_i32, %c0_i32_0 : i32, i32
  }
  func.func @transform_4(%arg0: i32) -> (i32, i32) {
    %c0_i32 = arith.constant 0 : i32
    %c0_i32_0 = arith.constant 0 : i32
    %c0_i32_1 = arith.constant 0 : i32
    return %c0_i32, %c0_i32_0 : i32, i32
  }
  func.func @transform_5(%arg0: i32) -> (i32, i32) {
    %c0_i32 = arith.constant 0 : i32
    %c0_i32_0 = arith.constant 0 : i32
    %c0_i32_1 = arith.constant 0 : i32
    return %c0_i32, %c0_i32_0 : i32, i32
  }
  func.func @transform_6(%arg0: i32) -> (i32, i32) {
    %c0_i32 = arith.constant 0 : i32
    %c0_i32_0 = arith.constant 0 : i32
    %c0_i32_1 = arith.constant 0 : i32
    return %c0_i32, %c0_i32_0 : i32, i32
  }
  func.func @transform_7(%arg0: i32) -> (i32, i32, i32) {
    %c0_i32 = arith.constant 0 : i32
    %c0_i32_0 = arith.constant 0 : i32
    %c0_i32_1 = arith.constant 0 : i32
    return %arg0, %c0_i32, %c0_i32_0 : i32, i32, i32
  }
}

</mosaic_0001>

<bundles_post_ra>
// kernel: tpu_custom_call.1
= control target key start
LH: loop header
LB: loop body
LE: loop exit
PB: predicated region body
PF: predicated region fallthrough
CT: control target
= control target key end

     0   :  { %12 = vsyncpa [#allocation4], 0  ;;  %s5472_s0 = inlined_call_operand.vmem [shape: f32[2,256,4], index: 0, kind: input, shape index: {}]   ;;  %s5473_s1 = inlined_call_operand.vmem [shape: f32[1,4], index: 1, kind: input, shape index: {}]   ;;  %s5474_s2 = inlined_call_operand.vmem [shape: f32[1,4], index: 2, kind: input, shape index: {}]   ;;  %s5475_s3 = inlined_call_operand.vmem [shape: bf16[4,128], index: 3, kind: input, shape index: {}]   ;;  %s5476_s4 = inlined_call_operand.vmem [shape: f32[1,128], index: 4, kind: input, shape index: {}]   ;;  %s5477_s5 = inlined_call_operand.vmem [shape: f32[1,128], index: 5, kind: input, shape index: {}]   ;;  %s5478_s6 = inlined_call_operand.hbm [shape: bf16[1152,128], index: 6, kind: input, shape index: {}]   ;;  %s5479_s7 = inlined_call_operand.hbm [shape: f32[2,256,128], index: 7, kind: output, shape index: {}]  }
   0x1   :  { %13 = vsyncpa [#allocation5], 0 }
   0x2   :  { %15 = vsyncpa [#allocation5 + $0x1], 0  ;;  %s4312_s24 = smov 0   ;;  %s4314_s25 = smov 0  }
   0x3   :  { %s4316_s26 = smov 0   ;;  %s4318_s27 = smov 0  }
   0x4 LB: > { %s4333_s28 = sadd.s32 4294967295, %s4263_s27   ;;  %s3706_s29 = sadd.s32 4294967294, %s4263_s27   ;;  %s4263_s27 = sphi %s4318_s27, %s5749_s27   ;;  %s4259_s26 = sphi %s4316_s26, %s5748_s26   ;;  %s4255_s25 = sphi %s4314_s25, %s5747_s25   ;;  %s4251_s24 = sphi %s4312_s24, %s5746_s24  }
   0x5   : > { %s4337_s30 = sadd.s32 1, %s4263_s27   ;;  %s180_s8 = sadd.s32 1, %s4259_s26 }
   0x6   : > { %s177_s9 = ssub.s32 %s4263_s27, %s4337_s30  ;;  %p190_p0 = scmp.ne.s32.totalorder %s4259_s26, %s4255_s25 }
   0x7   : > { %p178_p1 = scmp.eq.s32.totalorder %s177_s9, 0  ;;  %p191_p2 = scmp.eq.s32.totalorder %s4333_s28, 1 }
   0x8   : > { %p196_p3 = scmp.ne.s32.totalorder %s4255_s25, %s4251_s24  ;;  %p197_p4 = scmp.eq.s32.totalorder %s3706_s29, 1 }
   0x9   : > { %s4348_s10 = scalar_select %p178_p1, %s4259_s26, %s180_s8  }
   0xa   : > { %p4350_p5 = por %p191_p2, %p190_p0  ;;  %p4354_p6 = por %p197_p4, %p196_p3 }
   0xb   : > { %p3707_p7 = scmp.ge.s32.totalorder %s4263_s27, 1  ;;  %p204_p8 = scmp.lt.s32.totalorder %s4263_s27, 3 }
   0xc   : > { %p4121_p9 = scmp.eq.s32.totalorder %s4333_s28, 0  ;;  %s230_s15 = sshll.u32 %s5478_s6, 4  ;;  %s231_s15 = int_to_ptr.hbm [resolvable:$true] %s230_s15 }
   0xd   : > { %p205_p10 = pnand %p3707_p7, %p204_p8  ;;  %s4265_s16 = smov [#allocation3]  }
   0xe   : > { %s232_s17 = sshll.u32 %s4265_s16, 4  ;;  %s4266_s18 = smov 64   ;;  %s233_s17 = int_to_ptr.vmem [resolvable:$true] %s232_s17 }
   0xf   : > { %p4113_p11 = pneg %p205_p10  ;;  %s4267_s19 = smov 4  }
  0x10   : > { %256 = sbr.rel (%p205_p10) target bundleno = 1079 (0x437), region = 48 }
  0x11   : > { %p4114_p12 = pnand %p4121_p9, %p4113_p11 }
  0x13   : > { %4116 = dma.hbm_to_vmem [thread:$0]  (!%p4114_p12), %s231_s15, 9216, %s233_s17, [#allocation4], %s4266_s18, %s4266_s18, %s4267_s19  }
  0x15   : > { %4242 = dma.done.wait (%p4121_p9), [#allocation4], 9216  }
  0x16   : > { %4244 = vsyncadd (%p4121_p9), [#allocation4], 4294958080  ;;  %p289_p13 = scmp.lt.s32.totalorder %s4333_s28, 1  ;;  %vm497_vm0 = vcmask 1041408   ;;  %v447_v0 = vld [vmem:[%s5475_s3] sm:$0x3] }
  0x17   : > { %v499_v3 = vsel %vm497_vm0, %v447_v0, 0  ;;  %v4385_v4 = vld [vmem:[%s5473_s1] ss:$0 sm:$0xff]  ;;  %vm448_vm1 = vcmask 31744  }
  0x18   : > { %s290_s20 = scalar_select %p289_p13, %s4333_s28, 1  ;;  %508 = vmatpush.bf16.msra.mxu0 %v499_v3  ;;  %v4390_v5 = vld [vmem:[%s5474_s2] ss:$0 sm:$0xff]  ;;  %4098 = vmatpush.bf16.msra.mxu3 %v499_v3 }
  0x1a   : > { %s4024_s21 = sshll.u32 %s290_s20, 8  ;;  %s4217_s20 = scalar_lea.hbm %s5479_s7, 512 }
  0x1b   : > { %s4375_s29 = scalar_lea.vmem %s5472_s0, %s4024_s21  ;;  %s286_s21 = sand.u32 1, %s4255_s25  }
  0x1c   : > { %v295_v1 = vld [vmem:[%s4375_s29] sm:$0xff]  ;;  %v296_v2 = vld [vmem:[%s4375_s29 + $0x8] sm:$0xff]  ;;  %v313_v8 = vld [vmem:[%s4375_s29 + $0x90] sm:$0xff]  ;;  %s3712_s22 = sshll.u32 %s286_s21, 8 }
  0x1d   : > { %v331_v6 = vmul.f32 %v4385_v4, %v295_v1  ;;  %v332_v7 = vmul.f32 %v4385_v4, %v296_v2  ;;  %v314_v9 = vld [vmem:[%s4375_s29 + $0x98] sm:$0xff]  ;;  %v349_v10 = vmul.f32 %v4385_v4, %v313_v8  ;;  %v297_v18 = vld [vmem:[%s4375_s29 + $0x10] sm:$0xff]  ;;  %v315_v26 = vld [vmem:[%s4375_s29 + $0xa0] sm:$0xff]  ;;  %s5163_s23 = scalar_lea.vmem [#allocation6], %s3712_s22 }
  0x1e   : > { %v350_v11 = vmul.f32 %v4385_v4, %v314_v9  ;;  %v298_v19 = vld [vmem:[%s4375_s29 + $0x18] sm:$0xff]  ;;  %v333_v24 = vmul.f32 %v4385_v4, %v297_v18  ;;  %v316_v27 = vld [vmem:[%s4375_s29 + $0xa8] sm:$0xff]  ;;  %v351_v28 = vmul.f32 %v4385_v4, %v315_v26  ;;  %v299_v39 = vld [vmem:[%s4375_s29 + $0x20] sm:$0xff]  ;;  %s3629_s14 = sshll.u32 %s5163_s23, 4  ;;  %s3630_s14 = int_to_ptr.vmem [resolvable:$true] %s3629_s14 }
  0x1f   : > { %v367_v12 = vadd.f32 %v4390_v5, %v331_v6  ;;  %v368_v13 = vadd.f32 %v4390_v5, %v332_v7  ;;  %v385_v14 = vadd.f32 %v4390_v5, %v349_v10  ;;  %v334_v25 = vmul.f32 %v4385_v4, %v298_v19  ;;  %v300_v40 = vld [vmem:[%s4375_s29 + $0x28] sm:$0xff]  ;;  %v317_v44 = vld [vmem:[%s4375_s29 + $0xb0] sm:$0xff]  ;;  %v318_v45 = vld [vmem:[%s4375_s29 + $0xb8] sm:$0xff] }
  0x20   : > { %v386_v15 = vadd.f32 %v4390_v5, %v350_v11  ;;  %v352_v29 = vmul.f32 %v4385_v4, %v316_v27  ;;  %v369_v30 = vadd.f32 %v4390_v5, %v333_v24  ;;  %v387_v32 = vadd.f32 %v4390_v5, %v351_v28  ;;  %v301_v57 = vld [vmem:[%s4375_s29 + $0x30] sm:$0xff]  ;;  %v302_v58 = vld [vmem:[%s4375_s29 + $0x38] sm:$0xff]  ;;  %v319_v62 = vld [vmem:[%s4375_s29 + $0xc0] sm:$0xff] }
  0x21   : > { %v399_v16 = vmax.f32 %v367_v12, 0.0  ;;  %v400_v17 = vmax.f32 %v368_v13, 0.0  ;;  %v417_v20 = vmax.f32 %v385_v14, 0.0  ;;  %v370_v31 = vadd.f32 %v4390_v5, %v334_v25  ;;  %v320_v63 = vld [vmem:[%s4375_s29 + $0xc8] sm:$0xff]  ;;  %v303_v13 = vld [vmem:[%s4375_s29 + $0x40] sm:$0xff]  ;;  %v321_v18 = vld [vmem:[%s4375_s29 + $0xd0] sm:$0xff] }
  0x22   : > { %v418_v21 = vmax.f32 %v386_v15, 0.0  ;;  %v388_v33 = vadd.f32 %v4390_v5, %v352_v29  ;;  %v401_v34 = vmax.f32 %v369_v30, 0.0  ;;  %v419_v36 = vmax.f32 %v387_v32, 0.0  ;;  %v304_v14 = vld [vmem:[%s4375_s29 + $0x48] sm:$0xff]  ;;  %v322_v19 = vld [vmem:[%s4375_s29 + $0xd8] sm:$0xff] }
  0x23   : > { %v431_v22 = vpack.c.bf16 %v400_v17, %v399_v16  ;;  %v402_v35 = vmax.f32 %v370_v31, 0.0  ;;  %v335_v42 = vmul.f32 %v4385_v4, %v299_v39  ;;  %v336_v43 = vmul.f32 %v4385_v4, %v300_v40  ;;  %v305_v31 = vld [vmem:[%s4375_s29 + $0x50] sm:$0xff]  ;;  %v306_v32 = vld [vmem:[%s4375_s29 + $0x58] sm:$0xff] }
  0x24   : > { %v440_v23 = vpack.c.bf16 %v418_v21, %v417_v20  ;;  %v420_v37 = vmax.f32 %v388_v33, 0.0  ;;  %v353_v46 = vmul.f32 %v4385_v4, %v317_v44  ;;  %v354_v47 = vmul.f32 %v4385_v4, %v318_v45 }
  0x25   : > { %3715 = vmatmul.msk.bf16.vlgmr.msra.gmra.mxu0 %vm448_vm1, %v431_v22  ;;  %v432_v38 = vpack.c.bf16 %v402_v35, %v401_v34  ;;  %v371_v48 = vadd.f32 %v4390_v5, %v335_v42  ;;  %v372_v49 = vadd.f32 %v4390_v5, %v336_v43  ;;  %v337_v60 = vmul.f32 %v4385_v4, %v301_v57  ;;  %v4031_v42 = vld [vmem:[#allocation3 + $0x30] sm:$0xff] }
  0x26   : > { %3724 = vmatmul.msk.bf16.vlgmr.msra.gmra.mxu3 %vm448_vm1, %v440_v23  ;;  %v441_v41 = vpack.c.bf16 %v420_v37, %v419_v36  ;;  %v389_v50 = vadd.f32 %v4390_v5, %v353_v46  ;;  %v390_v51 = vadd.f32 %v4390_v5, %v354_v47  ;;  %v338_v61 = vmul.f32 %v4385_v4, %v302_v58  ;;  %v323_v36 = vld [vmem:[%s4375_s29 + $0xe0] sm:$0xff]  ;;  %v324_v37 = vld [vmem:[%s4375_s29 + $0xe8] sm:$0xff]  ;;  %v4030_v58 = vld [vmem:[#allocation3 + $0x28] sm:$0xff] }
  0x27   : > { %v403_v52 = vmax.f32 %v371_v48, 0.0  ;;  %v404_v53 = vmax.f32 %v372_v49, 0.0  ;;  %v355_v0 = vmul.f32 %v4385_v4, %v319_v62  ;;  %v356_v1 = vmul.f32 %v4385_v4, %v320_v63  ;;  %v4047_v43 = vld [vmem:[#allocation3 + $0xb0] sm:$0xff]  ;;  %v4029_v62 = vld [vmem:[#allocation3 + $0x20] sm:$0xff] }
  0x28   : > { %v421_v54 = vmax.f32 %v389_v50, 0.0  ;;  %v422_v55 = vmax.f32 %v390_v51, 0.0  ;;  %v373_v2 = vadd.f32 %v4390_v5, %v337_v60  ;;  %v374_v3 = vadd.f32 %v4390_v5, %v338_v61  ;;  %v325_v60 = vld [vmem:[%s4375_s29 + $0xf0] sm:$0xff]  ;;  %v326_v61 = vld [vmem:[%s4375_s29 + $0xf8] sm:$0xff] }
  0x29   : > { %v433_v56 = vpack.c.bf16 %v404_v53, %v403_v52  ;;  %v391_v6 = vadd.f32 %v4390_v5, %v355_v0  ;;  %v392_v7 = vadd.f32 %v4390_v5, %v356_v1  ;;  %v339_v16 = vmul.f32 %v4385_v4, %v303_v13  ;;  %v307_v53 = vld [vmem:[%s4375_s29 + $0x60] sm:$0xff]  ;;  %v4045_v63 = vld [vmem:[#allocation3 + $0xa0] sm:$0xff] }
  0x2a   : > { %v442_v59 = vpack.c.bf16 %v422_v55, %v421_v54  ;;  %v405_v8 = vmax.f32 %v373_v2, 0.0  ;;  %v406_v9 = vmax.f32 %v374_v3, 0.0  ;;  %v340_v17 = vmul.f32 %v4385_v4, %v304_v14  ;;  %v308_v54 = vld [vmem:[%s4375_s29 + $0x68] sm:$0xff] }
  0x2b   : > { %v423_v10 = vmax.f32 %v391_v6, 0.0  ;;  %v424_v11 = vmax.f32 %v392_v7, 0.0  ;;  %v357_v20 = vmul.f32 %v4385_v4, %v321_v18  ;;  %v358_v21 = vmul.f32 %v4385_v4, %v322_v19  ;;  %v4056_v2 = vld [vmem:[#allocation3 + $0xf8] sm:$0xff] }
  0x2c   : > { %v434_v12 = vpack.c.bf16 %v406_v9, %v405_v8  ;;  %v375_v22 = vadd.f32 %v4390_v5, %v339_v16  ;;  %v376_v23 = vadd.f32 %v4390_v5, %v340_v17  ;;  %v341_v34 = vmul.f32 %v4385_v4, %v305_v31  ;;  %3050 = vmatpush.bf16.msrb.mxu0 %v4056_v2  ;;  %v4028_v9 = vld [vmem:[#allocation3 + $0x18] sm:$0xff]  ;;  %v309_v16 = vld [vmem:[%s4375_s29 + $0x70] sm:$0xff]  ;;  %v310_v17 = vld [vmem:[%s4375_s29 + $0x78] sm:$0xff] }
  0x2d   : > { %v443_v15 = vpack.c.bf16 %v424_v11, %v423_v10  ;;  %v393_v24 = vadd.f32 %v4390_v5, %v357_v20  ;;  %v394_v25 = vadd.f32 %v4390_v5, %v358_v21  ;;  %v342_v35 = vmul.f32 %v4385_v4, %v306_v32  ;;  %v4044_v10 = vld [vmem:[#allocation3 + $0x98] sm:$0xff]  ;;  %v4027_v20 = vld [vmem:[#allocation3 + $0x10] sm:$0xff]  ;;  %v4025_v31 = vld [vmem:[#allocation3] sm:$0xff] }
  0x2e   : > { %v407_v26 = vmax.f32 %v375_v22, 0.0  ;;  %v408_v27 = vmax.f32 %v376_v23, 0.0  ;;  %v359_v39 = vmul.f32 %v4385_v4, %v323_v36  ;;  %v360_v40 = vmul.f32 %v4385_v4, %v324_v37  ;;  %v4043_v21 = vld [vmem:[#allocation3 + $0x90] sm:$0xff]  ;;  %v4041_v32 = vld [vmem:[#allocation3 + $0x80] sm:$0xff] }
  0x2f   : > { %v425_v28 = vmax.f32 %v393_v24, 0.0  ;;  %v426_v29 = vmax.f32 %v394_v25, 0.0  ;;  %v377_v44 = vadd.f32 %v4390_v5, %v341_v34  ;;  %v378_v45 = vadd.f32 %v4390_v5, %v342_v35  ;;  %v4055_v22 = vld [vmem:[#allocation3 + $0xf0] sm:$0xff]  ;;  %v4026_v25 = vld [vmem:[#allocation3 + $0x8] sm:$0xff] }
  0x30   : > { %v435_v30 = vpack.c.bf16 %v408_v27, %v407_v26  ;;  %v395_v46 = vadd.f32 %v4390_v5, %v359_v39  ;;  %v396_v47 = vadd.f32 %v4390_v5, %v360_v40  ;;  %v344_v57 = vmul.f32 %v4385_v4, %v308_v54  ;;  %3051 = vmatpush.bf16.msrb.mxu0 %v4055_v22  ;;  %v4042_v26 = vld [vmem:[#allocation3 + $0x88] sm:$0xff] }
  0x31   : > { %v444_v33 = vpack.c.bf16 %v426_v29, %v425_v28  ;;  %v409_v48 = vmax.f32 %v377_v44, 0.0  ;;  %v410_v49 = vmax.f32 %v378_v45, 0.0  ;;  %v361_v0 = vmul.f32 %v4385_v4, %v325_v60  ;;  %v4054_v27 = vld [vmem:[#allocation3 + $0xe8] sm:$0xff]  ;;  %v4052_v44 = vld [vmem:[#allocation3 + $0xd8] sm:$0xff] }
  0x32   : > { %v427_v50 = vmax.f32 %v395_v46, 0.0  ;;  %v428_v51 = vmax.f32 %v396_v47, 0.0  ;;  %v362_v1 = vmul.f32 %v4385_v4, %v326_v61  ;;  %v380_v6 = vadd.f32 %v4390_v5, %v344_v57  ;;  %v311_v46 = vld [vmem:[%s4375_s29 + $0x80] sm:$0xff]  ;;  %v312_v47 = vld [vmem:[%s4375_s29 + $0x88] sm:$0xff]  ;;  %s4097_s29 = sshll.u32 %s4333_s28, 8  ;;  %s3617_s28 = scalar_lea.sflag [#allocation5], %s286_s21 }
  0x33   : > { %v436_v52 = vpack.c.bf16 %v410_v49, %v409_v48  ;;  %v397_v7 = vadd.f32 %v4390_v5, %v361_v0  ;;  %v4268_v18 = vmov 0.0   ;;  %v345_v23 = vmul.f32 %v4385_v4, %v309_v16  ;;  %v4051_v49 = vld [vmem:[#allocation3 + $0xd0] sm:$0xff]  ;;  %s3628_s13 = scalar_lea.hbm %s5479_s7, %s4097_s29 }
  0x34   : > { %v445_v55 = vpack.c.bf16 %v428_v51, %v427_v50  ;;  %v398_v8 = vadd.f32 %v4390_v5, %v362_v1  ;;  %694 = vst [vmem:[#allocation2] sm:$0xff] %v4268_v18  ;;  %v346_v24 = vmul.f32 %v4385_v4, %v310_v17  ;;  %3052 = vmatpush.bf16.msrb.mxu0 %v4054_v27  ;;  %v4269_v35 = vmov 0.0|0.0   ;;  %v4541_v57 = vld [vmem:[%s5477_s5] ss:$0 sm:$0xff]  ;;  %s3631_s15 = sshll.u32 %s3628_s13, 4  ;;  %s3632_s15 = int_to_ptr.hbm [resolvable:$true] %s3631_s15 }
  0x35   : > { %3716 = vmatmul.msk.bf16.gmra.mxu0 %vm448_vm1, %v432_v38  ;;  %v4032_v38 = vld [vmem:[#allocation3 + $0x38] sm:$0xff]  ;;  %v429_v13 = vmax.f32 %v397_v7, 0.0  ;;  %695 = vst [vmem:[#allocation2 + $0x8] sm:$0xff] %v4268_v18  ;;  %v381_v28 = vadd.f32 %v4390_v5, %v345_v23  ;;  %v1375_v36 = vunpack.c.l.b16 %v4269_v35  ;;  %v347_v50 = vmul.f32 %v4385_v4, %v311_v46  ;;  %s4211_s16 = sshra.s32 %s3632_s15, 4  ;;  %s4212_s16 = int_to_ptr.hbm [resolvable:$true] %s4211_s16 }
  0x36   : > { %3725 = vmatmul.msk.bf16.gmra.mxu3 %vm448_vm1, %v441_v41  ;;  %v4048_v41 = vld [vmem:[#allocation3 + $0xb8] sm:$0xff]  ;;  %2783 = vmatpush.bf16.msra.mxu1 %v4032_v38  ;;  %v430_v14 = vmax.f32 %v398_v8, 0.0  ;;  %696 = vst [vmem:[#allocation2 + $0x10] sm:$0x3] %v4268_v18  ;;  %v382_v29 = vadd.f32 %v4390_v5, %v346_v24  ;;  %v348_v51 = vmul.f32 %v4385_v4, %v312_v47  ;;  %s4213_s17 = scalar_lea.hbm %s4212_s16, 256  ;;  %p4218_p3 = scmp.lt.s32.totalorder %s4212_s16, %s5479_s7 }
  0x37   : > { %4099 = vmatpush.bf16.msra.mxu2 %v4032_v38  ;;  %2961 = vmatpush.bf16.msrb.mxu3 %v4048_v41  ;;  %698 = vst [vmem:[#allocation2 + $0x198] sm:$0xff] %v4268_v18  ;;  %v413_v39 = vmax.f32 %v381_v28, 0.0  ;;  %v1407_v41 = vpack.c.b16 %v1375_v36, %v1375_v36  ;;  %p4214_p0 = scmp.ne.s32.totalorder %s4212_s16, %s4213_s17  ;;  %p4219_p4 = scmp.lt.s32.totalorder %s4217_s20, %s4213_s17 }
  0x38   : > { %v446_v19 = vpack.c.bf16 %v430_v14, %v429_v13  ;;  %699 = vst [vmem:[#allocation2 + $0x1a0] sm:$0xff] %v4268_v18  ;;  %v414_v40 = vmax.f32 %v382_v29, 0.0  ;;  %v384_v54 = vadd.f32 %v4390_v5, %v348_v51 }
  0x39   : > { %700 = vst [vmem:[#allocation2 + $0x1a8] sm:$0x3] %v4268_v18  ;;  %p4215_p1 = pnand %p4214_p0, %p4350_p5  ;;  %p4220_p7 = por %p4219_p4, %p4218_p3 }
  0x3a   : > { %2784 = vmatpush.bf16.msra.mxu1 %v4031_v42  ;;  %702 = vst [vmem:[#allocation2 + $0x18] sm:$0x1] %v4268_v18  ;;  %v438_v45 = vpack.c.bf16 %v414_v40, %v413_v39 }
  0x3b   : > { %4100 = vmatpush.bf16.msra.mxu2 %v4031_v42  ;;  %2962 = vmatpush.bf16.msrb.mxu3 %v4047_v43  ;;  %703 = vst [vmem:[#allocation2 + $0x30] sm:$0x1] %v4268_v18  ;;  %p4216_p2 = pneg %p4215_p1 }
  0x3c   : > { %704 = vst [vmem:[#allocation2 + $0x48] sm:$0x1] %v4268_v18 }
  0x3d   : > { %705 = vst [vmem:[#allocation2 + $0x60] sm:$0x1] %v4268_v18  ;;  %v895_v37 = vld [vmem:[#allocation2 + $0xa] sm:$0xff]  ;;  %p4221_p8 = pnand %p4220_p7, %p4216_p2 }
  0x3e   : > { %2785 = vmatpush.bf16.msra.mxu1 %v4030_v58  ;;  %706 = vst [vmem:[#allocation2 + $0x78] sm:$0x1] %v4268_v18  ;;  %v927_v38 = vpack.c.bf16 %v895_v37, %v895_v37 }
  0x3f   : > { %4101 = vmatpush.bf16.msra.mxu2 %v4030_v58  ;;  %707 = vst [vmem:[#allocation2 + $0x90] sm:$0x1] %v4268_v18 }
  0x40   : > { %708 = vst [vmem:[#allocation2 + $0xa8] sm:$0x1] %v4268_v18  ;;  %v1568_v43 = vunpack.c.l.b16 %v927_v38 }
  0x41   : > { %709 = vst [vmem:[#allocation2 + $0xc0] sm:$0x1] %v4268_v18 }
  0x42   : > { %2786 = vmatpush.bf16.msra.mxu1 %v4029_v62  ;;  %710 = vst [vmem:[#allocation2 + $0xd8] sm:$0x1] %v4268_v18 }
  0x43   : > { %4102 = vmatpush.bf16.msra.mxu2 %v4029_v62  ;;  %711 = vst [vmem:[#allocation2 + $0xf0] sm:$0x1] %v4268_v18 }
  0x44   : > { %712 = vst [vmem:[#allocation2 + $0x108] sm:$0x1] %v4268_v18 }
  0x45   : > { %3717 = vmatmul.msk.bf16.gmra.mxu0 %vm448_vm1, %v433_v56  ;;  %v343_v56 = vmul.f32 %v4385_v4, %v307_v53  ;;  %713 = vst [vmem:[#allocation2 + $0x120] sm:$0x1] %v4268_v18  ;;  %v383_v53 = vadd.f32 %v4390_v5, %v347_v50  ;;  %v4049_v4 = vld [vmem:[#allocation3 + $0xc0] sm:$0xff] }
  0x46   : > { %3726 = vmatmul.msk.bf16.gmra.mxu3 %vm448_vm1, %v442_v59  ;;  %v4046_v59 = vld [vmem:[#allocation3 + $0xa8] sm:$0xff]  ;;  %2787 = vmatpush.bf16.msra.mxu1 %v4028_v9  ;;  %714 = vst [vmem:[#allocation2 + $0x138] sm:$0x1] %v4268_v18 }
  0x47   : > { %2963 = vmatpush.bf16.msrb.mxu3 %v4046_v59  ;;  %v379_v3 = vadd.f32 %v4390_v5, %v343_v56  ;;  %4103 = vmatpush.bf16.msra.mxu2 %v4028_v9  ;;  %715 = vst [vmem:[#allocation2 + $0x150] sm:$0x1] %v4268_v18  ;;  %v416_v56 = vmax.f32 %v384_v54, 0.0  ;;  %v4534_v5 = vld [vmem:[%s5476_s4] ss:$0 sm:$0xff] }
  0x48   : > { %716 = vst [vmem:[#allocation2 + $0x168] sm:$0x1] %v4268_v18 }
  0x49   : > { %v411_v11 = vmax.f32 %v379_v3, 0.0  ;;  %717 = vst [vmem:[#allocation2 + $0x180] sm:$0x1] %v4268_v18 }
  0x4a   : > { %2788 = vmatpush.bf16.msra.mxu1 %v4027_v20  ;;  %718 = vst [vmem:[#allocation2 + $0x29] sm:$0x1] %v4268_v18 }
  0x4b   : > { %2964 = vmatpush.bf16.msrb.mxu3 %v4045_v63  ;;  %4104 = vmatpush.bf16.msra.mxu2 %v4027_v20  ;;  %719 = vst [vmem:[#allocation2 + $0x41] sm:$0x1] %v4268_v18 }
  0x4c   : > { %720 = vst [vmem:[#allocation2 + $0x59] sm:$0x1] %v4268_v18 }
  0x4d   : > { %721 = vst [vmem:[#allocation2 + $0x71] sm:$0x1] %v4268_v18 }
  0x4e   : > { %2789 = vmatpush.bf16.msra.mxu1 %v4026_v25  ;;  %722 = vst [vmem:[#allocation2 + $0x89] sm:$0x1] %v4268_v18 }
  0x4f   : > { %2965 = vmatpush.bf16.msrb.mxu3 %v4044_v10  ;;  %4105 = vmatpush.bf16.msra.mxu2 %v4026_v25  ;;  %723 = vst [vmem:[#allocation2 + $0xa1] sm:$0x1] %v4268_v18 }
  0x50   : > { %724 = vst [vmem:[#allocation2 + $0xb9] sm:$0x1] %v4268_v18 }
  0x51   : > { %725 = vst [vmem:[#allocation2 + $0xd1] sm:$0x1] %v4268_v18 }
  0x52   : > { %2790 = vmatpush.bf16.msra.mxu1 %v4025_v31  ;;  %726 = vst [vmem:[#allocation2 + $0xe9] sm:$0x1] %v4268_v18 }
  0x53   : > { %2966 = vmatpush.bf16.msrb.mxu3 %v4043_v21  ;;  %4106 = vmatpush.bf16.msra.mxu2 %v4025_v31  ;;  %727 = vst [vmem:[#allocation2 + $0x101] sm:$0x1] %v4268_v18 }
  0x54   : > { %728 = vst [vmem:[#allocation2 + $0x119] sm:$0x1] %v4268_v18 }
  0x55   : > { %3718 = vmatmul.msk.bf16.gmra.mxu0 %vm448_vm1, %v434_v12  ;;  %v412_v12 = vmax.f32 %v380_v6, 0.0  ;;  %2791 = vmatmul.bf16.vlgmr.msra.gmra.mxu1 %v1407_v41  ;;  %729 = vst [vmem:[#allocation2 + $0x131] sm:$0x1] %v4268_v18 }
  0x56   : > { %3727 = vmatmul.msk.bf16.gmra.mxu3 %vm448_vm1, %v443_v15  ;;  %730 = vst [vmem:[#allocation2 + $0x149] sm:$0x1] %v4268_v18 }
  0x57   : > { %v437_v15 = vpack.c.bf16 %v412_v12, %v411_v11  ;;  %2967 = vmatpush.bf16.msrb.mxu3 %v4042_v26  ;;  %731 = vst [vmem:[#allocation2 + $0x161] sm:$0x1] %v4268_v18 }
  0x58   : > { %732 = vst [vmem:[#allocation2 + $0x179] sm:$0x1] %v4268_v18 }
  0x59   : > { %733 = vst [vmem:[#allocation2 + $0x191] sm:$0x1] %v4268_v18 }
  0x5b   : > { %2968 = vmatpush.bf16.msrb.mxu3 %v4041_v32 }
  0x65   : > { %3719 = vmatmul.msk.bf16.gmra.mxu0 %vm448_vm1, %v435_v30  ;;  %v894_v30 = vld [vmem:[#allocation2 + $0x2] sm:$0xff] }
  0x66   : > { %3728 = vmatmul.msk.bf16.gmra.mxu3 %vm448_vm1, %v444_v33  ;;  %v4053_v33 = vld [vmem:[#allocation3 + $0xe0] sm:$0xff]  ;;  %v926_v34 = vpack.c.bf16 %v894_v30, %v894_v30 }
  0x67   : > { %3053 = vmatpush.bf16.msrb.mxu0 %v4053_v33 }
  0x68   : > { %v1567_v42 = vunpack.c.l.b16 %v926_v34 }
  0x6a   : > { %v1599_v48 = vpack.c.b16 %v1568_v43, %v1567_v42 }
  0x6b   : > { %3054 = vmatpush.bf16.msrb.mxu0 %v4052_v44 }
  0x6f   : > { %3055 = vmatpush.bf16.msrb.mxu0 %v4051_v49 }
  0x75   : > { %3720 = vmatmul.msk.bf16.gmra.mxu0 %vm448_vm1, %v436_v52  ;;  %v4050_v52 = vld [vmem:[#allocation3 + $0xc8] sm:$0xff] }
  0x76   : > { %3729 = vmatmul.msk.bf16.gmra.mxu3 %vm448_vm1, %v445_v55  ;;  %3056 = vmatpush.bf16.msrb.mxu0 %v4050_v52  ;;  %v415_v55 = vmax.f32 %v383_v53, 0.0 }
  0x78   : > { %v439_v58 = vpack.c.bf16 %v416_v56, %v415_v55 }
  0x7a   : > { %3057 = vmatpush.bf16.msrb.mxu0 %v4049_v4 }
  0x85   : > { %3721 = vmatmul.msk.bf16.gmra.mxu0 %vm448_vm1, %v437_v15 }
  0x86   : > { %3730 = vmatmul.msk.bf16.gmra.mxu3 %vm448_vm1, %v446_v19 }
  0x95   : > { %3722 = vmatmul.msk.bf16.gmra.mxu0 %vm448_vm1, %v438_v45 }
  0x96   : > { %2969 = vmatmul.bf16.vlgmr.msrb.gmra.mxu3 %v1599_v48 }
  0xa2   : > { %v510_v59 = vpop.f32.mrf.mxu0 }
  0xa3   : > { %v594_v60 = vmul.f32 %v4534_v5, %v510_v59 }
  0xa5   : > { %v630_v61 = vadd.f32 %v4541_v57, %v594_v60  ;;  %3723 = vmatmul.msk.bf16.gmra.mxu0 %vm448_vm1, %v439_v58 }
  0xa7   : > { %v662_v62 = vmax.f32 %v630_v61, 0.0 }
  0xa9   : > { %734 = vst [vmem:[#allocation2 + $0x19] sm:$0xff] %v662_v62  ;;  %v555_v63 = vpop.f32.mrf.mxu3  ;;  %v1054_v9 = vpack.c.bf16 %v662_v62, %v662_v62 }
  0xaa   : > { %v512_v0 = vpop.f32.mrf.mxu0  ;;  %v612_v1 = vmul.f32 %v4534_v5, %v555_v63 }
  0xab   : > { %v595_v2 = vmul.f32 %v4534_v5, %v512_v0  ;;  %v4558_v16 = vunpack.c.l.b16 %v1054_v9 }
  0xac   : > { %v648_v3 = vadd.f32 %v4541_v57, %v612_v1 }
  0xad   : > { %v631_v6 = vadd.f32 %v4541_v57, %v595_v2 }
  0xae   : > { %v680_v7 = vmax.f32 %v648_v3, 0.0 }
  0xaf   : > { %v663_v8 = vmax.f32 %v631_v6, 0.0 }
  0xb0   : > { %752 = vst [vmem:[#allocation2 + $0xf1] sm:$0xff] %v680_v7  ;;  %v768_v15 = vld [vmem:[#allocation2 + $0x18] sm:$0xff] }
  0xb1   : > { %735 = vst [vmem:[#allocation2 + $0x21] sm:$0xff] %v663_v8  ;;  %v557_v10 = vpop.f32.mrf.mxu3  ;;  %v1055_v11 = vpack.c.bf16 %v663_v8, %v663_v8  ;;  %v800_v21 = vpack.c.bf16 %v768_v15, %v768_v15 }
  0xb2   : > { %v515_v12 = vpop.f32.mrf.mxu0  ;;  %v613_v13 = vmul.f32 %v4534_v5, %v557_v10 }
  0xb3   : > { %v596_v14 = vmul.f32 %v4534_v5, %v515_v12  ;;  %v4560_v17 = vunpack.c.l.b16 %v1055_v11  ;;  %v1377_v32 = vunpack.c.l.b16 %v800_v21 }
  0xb4   : > { %v649_v18 = vadd.f32 %v4541_v57, %v613_v13 }
  0xb5   : > { %v632_v19 = vadd.f32 %v4541_v57, %v596_v14  ;;  %v1791_v20 = vpack.c.b16 %v4560_v17, %v4558_v16 }
  0xb6   : > { %v681_v22 = vmax.f32 %v649_v18, 0.0 }
  0xb7   : > { %v664_v23 = vmax.f32 %v632_v19, 0.0 }
  0xb8   : > { %v769_v24 = vld [vmem:[#allocation2 + $0x20] sm:$0xff]  ;;  %753 = vst [vmem:[#allocation2 + $0xf9] sm:$0xff] %v681_v22 }
  0xb9   : > { %v896_v25 = vld [vmem:[#allocation2 + $0x1a] sm:$0xff]  ;;  %v897_v26 = vld [vmem:[#allocation2 + $0x22] sm:$0xff]  ;;  %736 = vst [vmem:[#allocation2 + $0x31] sm:$0xff] %v664_v23  ;;  %v801_v27 = vpack.c.bf16 %v769_v24, %v769_v24  ;;  %v560_v30 = vpop.f32.mrf.mxu3  ;;  %v1056_v44 = vpack.c.bf16 %v664_v23, %v664_v23 }
  0xba   : > { %v928_v28 = vpack.c.bf16 %v896_v25, %v896_v25  ;;  %v929_v29 = vpack.c.bf16 %v897_v26, %v897_v26  ;;  %v517_v31 = vpop.f32.mrf.mxu0  ;;  %v614_v33 = vmul.f32 %v4534_v5, %v560_v30 }
  0xbb   : > { %v597_v34 = vmul.f32 %v4534_v5, %v517_v31  ;;  %v1378_v35 = vunpack.c.l.b16 %v801_v27  ;;  %v4572_v51 = vunpack.c.l.b16 %v1056_v44 }
  0xbc   : > { %v1569_v36 = vunpack.c.l.b16 %v928_v28  ;;  %v1570_v37 = vunpack.c.l.b16 %v929_v29  ;;  %v650_v38 = vadd.f32 %v4541_v57, %v614_v33 }
  0xbd   : > { %v633_v39 = vadd.f32 %v4541_v57, %v597_v34  ;;  %v1408_v40 = vpack.c.b16 %v1378_v35, %v1377_v32 }
  0xbe   : > { %v1600_v41 = vpack.c.b16 %v1570_v37, %v1569_v36  ;;  %v682_v42 = vmax.f32 %v650_v38, 0.0 }
  0xbf   : > { %v665_v43 = vmax.f32 %v633_v39, 0.0  ;;  %2796 = vmatmul.bf16.gmra.mxu1 %v1408_v40  ;;  %3058 = vmatmul.bf16.vlgmr.msrb.gmra.mxu0 %v1408_v40 }
  0xc0   : > { %2974 = vmatmul.bf16.gmra.mxu3 %v1600_v41  ;;  %754 = vst [vmem:[#allocation2 + $0x109] sm:$0xff] %v682_v42  ;;  %v770_v50 = vld [vmem:[#allocation2 + $0x30] sm:$0xff] }
  0xc1   : > { %737 = vst [vmem:[#allocation2 + $0x39] sm:$0xff] %v665_v43  ;;  %v562_v45 = vpop.f32.mrf.mxu3  ;;  %v1057_v46 = vpack.c.bf16 %v665_v43, %v665_v43  ;;  %v802_v55 = vpack.c.bf16 %v770_v50, %v770_v50 }
  0xc2   : > { %v520_v47 = vpop.f32.mrf.mxu0  ;;  %v615_v48 = vmul.f32 %v4534_v5, %v562_v45 }
  0xc3   : > { %v598_v49 = vmul.f32 %v4534_v5, %v520_v47  ;;  %v4574_v52 = vunpack.c.l.b16 %v1057_v46  ;;  %v1379_v3 = vunpack.c.l.b16 %v802_v55 }
  0xc4   : > { %v651_v53 = vadd.f32 %v4541_v57, %v615_v48 }
  0xc5   : > { %v634_v54 = vadd.f32 %v4541_v57, %v598_v49  ;;  %v1792_v4 = vpack.c.b16 %v4574_v52, %v4572_v51 }
  0xc6   : > { %v683_v56 = vmax.f32 %v651_v53, 0.0 }
  0xc7   : > { %v666_v58 = vmax.f32 %v634_v54, 0.0 }
  0xc8   : > { %v771_v59 = vld [vmem:[#allocation2 + $0x38] sm:$0xff]  ;;  %755 = vst [vmem:[#allocation2 + $0x111] sm:$0xff] %v683_v56 }
  0xc9   : > { %v898_v60 = vld [vmem:[#allocation2 + $0x32] sm:$0xff]  ;;  %v899_v61 = vld [vmem:[#allocation2 + $0x3a] sm:$0xff]  ;;  %738 = vst [vmem:[#allocation2 + $0x49] sm:$0xff] %v666_v58  ;;  %v803_v62 = vpack.c.bf16 %v771_v59, %v771_v59  ;;  %v565_v1 = vpop.f32.mrf.mxu3  ;;  %v1058_v19 = vpack.c.bf16 %v666_v58, %v666_v58 }
  0xca   : > { %v930_v63 = vpack.c.bf16 %v898_v60, %v898_v60  ;;  %v931_v0 = vpack.c.bf16 %v899_v61, %v899_v61  ;;  %v522_v2 = vpop.f32.mrf.mxu0  ;;  %v616_v6 = vmul.f32 %v4534_v5, %v565_v1 }
  0xcb   : > { %v599_v7 = vmul.f32 %v4534_v5, %v522_v2  ;;  %v1380_v8 = vunpack.c.l.b16 %v803_v62  ;;  %v4586_v27 = vunpack.c.l.b16 %v1058_v19 }
  0xcc   : > { %v1571_v9 = vunpack.c.l.b16 %v930_v63  ;;  %v1572_v10 = vunpack.c.l.b16 %v931_v0  ;;  %v652_v11 = vadd.f32 %v4541_v57, %v616_v6 }
  0xcd   : > { %v635_v12 = vadd.f32 %v4541_v57, %v599_v7  ;;  %v1409_v13 = vpack.c.b16 %v1380_v8, %v1379_v3 }
  0xce   : > { %v1601_v14 = vpack.c.b16 %v1572_v10, %v1571_v9  ;;  %v684_v15 = vmax.f32 %v652_v11, 0.0 }
  0xcf   : > { %v667_v18 = vmax.f32 %v635_v12, 0.0  ;;  %2801 = vmatmul.bf16.gmra.mxu1 %v1409_v13  ;;  %3063 = vmatmul.bf16.gmra.mxu0 %v1409_v13 }
  0xd0   : > { %2979 = vmatmul.bf16.gmra.mxu3 %v1601_v14  ;;  %756 = vst [vmem:[#allocation2 + $0x121] sm:$0xff] %v684_v15  ;;  %v772_v26 = vld [vmem:[#allocation2 + $0x48] sm:$0xff] }
  0xd1   : > { %739 = vst [vmem:[#allocation2 + $0x51] sm:$0xff] %v667_v18  ;;  %v567_v21 = vpop.f32.mrf.mxu3  ;;  %v1059_v22 = vpack.c.bf16 %v667_v18, %v667_v18  ;;  %v804_v32 = vpack.c.bf16 %v772_v26, %v772_v26 }
  0xd2   : > { %v525_v23 = vpop.f32.mrf.mxu0  ;;  %v617_v24 = vmul.f32 %v4534_v5, %v567_v21 }
  0xd3   : > { %v600_v25 = vmul.f32 %v4534_v5, %v525_v23  ;;  %v4588_v28 = vunpack.c.l.b16 %v1059_v22  ;;  %v1381_v43 = vunpack.c.l.b16 %v804_v32 }
  0xd4   : > { %v653_v29 = vadd.f32 %v4541_v57, %v617_v24 }
  0xd5   : > { %v636_v30 = vadd.f32 %v4541_v57, %v600_v25  ;;  %v1793_v31 = vpack.c.b16 %v4588_v28, %v4586_v27 }
  0xd6   : > { %v685_v33 = vmax.f32 %v653_v29, 0.0 }
  0xd7   : > { %v668_v34 = vmax.f32 %v636_v30, 0.0 }
  0xd8   : > { %v773_v35 = vld [vmem:[#allocation2 + $0x50] sm:$0xff]  ;;  %757 = vst [vmem:[#allocation2 + $0x129] sm:$0xff] %v685_v33 }
  0xd9   : > { %v900_v36 = vld [vmem:[#allocation2 + $0x4a] sm:$0xff]  ;;  %v901_v37 = vld [vmem:[#allocation2 + $0x52] sm:$0xff]  ;;  %740 = vst [vmem:[#allocation2 + $0x61] sm:$0xff] %v668_v34  ;;  %v805_v38 = vpack.c.bf16 %v773_v35, %v773_v35  ;;  %v570_v41 = vpop.f32.mrf.mxu3  ;;  %v1060_v58 = vpack.c.bf16 %v668_v34, %v668_v34 }
  0xda   : > { %v932_v39 = vpack.c.bf16 %v900_v36, %v900_v36  ;;  %v933_v40 = vpack.c.bf16 %v901_v37, %v901_v37  ;;  %v527_v42 = vpop.f32.mrf.mxu0  ;;  %v618_v44 = vmul.f32 %v4534_v5, %v570_v41  ;;  %v4064_v37 = vld [vmem:[#allocation3 + $0x138] sm:$0xff] }
  0xdb   : > { %v601_v45 = vmul.f32 %v4534_v5, %v527_v42  ;;  %v1382_v46 = vunpack.c.l.b16 %v805_v38  ;;  %v4600_v1 = vunpack.c.l.b16 %v1060_v58  ;;  %3139 = vmatpush.bf16.msrb.mxu1 %v4064_v37 }
  0xdc   : > { %v1573_v47 = vunpack.c.l.b16 %v932_v39  ;;  %v1574_v48 = vunpack.c.l.b16 %v933_v40  ;;  %v654_v49 = vadd.f32 %v4541_v57, %v618_v44 }
  0xdd   : > { %v637_v50 = vadd.f32 %v4541_v57, %v601_v45  ;;  %v1410_v53 = vpack.c.b16 %v1382_v46, %v1381_v43  ;;  %v4063_v45 = vld [vmem:[#allocation3 + $0x130] sm:$0xff] }
  0xde   : > { %v1602_v54 = vpack.c.b16 %v1574_v48, %v1573_v47  ;;  %v686_v55 = vmax.f32 %v654_v49, 0.0 }
  0xdf   : > { %v669_v56 = vmax.f32 %v637_v50, 0.0  ;;  %2806 = vmatmul.bf16.gmra.mxu1 %v1410_v53  ;;  %3068 = vmatmul.bf16.gmra.mxu0 %v1410_v53 }
  0xe0   : > { %2984 = vmatmul.bf16.gmra.mxu3 %v1602_v54  ;;  %758 = vst [vmem:[#allocation2 + $0x139] sm:$0xff] %v686_v55  ;;  %v774_v0 = vld [vmem:[#allocation2 + $0x60] sm:$0xff]  ;;  %3140 = vmatpush.bf16.msrb.mxu1 %v4063_v45 }
  0xe1   : > { %741 = vst [vmem:[#allocation2 + $0x69] sm:$0xff] %v669_v56  ;;  %v572_v59 = vpop.f32.mrf.mxu3  ;;  %v1061_v60 = vpack.c.bf16 %v669_v56, %v669_v56  ;;  %v806_v8 = vpack.c.bf16 %v774_v0, %v774_v0  ;;  %v4062_v56 = vld [vmem:[#allocation3 + $0x128] sm:$0xff] }
  0xe2   : > { %v530_v61 = vpop.f32.mrf.mxu0  ;;  %v619_v62 = vmul.f32 %v4534_v5, %v572_v59 }
  0xe3   : > { %v602_v63 = vmul.f32 %v4534_v5, %v530_v61  ;;  %v4602_v2 = vunpack.c.l.b16 %v1061_v60  ;;  %v1383_v22 = vunpack.c.l.b16 %v806_v8 }
  0xe4   : > { %v655_v3 = vadd.f32 %v4541_v57, %v619_v62  ;;  %3141 = vmatpush.bf16.msrb.mxu1 %v4062_v56 }
  0xe5   : > { %v638_v6 = vadd.f32 %v4541_v57, %v602_v63  ;;  %v1794_v7 = vpack.c.b16 %v4602_v2, %v4600_v1 }
  0xe6   : > { %v687_v9 = vmax.f32 %v655_v3, 0.0 }
  0xe7   : > { %v670_v10 = vmax.f32 %v638_v6, 0.0 }
  0xe8   : > { %v775_v11 = vld [vmem:[#allocation2 + $0x68] sm:$0xff]  ;;  %759 = vst [vmem:[#allocation2 + $0x141] sm:$0xff] %v687_v9 }
  0xe9   : > { %v902_v12 = vld [vmem:[#allocation2 + $0x62] sm:$0xff]  ;;  %v903_v13 = vld [vmem:[#allocation2 + $0x6a] sm:$0xff]  ;;  %742 = vst [vmem:[#allocation2 + $0x79] sm:$0xff] %v670_v10  ;;  %v807_v14 = vpack.c.bf16 %v775_v11, %v775_v11  ;;  %v575_v19 = vpop.f32.mrf.mxu3  ;;  %v1062_v38 = vpack.c.bf16 %v670_v10, %v670_v10 }
  0xea   : > { %v934_v15 = vpack.c.bf16 %v902_v12, %v902_v12  ;;  %v935_v18 = vpack.c.bf16 %v903_v13, %v903_v13  ;;  %v532_v21 = vpop.f32.mrf.mxu0  ;;  %v620_v23 = vmul.f32 %v4534_v5, %v575_v19  ;;  %v4061_v13 = vld [vmem:[#allocation3 + $0x120] sm:$0xff] }
  0xeb   : > { %v603_v24 = vmul.f32 %v4534_v5, %v532_v21  ;;  %v1384_v25 = vunpack.c.l.b16 %v807_v14  ;;  %v4614_v46 = vunpack.c.l.b16 %v1062_v38  ;;  %3142 = vmatpush.bf16.msrb.mxu1 %v4061_v13 }
  0xec   : > { %v1575_v26 = vunpack.c.l.b16 %v934_v15  ;;  %v1576_v29 = vunpack.c.l.b16 %v935_v18  ;;  %v656_v30 = vadd.f32 %v4541_v57, %v620_v23  ;;  %v4060_v23 = vld [vmem:[#allocation3 + $0x118] sm:$0xff] }
  0xed   : > { %v639_v32 = vadd.f32 %v4541_v57, %v603_v24  ;;  %v1411_v33 = vpack.c.b16 %v1384_v25, %v1383_v22 }
  0xee   : > { %v1603_v34 = vpack.c.b16 %v1576_v29, %v1575_v26  ;;  %v688_v35 = vmax.f32 %v656_v30, 0.0 }
  0xef   : > { %v671_v36 = vmax.f32 %v639_v32, 0.0  ;;  %2811 = vmatmul.bf16.gmra.mxu1 %v1411_v33  ;;  %3073 = vmatmul.bf16.gmra.mxu0 %v1411_v33 }
  0xf0   : > { %2989 = vmatmul.bf16.gmra.mxu3 %v1603_v34  ;;  %760 = vst [vmem:[#allocation2 + $0x151] sm:$0xff] %v688_v35  ;;  %v776_v44 = vld [vmem:[#allocation2 + $0x78] sm:$0xff]  ;;  %3143 = vmatpush.bf16.msrb.mxu1 %v4060_v23  ;;  %v4059_v34 = vld [vmem:[#allocation3 + $0x110] sm:$0xff] }
  0xf1   : > { %743 = vst [vmem:[#allocation2 + $0x81] sm:$0xff] %v671_v36  ;;  %v577_v39 = vpop.f32.mrf.mxu3  ;;  %v1063_v40 = vpack.c.bf16 %v671_v36, %v671_v36  ;;  %v808_v53 = vpack.c.bf16 %v776_v44, %v776_v44 }
  0xf2   : > { %v535_v41 = vpop.f32.mrf.mxu0  ;;  %v621_v42 = vmul.f32 %v4534_v5, %v577_v39 }
  0xf3   : > { %v604_v43 = vmul.f32 %v4534_v5, %v535_v41  ;;  %v4616_v47 = vunpack.c.l.b16 %v1063_v40  ;;  %v1385_v6 = vunpack.c.l.b16 %v808_v53 }
  0xf4   : > { %v657_v48 = vadd.f32 %v4541_v57, %v621_v42  ;;  %3144 = vmatpush.bf16.msrb.mxu1 %v4059_v34 }
  0xf5   : > { %v640_v49 = vadd.f32 %v4541_v57, %v604_v43  ;;  %v1795_v50 = vpack.c.b16 %v4616_v47, %v4614_v46  ;;  %v4058_v43 = vld [vmem:[#allocation3 + $0x108] sm:$0xff] }
  0xf6   : > { %v689_v54 = vmax.f32 %v657_v48, 0.0  ;;  %v4078_v46 = vld [vmem:[#allocation3 + $0x1a8] sm:$0xff] }
  0xf7   : > { %v672_v55 = vmax.f32 %v640_v49, 0.0 }
  0xf8   : > { %v777_v58 = vld [vmem:[#allocation2 + $0x80] sm:$0xff]  ;;  %761 = vst [vmem:[#allocation2 + $0x159] sm:$0xff] %v689_v54  ;;  %3145 = vmatpush.bf16.msrb.mxu1 %v4058_v43 }
  0xf9   : > { %v904_v59 = vld [vmem:[#allocation2 + $0x7a] sm:$0xff]  ;;  %v905_v60 = vld [vmem:[#allocation2 + $0x82] sm:$0xff]  ;;  %744 = vst [vmem:[#allocation2 + $0x91] sm:$0xff] %v672_v55  ;;  %v809_v61 = vpack.c.bf16 %v777_v58, %v777_v58  ;;  %v580_v0 = vpop.f32.mrf.mxu3  ;;  %v1064_v24 = vpack.c.bf16 %v672_v55, %v672_v55 }
  0xfa   : > { %v936_v62 = vpack.c.bf16 %v904_v59, %v904_v59  ;;  %v937_v63 = vpack.c.bf16 %v905_v60, %v905_v60  ;;  %v537_v3 = vpop.f32.mrf.mxu0  ;;  %v622_v8 = vmul.f32 %v4534_v5, %v580_v0  ;;  %v4057_v0 = vld [vmem:[#allocation3 + $0x100] sm:$0xff] }
  0xfb   : > { %v605_v9 = vmul.f32 %v4534_v5, %v537_v3  ;;  %v1386_v10 = vunpack.c.l.b16 %v809_v61  ;;  %v4628_v35 = vunpack.c.l.b16 %v1064_v24 }
  0xfc   : > { %v1577_v11 = vunpack.c.l.b16 %v936_v62  ;;  %v1578_v12 = vunpack.c.l.b16 %v937_v63  ;;  %v658_v14 = vadd.f32 %v4541_v57, %v622_v8  ;;  %3146 = vmatpush.bf16.msrb.mxu1 %v4057_v0 }
  0xfd   : > { %v641_v15 = vadd.f32 %v4541_v57, %v605_v9  ;;  %v1412_v18 = vpack.c.b16 %v1386_v10, %v1385_v6 }
  0xfe   : > { %v1604_v19 = vpack.c.b16 %v1578_v12, %v1577_v11  ;;  %v690_v21 = vmax.f32 %v658_v14, 0.0  ;;  %v4040_v14 = vld [vmem:[#allocation3 + $0x78] sm:$0xff] }
  0xff   : > { %v673_v22 = vmax.f32 %v641_v15, 0.0  ;;  %2816 = vmatmul.bf16.gmra.mxu1 %v1412_v18  ;;  %3078 = vmatmul.bf16.gmra.mxu0 %v1412_v18 }
 0x100   : > { %2994 = vmatmul.bf16.gmra.mxu3 %v1604_v19  ;;  %762 = vst [vmem:[#allocation2 + $0x169] sm:$0xff] %v690_v21  ;;  %v778_v33 = vld [vmem:[#allocation2 + $0x90] sm:$0xff]  ;;  %2872 = vmatpush.bf16.msrb.mxu2 %v4040_v14 }
 0x101   : > { %745 = vst [vmem:[#allocation2 + $0x99] sm:$0xff] %v673_v22  ;;  %v582_v25 = vpop.f32.mrf.mxu3  ;;  %v1065_v26 = vpack.c.bf16 %v673_v22, %v673_v22  ;;  %v810_v40 = vpack.c.bf16 %v778_v33, %v778_v33 }
 0x102   : > { %v540_v29 = vpop.f32.mrf.mxu0  ;;  %v623_v30 = vmul.f32 %v4534_v5, %v582_v25 }
 0x103   : > { %v606_v32 = vmul.f32 %v4534_v5, %v540_v29  ;;  %v4630_v36 = vunpack.c.l.b16 %v1065_v26  ;;  %v1387_v58 = vunpack.c.l.b16 %v810_v40 }
 0x104   : > { %v659_v37 = vadd.f32 %v4541_v57, %v623_v30 }
 0x105   : > { %v642_v38 = vadd.f32 %v4541_v57, %v606_v32  ;;  %v1796_v39 = vpack.c.b16 %v4630_v36, %v4628_v35  ;;  %v4074_v35 = vld [vmem:[#allocation3 + $0x188] sm:$0xff] }
 0x106   : > { %v691_v41 = vmax.f32 %v659_v37, 0.0  ;;  %v4086_v36 = vld [vmem:[#allocation3 + $0x1e8] sm:$0xff] }
 0x107   : > { %v674_v42 = vmax.f32 %v642_v38, 0.0 }
 0x108   : > { %v779_v44 = vld [vmem:[#allocation2 + $0x98] sm:$0xff]  ;;  %763 = vst [vmem:[#allocation2 + $0x171] sm:$0xff] %v691_v41 }
 0x109   : > { %v906_v45 = vld [vmem:[#allocation2 + $0x92] sm:$0xff]  ;;  %v907_v48 = vld [vmem:[#allocation2 + $0x9a] sm:$0xff]  ;;  %746 = vst [vmem:[#allocation2 + $0xa9] sm:$0xff] %v674_v42  ;;  %v811_v49 = vpack.c.bf16 %v779_v44, %v779_v44  ;;  %v585_v55 = vpop.f32.mrf.mxu3  ;;  %v1066_v12 = vpack.c.bf16 %v674_v42, %v674_v42 }
 0x10a   : > { %v938_v53 = vpack.c.bf16 %v906_v45, %v906_v45  ;;  %v939_v54 = vpack.c.bf16 %v907_v48, %v907_v48  ;;  %v542_v56 = vpop.f32.mrf.mxu0  ;;  %v624_v59 = vmul.f32 %v4534_v5, %v585_v55 }
 0x10b   : > { %v607_v60 = vmul.f32 %v4534_v5, %v542_v56  ;;  %v1388_v61 = vunpack.c.l.b16 %v811_v49  ;;  %v4642_v23 = vunpack.c.l.b16 %v1066_v12  ;;  %v4660_v12 = vpop.f32.mrf.mxu1 }
 0x10c   : > { %v1579_v62 = vunpack.c.l.b16 %v938_v53  ;;  %v1580_v63 = vunpack.c.l.b16 %v939_v54  ;;  %v660_v3 = vadd.f32 %v4541_v57, %v624_v59  ;;  %v4039_v59 = vld [vmem:[#allocation3 + $0x70] sm:$0xff] }
 0x10d   : > { %v643_v6 = vadd.f32 %v4541_v57, %v607_v60  ;;  %v1413_v8 = vpack.c.b16 %v1388_v61, %v1387_v58  ;;  %2873 = vmatpush.bf16.msrb.mxu2 %v4039_v59 }
 0x10e   : > { %v1605_v9 = vpack.c.b16 %v1580_v63, %v1579_v62  ;;  %v692_v10 = vmax.f32 %v660_v3, 0.0 }
 0x10f   : > { %v675_v11 = vmax.f32 %v643_v6, 0.0  ;;  %2821 = vmatmul.bf16.gmra.mxu1 %v1413_v8  ;;  %3083 = vmatmul.bf16.gmra.mxu0 %v1413_v8 }
 0x110   : > { %2999 = vmatmul.bf16.gmra.mxu3 %v1605_v9  ;;  %764 = vst [vmem:[#allocation2 + $0x181] sm:$0xff] %v692_v10  ;;  %v780_v22 = vld [vmem:[#allocation2 + $0xa8] sm:$0xff] }
 0x111   : > { %747 = vst [vmem:[#allocation2 + $0xb1] sm:$0xff] %v675_v11  ;;  %v587_v13 = vpop.f32.mrf.mxu3  ;;  %v1067_v15 = vpack.c.bf16 %v675_v11, %v675_v11  ;;  %v812_v30 = vpack.c.bf16 %v780_v22, %v780_v22 }
 0x112   : > { %v545_v18 = vpop.f32.mrf.mxu0  ;;  %v625_v19 = vmul.f32 %v4534_v5, %v587_v13 }
 0x113   : > { %v608_v21 = vmul.f32 %v4534_v5, %v545_v18  ;;  %v4644_v24 = vunpack.c.l.b16 %v1067_v15  ;;  %v1389_v44 = vunpack.c.l.b16 %v812_v30 }
 0x114   : > { %v661_v25 = vadd.f32 %v4541_v57, %v625_v19 }
 0x115   : > { %v644_v26 = vadd.f32 %v4541_v57, %v608_v21  ;;  %v1797_v29 = vpack.c.b16 %v4644_v24, %v4642_v23  ;;  %v4082_v23 = vld [vmem:[#allocation3 + $0x1c8] sm:$0xff] }
 0x116   : > { %v693_v32 = vmax.f32 %v661_v25, 0.0 }
 0x117   : > { %v676_v33 = vmax.f32 %v644_v26, 0.0 }
 0x118   : > { %v781_v34 = vld [vmem:[#allocation2 + $0xb0] sm:$0xff]  ;;  %765 = vst [vmem:[#allocation2 + $0x189] sm:$0xff] %v693_v32 }
 0x119   : > { %v908_v37 = vld [vmem:[#allocation2 + $0xaa] sm:$0xff]  ;;  %v909_v38 = vld [vmem:[#allocation2 + $0xb2] sm:$0xff]  ;;  %748 = vst [vmem:[#allocation2 + $0xc1] sm:$0xff] %v676_v33  ;;  %v813_v40 = vpack.c.bf16 %v781_v34, %v781_v34  ;;  %v1068_v60 = vpack.c.bf16 %v676_v33, %v676_v33 }
 0x11a   : > { %v940_v41 = vpack.c.bf16 %v908_v37, %v908_v37  ;;  %v941_v42 = vpack.c.bf16 %v909_v38, %v909_v38  ;;  %v547_v43 = vpop.f32.mrf.mxu0 }
 0x11b   : > { %v609_v45 = vmul.f32 %v4534_v5, %v547_v43  ;;  %v1390_v48 = vunpack.c.l.b16 %v813_v40  ;;  %v4653_v3 = vunpack.c.l.b16 %v1068_v60  ;;  %v4664_v40 = vpop.f32.mrf.mxu3 }
 0x11c   : > { %v1581_v49 = vunpack.c.l.b16 %v940_v41  ;;  %v1582_v53 = vunpack.c.l.b16 %v941_v42  ;;  %v4038_v42 = vld [vmem:[#allocation3 + $0x68] sm:$0xff] }
 0x11d   : > { %v645_v54 = vadd.f32 %v4541_v57, %v609_v45  ;;  %v1414_v55 = vpack.c.b16 %v1390_v48, %v1389_v44  ;;  %2874 = vmatpush.bf16.msrb.mxu2 %v4038_v42  ;;  %v4669_v44 = vpop.f32.mrf.mxu1 }
 0x11e   : > { %v1606_v56 = vpack.c.b16 %v1582_v53, %v1581_v49 }
 0x11f   : > { %v677_v58 = vmax.f32 %v645_v54, 0.0  ;;  %2826 = vmatmul.bf16.gmra.mxu1 %v1414_v55  ;;  %3088 = vmatmul.bf16.gmra.mxu0 %v1414_v55 }
 0x120   : > { %3004 = vmatmul.bf16.gmra.mxu3 %v1606_v56  ;;  %v782_v0 = vld [vmem:[#allocation2 + $0xc0] sm:$0xff] }
 0x121   : > { %749 = vst [vmem:[#allocation2 + $0xc9] sm:$0xff] %v677_v58  ;;  %v1069_v61 = vpack.c.bf16 %v677_v58, %v677_v58  ;;  %v814_v10 = vpack.c.bf16 %v782_v0, %v782_v0 }
 0x122   : > { %v550_v62 = vpop.f32.mrf.mxu0 }
 0x123   : > { %v610_v63 = vmul.f32 %v4534_v5, %v550_v62  ;;  %v4655_v6 = vunpack.c.l.b16 %v1069_v61  ;;  %v1391_v25 = vunpack.c.l.b16 %v814_v10  ;;  %v4677_v54 = vpop.f32.mrf.mxu3 }
 0x125   : > { %v646_v8 = vadd.f32 %v4541_v57, %v610_v63  ;;  %v1798_v9 = vpack.c.b16 %v4655_v6, %v4653_v3 }
 0x127   : > { %v678_v11 = vmax.f32 %v646_v8, 0.0 }
 0x128   : > { %v783_v13 = vld [vmem:[#allocation2 + $0xc8] sm:$0xff] }
 0x129   : > { %v910_v14 = vld [vmem:[#allocation2 + $0xc2] sm:$0xff]  ;;  %v911_v15 = vld [vmem:[#allocation2 + $0xca] sm:$0xff]  ;;  %750 = vst [vmem:[#allocation2 + $0xd9] sm:$0xff] %v678_v11  ;;  %v815_v18 = vpack.c.bf16 %v783_v13, %v783_v13  ;;  %v1070_v43 = vpack.c.bf16 %v678_v11, %v678_v11 }
 0x12a   : > { %v942_v19 = vpack.c.bf16 %v910_v14, %v910_v14  ;;  %v943_v21 = vpack.c.bf16 %v911_v15, %v911_v15  ;;  %v552_v22 = vpop.f32.mrf.mxu0  ;;  %v4037_v11 = vld [vmem:[#allocation3 + $0x60] sm:$0xff]  ;;  %v787_v15 = vld [vmem:[#allocation2 + $0xf8] sm:$0xff] }
 0x12b   : > { %v611_v26 = vmul.f32 %v4534_v5, %v552_v22  ;;  %v1392_v30 = vunpack.c.l.b16 %v815_v18  ;;  %v786_v13 = vld [vmem:[#allocation2 + $0xf0] sm:$0xff]  ;;  %2875 = vmatpush.bf16.msrb.mxu2 %v4037_v11 }
 0x12c   : > { %v1583_v32 = vunpack.c.l.b16 %v942_v19  ;;  %v1584_v33 = vunpack.c.l.b16 %v943_v21  ;;  %v914_v18 = vld [vmem:[#allocation2 + $0xf2] sm:$0xff]  ;;  %v915_v19 = vld [vmem:[#allocation2 + $0xfa] sm:$0xff] }
 0x12d   : > { %v647_v34 = vadd.f32 %v4541_v57, %v611_v26  ;;  %v1415_v37 = vpack.c.b16 %v1392_v30, %v1391_v25  ;;  %v4671_v57 = vunpack.c.l.b16 %v1070_v43  ;;  %v818_v25 = vpack.c.bf16 %v786_v13, %v786_v13  ;;  %v4036_v43 = vld [vmem:[#allocation3 + $0x58] sm:$0xff] }
 0x12e   : > { %v1607_v38 = vpack.c.b16 %v1584_v33, %v1583_v32  ;;  %v819_v26 = vpack.c.bf16 %v787_v15, %v787_v15  ;;  %v946_v30 = vpack.c.bf16 %v914_v18, %v914_v18  ;;  %v947_v32 = vpack.c.bf16 %v915_v19, %v915_v19  ;;  %v4035_v15 = vld [vmem:[#allocation3 + $0x50] sm:$0xff] }
 0x12f   : > { %v679_v41 = vmax.f32 %v647_v34, 0.0  ;;  %2831 = vmatmul.bf16.vlgmr.msra.gmra.mxu2 %v1415_v37  ;;  %3093 = vmatmul.bf16.gmra.mxu0 %v1415_v37  ;;  %v1395_v33 = vunpack.c.l.b16 %v818_v25  ;;  %v790_v18 = vld [vmem:[#allocation2 + $0x120] sm:$0xff]  ;;  %v791_v25 = vld [vmem:[#allocation2 + $0x128] sm:$0xff] }
 0x130   : > { %3009 = vmatmul.bf16.gmra.mxu3 %v1607_v38  ;;  %3147 = vmatmul.bf16.vlgmr.msrb.gmra.mxu1 %v1791_v20  ;;  %v784_v48 = vld [vmem:[#allocation2 + $0xd8] sm:$0xff]  ;;  %v1396_v34 = vunpack.c.l.b16 %v819_v26  ;;  %v1587_v37 = vunpack.c.l.b16 %v946_v30  ;;  %v1588_v51 = vunpack.c.l.b16 %v947_v32  ;;  %v918_v26 = vld [vmem:[#allocation2 + $0x122] sm:$0xff]  ;;  %v919_v30 = vld [vmem:[#allocation2 + $0x12a] sm:$0xff] }
 0x131   : > { %751 = vst [vmem:[#allocation2 + $0xe1] sm:$0xff] %v679_v41  ;;  %v1071_v5 = vpack.c.bf16 %v679_v41, %v679_v41  ;;  %v816_v53 = vpack.c.bf16 %v784_v48, %v784_v48  ;;  %2876 = vmatpush.bf16.msrb.mxu2 %v4036_v43 }
 0x132   : > { %v1417_v41 = vpack.c.b16 %v1396_v34, %v1395_v33  ;;  %v1609_v42 = vpack.c.b16 %v1588_v51, %v1587_v37  ;;  %v822_v34 = vpack.c.bf16 %v790_v18, %v790_v18  ;;  %v823_v37 = vpack.c.bf16 %v791_v25, %v791_v25 }
 0x133   : > { %v4673_v45 = vunpack.c.l.b16 %v1071_v5  ;;  %v1393_v59 = vunpack.c.l.b16 %v816_v53  ;;  %v788_v5 = vld [vmem:[#allocation2 + $0x108] sm:$0xff]  ;;  %v789_v53 = vld [vmem:[#allocation2 + $0x110] sm:$0xff]  ;;  %v950_v51 = vpack.c.bf16 %v918_v26, %v918_v26 }
 0x134   : > { %v1400_v43 = vunpack.c.l.b16 %v823_v37 }
 0x135   : > { %2877 = vmatpush.bf16.msrb.mxu2 %v4035_v15 }
 0x138   : > { %v785_v55 = vld [vmem:[#allocation2 + $0xe0] sm:$0xff] }
 0x139   : > { %v912_v56 = vld [vmem:[#allocation2 + $0xda] sm:$0xff]  ;;  %v913_v16 = vld [vmem:[#allocation2 + $0xe2] sm:$0xff]  ;;  %v817_v17 = vpack.c.bf16 %v785_v55, %v785_v55  ;;  %v916_v55 = vld [vmem:[#allocation2 + $0x10a] sm:$0xff] }
 0x13a   : > { %v944_v20 = vpack.c.bf16 %v912_v56, %v912_v56  ;;  %v945_v58 = vpack.c.bf16 %v913_v16, %v913_v16  ;;  %v917_v56 = vld [vmem:[#allocation2 + $0x112] sm:$0xff] }
 0x13b   : > { %v1394_v60 = vunpack.c.l.b16 %v817_v17 }
 0x13c   : > { %v1585_v61 = vunpack.c.l.b16 %v944_v20  ;;  %v1586_v62 = vunpack.c.l.b16 %v945_v58  ;;  %v4679_v63 = vpop.f32.mrf.mxu1  ;;  %v4681_v0 = vpop.f32.mrf.mxu0  ;;  %v820_v20 = vpack.c.bf16 %v788_v5, %v788_v5  ;;  %v821_v58 = vpack.c.bf16 %v789_v53, %v789_v53 }
 0x13d   : > { %v1416_v8 = vpack.c.b16 %v1394_v60, %v1393_v59  ;;  %v948_v59 = vpack.c.bf16 %v916_v55, %v916_v55  ;;  %v949_v60 = vpack.c.bf16 %v917_v56, %v917_v56  ;;  %v1591_v5 = vunpack.c.l.b16 %v950_v51  ;;  %v4077_v51 = vld [vmem:[#allocation3 + $0x1a0] sm:$0xff] }
 0x13e   : > { %v1608_v10 = vpack.c.b16 %v1586_v62, %v1585_v61  ;;  %v1397_v61 = vunpack.c.l.b16 %v820_v20  ;;  %v1398_v62 = vunpack.c.l.b16 %v821_v58  ;;  %v4034_v20 = vld [vmem:[#allocation3 + $0x48] sm:$0xff]  ;;  %v4080_v58 = vld [vmem:[#allocation3 + $0x1b8] sm:$0xff] }
 0x13f   : > { %2836 = vmatmul.bf16.gmra.mxu2 %v1416_v8  ;;  %3098 = vmatmul.bf16.gmra.mxu0 %v1416_v8  ;;  %v1589_v8 = vunpack.c.l.b16 %v948_v59  ;;  %v1590_v27 = vunpack.c.l.b16 %v949_v60  ;;  %v792_v59 = vld [vmem:[#allocation2 + $0x138] sm:$0xff] }
 0x140   : > { %3014 = vmatmul.bf16.gmra.mxu3 %v1608_v10  ;;  %3152 = vmatmul.bf16.gmra.mxu1 %v1792_v4  ;;  %v1418_v11 = vpack.c.b16 %v1398_v62, %v1397_v61  ;;  %v793_v61 = vld [vmem:[#allocation2 + $0x140] sm:$0xff]  ;;  %v824_v15 = vpack.c.bf16 %v792_v59, %v792_v59  ;;  %v795_v59 = vld [vmem:[#allocation2 + $0x158] sm:$0xff] }
 0x141   : > { %v1610_v13 = vpack.c.b16 %v1590_v27, %v1589_v8  ;;  %2878 = vmatpush.bf16.msrb.mxu2 %v4034_v20  ;;  %3317 = vmatpush.bf16.msra.mxu3 %v4080_v58  ;;  %v920_v62 = vld [vmem:[#allocation2 + $0x13a] sm:$0xff]  ;;  %v921_v8 = vld [vmem:[#allocation2 + $0x142] sm:$0xff]  ;;  %v825_v18 = vpack.c.bf16 %v793_v61, %v793_v61  ;;  %v794_v20 = vld [vmem:[#allocation2 + $0x150] sm:$0xff] }
 0x142   : > { %v4079_v27 = vld [vmem:[#allocation3 + $0x1b0] sm:$0xff]  ;;  %v952_v25 = vpack.c.bf16 %v920_v62, %v920_v62  ;;  %v953_v26 = vpack.c.bf16 %v921_v8, %v921_v8  ;;  %v1401_v47 = vunpack.c.l.b16 %v824_v15  ;;  %v922_v61 = vld [vmem:[#allocation2 + $0x152] sm:$0xff] }
 0x143   : > { %v4686_v14 = vpop.f32.mrf.mxu3  ;;  %v923_v62 = vld [vmem:[#allocation2 + $0x15a] sm:$0xff] }
 0x144   : > { %v4688_v21 = vpop.f32.mrf.mxu1  ;;  %v4690_v22 = vpop.f32.mrf.mxu0  ;;  %v4075_v8 = vld [vmem:[#allocation3 + $0x190] sm:$0xff] }
 0x145   : > { %3318 = vmatpush.bf16.msra.mxu3 %v4079_v27  ;;  %v4087_v27 = vld [vmem:[#allocation3 + $0x1f0] sm:$0xff] }
 0x149   : > { %3319 = vmatpush.bf16.msra.mxu3 %v4078_v46  ;;  %v955_v46 = vpack.c.bf16 %v923_v62, %v923_v62 }
 0x14b   : > { %v4692_v52 = vpop.f32.mrf.mxu3 }
 0x14c   : > { %v4694_v4 = vpop.f32.mrf.mxu1  ;;  %v4696_v38 = vpop.f32.mrf.mxu0 }
 0x14d   : > { %3320 = vmatpush.bf16.msra.mxu3 %v4077_v51 }
 0x14f   : > { %2841 = vmatmul.bf16.gmra.mxu2 %v1417_v41  ;;  %3103 = vmatmul.bf16.gmra.mxu0 %v1417_v41  ;;  %v951_v41 = vpack.c.bf16 %v919_v30, %v919_v30  ;;  %v1593_v30 = vunpack.c.l.b16 %v952_v25  ;;  %v827_v25 = vpack.c.bf16 %v795_v59, %v795_v59  ;;  %v4072_v59 = vld [vmem:[#allocation3 + $0x178] sm:$0xff] }
 0x150   : > { %3019 = vmatmul.bf16.gmra.mxu3 %v1609_v42  ;;  %3157 = vmatmul.bf16.gmra.mxu1 %v1793_v31  ;;  %v1399_v42 = vunpack.c.l.b16 %v822_v34  ;;  %v1594_v34 = vunpack.c.l.b16 %v953_v26  ;;  %v954_v26 = vpack.c.bf16 %v922_v61, %v922_v61  ;;  %v796_v61 = vld [vmem:[#allocation2 + $0x168] sm:$0xff] }
 0x151   : > { %v1592_v1 = vunpack.c.l.b16 %v951_v41 }
 0x152   : > { %v1419_v55 = vpack.c.b16 %v1400_v43, %v1399_v42  ;;  %v1612_v43 = vpack.c.b16 %v1594_v34, %v1593_v30  ;;  %v1595_v30 = vunpack.c.l.b16 %v954_v26  ;;  %v1596_v34 = vunpack.c.l.b16 %v955_v46 }
 0x153   : > { %v4701_v48 = vpop.f32.mrf.mxu3  ;;  %v1611_v56 = vpack.c.b16 %v1592_v1, %v1591_v5  ;;  %v4033_v1 = vld [vmem:[#allocation3 + $0x40] sm:$0xff] }
 0x154   : > { %v4703_v16 = vpop.f32.mrf.mxu1  ;;  %v4705_v17 = vpop.f32.mrf.mxu0  ;;  %2879 = vmatpush.bf16.msrb.mxu2 %v4033_v1 }
 0x158   : > { %3228 = vmatpush.bf16.msra.mxu2 %v4072_v59 }
 0x15b   : > { %v4707_v28 = vpop.f32.mrf.mxu3 }
 0x15c   : > { %v4709_v31 = vpop.f32.mrf.mxu1  ;;  %v4711_v10 = vpop.f32.mrf.mxu0 }
 0x15f   : > { %2846 = vmatmul.bf16.gmra.mxu2 %v1418_v11  ;;  %3108 = vmatmul.bf16.gmra.mxu0 %v1418_v11 }
 0x160   : > { %3024 = vmatmul.bf16.gmra.mxu3 %v1610_v13  ;;  %3162 = vmatmul.bf16.gmra.mxu1 %v1794_v7 }
 0x163   : > { %v4716_v19 = vpop.f32.mrf.mxu3 }
 0x164   : > { %5483 = vst [vmem:[#allocation9_spill] sm:$0xff] %v4716_v19  ;;  %v4718_v32 = vpop.f32.mrf.mxu1  ;;  %v4720_v33 = vpop.f32.mrf.mxu0 }
 0x165   : > { %5484 = vst [vmem:[#allocation10_spill] sm:$0xff] %v4718_v32 }
 0x166   : > { %5485 = vst [vmem:[#allocation11_spill] sm:$0xff] %v4720_v33 }
 0x16b   : > { %v4722_v2 = vpop.f32.mrf.mxu3 }
 0x16c   : > { %5486 = vst [vmem:[#allocation12_spill] sm:$0xff] %v4722_v2  ;;  %v4724_v7 = vpop.f32.mrf.mxu1  ;;  %v4726_v53 = vpop.f32.mrf.mxu0 }
 0x16d   : > { %5487 = vst [vmem:[#allocation13_spill] sm:$0xff] %v4724_v7 }
 0x16e   : > { %5488 = vst [vmem:[#allocation14_spill] sm:$0xff] %v4726_v53 }
 0x16f   : > { %2851 = vmatmul.bf16.gmra.mxu2 %v1419_v55  ;;  %3113 = vmatmul.bf16.gmra.mxu0 %v1419_v55  ;;  %v4076_v55 = vld [vmem:[#allocation3 + $0x198] sm:$0xff] }
 0x170   : > { %3029 = vmatmul.bf16.gmra.mxu3 %v1611_v56  ;;  %3167 = vmatmul.bf16.gmra.mxu1 %v1795_v50  ;;  %v1402_v50 = vunpack.c.l.b16 %v825_v18  ;;  %v4088_v56 = vld [vmem:[#allocation3 + $0x1f8] sm:$0xff]  ;;  %v826_v18 = vpack.c.bf16 %v794_v20, %v794_v20 }
 0x171   : > { %3321 = vmatpush.bf16.msra.mxu3 %v4076_v55  ;;  %3406 = vmatpush.bf16.msra.mxu0 %v4088_v56  ;;  %v1613_v56 = vpack.c.b16 %v1596_v34, %v1595_v30  ;;  %v4084_v20 = vld [vmem:[#allocation3 + $0x1d8] sm:$0xff] }
 0x172   : > { %v1420_v42 = vpack.c.b16 %v1402_v50, %v1401_v47  ;;  %v1403_v47 = vunpack.c.l.b16 %v826_v18  ;;  %v1404_v50 = vunpack.c.l.b16 %v827_v25  ;;  %v925_v18 = vld [vmem:[#allocation2 + $0x172] sm:$0xff]  ;;  %v4083_v25 = vld [vmem:[#allocation3 + $0x1d0] sm:$0xff] }
 0x173   : > { %v4731_v60 = vpop.f32.mrf.mxu3 }
 0x174   : > { %5489 = vst [vmem:[#allocation15_spill] sm:$0xff] %v4731_v60  ;;  %v4733_v11 = vpop.f32.mrf.mxu1  ;;  %v4735_v13 = vpop.f32.mrf.mxu0  ;;  %v1421_v55 = vpack.c.b16 %v1404_v50, %v1403_v47  ;;  %v957_v50 = vpack.c.bf16 %v925_v18, %v925_v18  ;;  %v988_v18 = vld [vmem:[#allocation2 + $0x180] sm:$0xff] }
 0x175   : > { %5490 = vst [vmem:[#allocation16_spill] sm:$0xff] %v4733_v11  ;;  %3322 = vmatpush.bf16.msra.mxu3 %v4075_v8  ;;  %3407 = vmatpush.bf16.msra.mxu0 %v4087_v27  ;;  %v797_v8 = vld [vmem:[#allocation2 + $0x170] sm:$0xff] }
 0x176   : > { %5491 = vst [vmem:[#allocation17_spill] sm:$0xff] %v4735_v13  ;;  %v924_v27 = vld [vmem:[#allocation2 + $0x16a] sm:$0xff]  ;;  %v1598_v34 = vunpack.c.l.b16 %v957_v50 }
 0x177   : > { %v956_v47 = vpack.c.bf16 %v924_v27, %v924_v27  ;;  %v831_v27 = vld [vmem:[#allocation2 + $0x9] sm:$0xff] }
 0x179   : > { %3323 = vmatpush.bf16.msra.mxu3 %v4074_v35  ;;  %3408 = vmatpush.bf16.msra.mxu0 %v4086_v36  ;;  %v828_v35 = vpack.c.bf16 %v796_v61, %v796_v61  ;;  %v829_v36 = vpack.c.bf16 %v797_v8, %v797_v8  ;;  %v1597_v30 = vunpack.c.l.b16 %v956_v47  ;;  %v830_v8 = vld [vmem:[#allocation2 + $0x1] sm:$0xff]  ;;  %v863_v47 = vpack.c.bf16 %v831_v27, %v831_v27 }
 0x17b   : > { %v4737_v37 = vpop.f32.mrf.mxu3  ;;  %v1405_v24 = vunpack.c.l.b16 %v828_v35  ;;  %v1614_v59 = vpack.c.b16 %v1598_v34, %v1597_v30  ;;  %v1152_v35 = vld [vmem:[#allocation2 + $0x38] sm:$0xff] }
 0x17c   : > { %5492 = vst [vmem:[#allocation18_spill] sm:$0xff] %v4737_v37  ;;  %v4739_v41 = vpop.f32.mrf.mxu1  ;;  %v4741_v5 = vpop.f32.mrf.mxu0  ;;  %v1184_v30 = vpack.c.bf16 %v1152_v35, %v1152_v35  ;;  %v4071_v35 = vld [vmem:[#allocation3 + $0x170] sm:$0xff] }
 0x17d   : > { %5493 = vst [vmem:[#allocation19_spill] sm:$0xff] %v4739_v41  ;;  %3229 = vmatpush.bf16.msra.mxu2 %v4071_v35  ;;  %v4093_v41 = vld [vmem:[#allocation3 + $0x220] sm:$0xff] }
 0x17e   : > { %5494 = vst [vmem:[#allocation20_spill] sm:$0xff] %v4741_v5 }
 0x17f   : > { %2856 = vmatmul.bf16.gmra.mxu2 %v1420_v42  ;;  %3118 = vmatmul.bf16.gmra.mxu0 %v1420_v42  ;;  %v4073_v42 = vld [vmem:[#allocation3 + $0x180] sm:$0xff] }
 0x180   : > { %3034 = vmatmul.bf16.gmra.mxu3 %v1612_v43  ;;  %3172 = vmatmul.bf16.gmra.mxu1 %v1796_v39  ;;  %v4085_v43 = vld [vmem:[#allocation3 + $0x1e0] sm:$0xff] }
 0x181   : > { %3324 = vmatpush.bf16.msra.mxu3 %v4073_v42  ;;  %3409 = vmatpush.bf16.msra.mxu0 %v4085_v43  ;;  %v4096_v42 = vld [vmem:[#allocation3 + $0x238] sm:$0xff]  ;;  %v4081_v43 = vld [vmem:[#allocation3 + $0x1c0] sm:$0xff] }
 0x182   : > { %3495 = vmatpush.bf16.msra.mxu1 %v4096_v42 }
 0x183   : > { %v4746_v58 = vpop.f32.mrf.mxu3 }
 0x184   : > { %5495 = vst [vmem:[#allocation21_spill] sm:$0xff] %v4746_v58  ;;  %v4748_v15 = vpop.f32.mrf.mxu1  ;;  %v4750_v39 = vpop.f32.mrf.mxu0 }
 0x185   : > { %5496 = vst [vmem:[#allocation22_spill] sm:$0xff] %v4748_v15  ;;  %3410 = vmatpush.bf16.msra.mxu0 %v4084_v20 }
 0x186   : > { %5497 = vst [vmem:[#allocation23_spill] sm:$0xff] %v4750_v39 }
 0x189   : > { %3411 = vmatpush.bf16.msra.mxu0 %v4083_v25  ;;  %v989_v25 = vld [vmem:[#allocation2 + $0x188] sm:$0xff] }
 0x18b   : > { %v4752_v51 = vpop.f32.mrf.mxu3 }
 0x18c   : > { %5498 = vst [vmem:[#allocation24_spill] sm:$0xff] %v4752_v51  ;;  %v4754_v1 = vpop.f32.mrf.mxu1  ;;  %v4759_v62 = vpop.f32.mrf.mxu0 }
 0x18d   : > { %5499 = vst [vmem:[#allocation25_spill] sm:$0xff] %v4754_v1  ;;  %3412 = vmatpush.bf16.msra.mxu0 %v4082_v23  ;;  %v1020_v23 = vpack.c.bf16 %v988_v18, %v988_v18 }
 0x18e   : > { %5500 = vst [vmem:[#allocation26_spill] sm:$0xff] %v4759_v62 }
 0x18f   : > { %2861 = vmatmul.bf16.gmra.mxu2 %v1421_v55  ;;  %3123 = vmatmul.bf16.gmra.mxu0 %v1421_v55  ;;  %v1693_v3 = vunpack.c.l.b16 %v1020_v23  ;;  %v1154_v23 = vld [vmem:[#allocation2 + $0x50] sm:$0xff] }
 0x190   : > { %3039 = vmatmul.bf16.gmra.mxu3 %v1613_v56  ;;  %3177 = vmatmul.bf16.gmra.mxu1 %v1797_v29  ;;  %v1406_v29 = vunpack.c.l.b16 %v829_v36  ;;  %v862_v36 = vpack.c.bf16 %v830_v8, %v830_v8 }
 0x191   : > { %3413 = vmatpush.bf16.msra.mxu0 %v4081_v43  ;;  %v1472_v43 = vunpack.c.l.b16 %v863_v47  ;;  %v833_v47 = vld [vmem:[#allocation2 + $0x21] sm:$0xff] }
 0x192   : > { %v1422_v20 = vpack.c.b16 %v1406_v29, %v1405_v24  ;;  %v1021_v24 = vpack.c.bf16 %v989_v25, %v989_v25  ;;  %v1151_v29 = vld [vmem:[#allocation2 + $0x30] sm:$0xff]  ;;  %v1471_v42 = vunpack.c.l.b16 %v862_v36  ;;  %v5510_v25 = vpack.c.b16 %v4673_v45, %v4671_v57 }
 0x193   : > { %v4763_v46 = vpop.f32.mrf.mxu3 }
 0x194   : > { %v4761_v26 = vpop.f32.mrf.mxu1  ;;  %5502 = vst [vmem:[#allocation28_spill] sm:$0xff] %v4763_v46  ;;  %v4765_v55 = vpop.f32.mrf.mxu0  ;;  %v1694_v6 = vunpack.c.l.b16 %v1021_v24  ;;  %v1503_v49 = vpack.c.b16 %v1472_v43, %v1471_v42  ;;  %v865_v43 = vpack.c.bf16 %v833_v47, %v833_v47 }
 0x195   : > { %5501 = vst [vmem:[#allocation27_spill] sm:$0xff] %v4761_v26  ;;  %v4095_v26 = vld [vmem:[#allocation3 + $0x230] sm:$0xff] }
 0x196   : > { %5503 = vst [vmem:[#allocation29_spill] sm:$0xff] %v4765_v55  ;;  %v1710_v8 = vpack.c.b16 %v1694_v6, %v1693_v3  ;;  %v1215_v3 = vld [vmem:[#allocation2 + $0x31] sm:$0xff]  ;;  %3496 = vmatpush.bf16.msra.mxu1 %v4095_v26 }
 0x197   : > { %v1218_v26 = vld [vmem:[#allocation2 + $0x51] sm:$0xff] }
 0x19b   : > { %v4769_v61 = vpop.f32.mrf.mxu3 }
 0x19c   : > { %v4767_v56 = vpop.f32.mrf.mxu1  ;;  %5505 = vst [vmem:[#allocation31_spill] sm:$0xff] %v4769_v61  ;;  %v4776_v34 = vpop.f32.mrf.mxu0 }
 0x19d   : > { %5504 = vst [vmem:[#allocation30_spill] sm:$0xff] %v4767_v56 }
 0x19e   : > { %5507 = vst [vmem:[#allocation33_spill] sm:$0xff] %v4776_v34 }
 0x19f   : > { %2866 = vmatmul.bf16.gmra.mxu2 %v1422_v20  ;;  %3128 = vmatmul.bf16.gmra.mxu0 %v1422_v20  ;;  %v1183_v20 = vpack.c.bf16 %v1151_v29, %v1151_v29  ;;  %v1040_v29 = vld [vmem:[#allocation2 + $0xf1] sm:$0xff] }
 0x1a0   : > { %3044 = vmatmul.bf16.gmra.mxu3 %v1614_v59  ;;  %3182 = vmatmul.bf16.gmra.mxu1 %v1798_v9  ;;  %v1952_v59 = vunpack.c.l.b16 %v1184_v30  ;;  %v1041_v30 = vld [vmem:[#allocation2 + $0xf9] sm:$0xff]  ;;  %v1072_v57 = vpack.c.bf16 %v1040_v29, %v1040_v29 }
 0x1a1   : > { %v1951_v56 = vunpack.c.l.b16 %v1183_v20  ;;  %v1186_v20 = vpack.c.bf16 %v1154_v23, %v1154_v23  ;;  %v1073_v45 = vpack.c.bf16 %v1041_v30, %v1041_v30 }
 0x1a3   : > { %v4778_v9 = vpop.f32.mrf.mxu3  ;;  %v1954_v35 = vunpack.c.l.b16 %v1186_v20  ;;  %v1778_v61 = vunpack.c.l.b16 %v1073_v45  ;;  %v1043_v45 = vld [vmem:[#allocation2 + $0x111] sm:$0xff] }
 0x1a4   : > { %v4774_v50 = vpop.f32.mrf.mxu1  ;;  %5508 = vst [vmem:[#allocation34_spill] sm:$0xff] %v4778_v9  ;;  %v4782_v18 = vpop.f32.mrf.mxu0 }
 0x1a5   : > { %5506 = vst [vmem:[#allocation32_spill] sm:$0xff] %v4774_v50  ;;  %v1983_v50 = vpack.c.b16 %v1952_v59, %v1951_v56  ;;  %v1216_v56 = vld [vmem:[#allocation2 + $0x39] sm:$0xff] }
 0x1a6   : > { %5509 = vst [vmem:[#allocation35_spill] sm:$0xff] %v4782_v18  ;;  %v1248_v6 = vpack.c.bf16 %v1216_v56, %v1216_v56  ;;  %v1777_v18 = vunpack.c.l.b16 %v1072_v57  ;;  %v1042_v57 = vld [vmem:[#allocation2 + $0x109] sm:$0xff] }
 0x1a8   : > { %v2048_v34 = vunpack.c.l.b16 %v1248_v6 }
 0x1ab   : > { %v4789_v24 = vpop.f32.mrf.mxu3 }
 0x1ac   : > { %5512 = vst [vmem:[#allocation37_spill] sm:$0xff] %v4789_v24  ;;  %v4793_v9 = vpop.f32.mrf.mxu0 }
 0x1ad   : > { %v4780_v27 = vpop.f32.mrf.mxu1  ;;  %5513 = vst [vmem:[#allocation38_spill] sm:$0xff] %v4793_v9 }
 0x1af   : > { %2880 = vmatmul.bf16.vlgmr.msrb.gmra.mxu2 %v1503_v49  ;;  %3133 = vmatmul.bf16.gmra.mxu0 %v1710_v8  ;;  %v832_v49 = vld [vmem:[#allocation2 + $0x19] sm:$0xff] }
 0x1b0   : > { %3325 = vmatmul.bf16.vlgmr.msra.gmra.mxu3 %v1983_v50  ;;  %3187 = vmatmul.bf16.gmra.mxu1 %v5510_v25  ;;  %v1153_v50 = vld [vmem:[#allocation2 + $0x48] sm:$0xff]  ;;  %v864_v59 = vpack.c.bf16 %v832_v49, %v832_v49  ;;  %v1247_v25 = vpack.c.bf16 %v1215_v3, %v1215_v3 }
 0x1b1   : > { %v1185_v8 = vpack.c.bf16 %v1153_v50, %v1153_v50  ;;  %v4801_v50 = vpack.c.b16 %v1778_v61, %v1777_v18  ;;  %v1156_v3 = vld [vmem:[#allocation2 + $0x68] sm:$0xff]  ;;  %v1074_v18 = vpack.c.bf16 %v1042_v57, %v1042_v57 }
 0x1b2   : > { %v4787_v36 = vpop.f32.mrf.mxu2  ;;  %v1473_v46 = vunpack.c.l.b16 %v864_v59  ;;  %v2047_v23 = vunpack.c.l.b16 %v1247_v25  ;;  %v1155_v59 = vld [vmem:[#allocation2 + $0x60] sm:$0xff]  ;;  %v1217_v61 = vld [vmem:[#allocation2 + $0x49] sm:$0xff] }
 0x1b3   : > { %5511 = vst [vmem:[#allocation36_spill] sm:$0xff] %v4787_v36  ;;  %v1474_v36 = vunpack.c.l.b16 %v865_v43  ;;  %v1953_v47 = vunpack.c.l.b16 %v1185_v8  ;;  %v4797_v29 = vpop.f32.mrf.mxu3 }
 0x1b4   : > { %5515 = vst [vmem:[#allocation40_spill] sm:$0xff] %v4797_v29  ;;  %v2079_v43 = vpack.c.b16 %v2048_v34, %v2047_v23  ;;  %v4806_v6 = vpop.f32.mrf.mxu0  ;;  %v1075_v34 = vpack.c.bf16 %v1043_v45, %v1043_v45 }
 0x1b5   : > { %v4791_v42 = vpop.f32.mrf.mxu1  ;;  %v1504_v56 = vpack.c.b16 %v1474_v36, %v1473_v46  ;;  %v1984_v49 = vpack.c.b16 %v1954_v35, %v1953_v47  ;;  %5517 = vst [vmem:[#allocation42_spill] sm:$0xff] %v4806_v6  ;;  %v1188_v46 = vpack.c.bf16 %v1156_v3, %v1156_v3  ;;  %v1250_v36 = vpack.c.bf16 %v1218_v26, %v1218_v26  ;;  %v4070_v26 = vld [vmem:[#allocation3 + $0x168] sm:$0xff] }
 0x1b6   : > { %v1187_v35 = vpack.c.bf16 %v1155_v59, %v1155_v59  ;;  %v1249_v47 = vpack.c.bf16 %v1217_v61, %v1217_v61  ;;  %v1158_v61 = vld [vmem:[#allocation2 + $0x80] sm:$0xff]  ;;  %3230 = vmatpush.bf16.msra.mxu2 %v4070_v26 }
 0x1b7   : > { %v1956_v23 = vunpack.c.l.b16 %v1188_v46 }
 0x1b8   : > { %v1955_v29 = vunpack.c.l.b16 %v1187_v35  ;;  %v2049_v6 = vunpack.c.l.b16 %v1249_v47 }
 0x1ba   : > { %v4795_v24 = vpop.f32.mrf.mxu2  ;;  %v1985_v1 = vpack.c.b16 %v1956_v23, %v1955_v29  ;;  %v1220_v29 = vld [vmem:[#allocation2 + $0x69] sm:$0xff] }
 0x1bb   : > { %5514 = vst [vmem:[#allocation39_spill] sm:$0xff] %v4795_v24  ;;  %v4810_v25 = vpop.f32.mrf.mxu3  ;;  %v2050_v24 = vunpack.c.l.b16 %v1250_v36  ;;  %v1157_v36 = vld [vmem:[#allocation2 + $0x78] sm:$0xff] }
 0x1bc   : > { %5518 = vst [vmem:[#allocation43_spill] sm:$0xff] %v4810_v25  ;;  %v4816_v3 = vpop.f32.mrf.mxu0  ;;  %v1189_v47 = vpack.c.bf16 %v1157_v36, %v1157_v36 }
 0x1bd   : > { %v4799_v30 = vpop.f32.mrf.mxu1  ;;  %5520 = vst [vmem:[#allocation45_spill] sm:$0xff] %v4816_v3  ;;  %v2080_v45 = vpack.c.b16 %v2050_v24, %v2049_v6  ;;  %v1219_v24 = vld [vmem:[#allocation2 + $0x61] sm:$0xff]  ;;  %v1252_v6 = vpack.c.bf16 %v1220_v29, %v1220_v29  ;;  %v4094_v3 = vld [vmem:[#allocation3 + $0x228] sm:$0xff] }
 0x1be   : > { %v1957_v51 = vunpack.c.l.b16 %v1189_v47  ;;  %3497 = vmatpush.bf16.msra.mxu1 %v4094_v3  ;;  %v1159_v3 = vld [vmem:[#allocation2 + $0x90] sm:$0xff] }
 0x1bf   : > { %2885 = vmatmul.bf16.gmra.mxu2 %v1504_v56  ;;  %3414 = vmatmul.bf16.vlgmr.msra.gmra.mxu0 %v2079_v43  ;;  %v2052_v25 = vunpack.c.l.b16 %v1252_v6  ;;  %v1222_v6 = vld [vmem:[#allocation2 + $0x81] sm:$0xff] }
 0x1c0   : > { %3330 = vmatmul.bf16.gmra.mxu3 %v1984_v49  ;;  %3192 = vmatmul.bf16.gmra.mxu1 %v4801_v50  ;;  %v1779_v49 = vunpack.c.l.b16 %v1074_v18  ;;  %v1044_v18 = vld [vmem:[#allocation2 + $0x121] sm:$0xff] }
 0x1c2   : > { %v4804_v20 = vpop.f32.mrf.mxu2  ;;  %3498 = vmatpush.bf16.msra.mxu1 %v4093_v41  ;;  %v1050_v41 = vld [vmem:[#allocation2 + $0x169] sm:$0xff] }
 0x1c3   : > { %5516 = vst [vmem:[#allocation41_spill] sm:$0xff] %v4804_v20  ;;  %v1780_v20 = vunpack.c.l.b16 %v1075_v34  ;;  %v4821_v59 = vpop.f32.mrf.mxu3  ;;  %v1045_v34 = vld [vmem:[#allocation2 + $0x129] sm:$0xff] }
 0x1c4   : > { %5521 = vst [vmem:[#allocation46_spill] sm:$0xff] %v4821_v59  ;;  %v4827_v23 = vpop.f32.mrf.mxu0 }
 0x1c5   : > { %v4808_v8 = vpop.f32.mrf.mxu1  ;;  %v4818_v57 = vpack.c.b16 %v1780_v20, %v1779_v49  ;;  %v1190_v20 = vpack.c.bf16 %v1158_v61, %v1158_v61  ;;  %5524 = vst [vmem:[#allocation49_spill] sm:$0xff] %v4827_v23  ;;  %v1251_v49 = vpack.c.bf16 %v1219_v24, %v1219_v24  ;;  %v1160_v24 = vld [vmem:[#allocation2 + $0x98] sm:$0xff] }
 0x1c7   : > { %v2051_v62 = vunpack.c.l.b16 %v1251_v49  ;;  %v1191_v49 = vpack.c.bf16 %v1159_v3, %v1159_v3 }
 0x1c9   : > { %v2081_v29 = vpack.c.b16 %v2052_v25, %v2051_v62  ;;  %v1221_v62 = vld [vmem:[#allocation2 + $0x79] sm:$0xff]  ;;  %v1959_v23 = vunpack.c.l.b16 %v1191_v49 }
 0x1ca   : > { %v4812_v56 = vpop.f32.mrf.mxu2 }
 0x1cb   : > { %5519 = vst [vmem:[#allocation44_spill] sm:$0xff] %v4812_v56  ;;  %v1958_v56 = vunpack.c.l.b16 %v1190_v20  ;;  %v4831_v55 = vpop.f32.mrf.mxu3 }
 0x1cc   : > { %5526 = vst [vmem:[#allocation51_spill] sm:$0xff] %v4831_v55  ;;  %v4838_v36 = vpop.f32.mrf.mxu0 }
 0x1cd   : > { %v4814_v9 = vpop.f32.mrf.mxu1  ;;  %5528 = vst [vmem:[#allocation53_spill] sm:$0xff] %v4838_v36 }
 0x1cf   : > { %2890 = vmatmul.bf16.gmra.mxu2 %v2079_v43  ;;  %3419 = vmatmul.bf16.gmra.mxu0 %v2080_v45  ;;  %v1076_v43 = vpack.c.bf16 %v1044_v18, %v1044_v18  ;;  %v1986_v18 = vpack.c.b16 %v1958_v56, %v1957_v51  ;;  %v1192_v56 = vpack.c.bf16 %v1160_v24, %v1160_v24 }
 0x1d0   : > { %3335 = vmatmul.bf16.gmra.mxu3 %v1985_v1  ;;  %3197 = vmatmul.bf16.gmra.mxu1 %v4818_v57  ;;  %v1077_v1 = vpack.c.bf16 %v1045_v34, %v1045_v34 }
 0x1d2   : > { %v4823_v46 = vpop.f32.mrf.mxu2  ;;  %v1782_v26 = vunpack.c.l.b16 %v1077_v1  ;;  %v1047_v1 = vld [vmem:[#allocation2 + $0x141] sm:$0xff] }
 0x1d3   : > { %5522 = vst [vmem:[#allocation47_spill] sm:$0xff] %v4823_v46  ;;  %v1781_v46 = vunpack.c.l.b16 %v1076_v43  ;;  %v1046_v43 = vld [vmem:[#allocation2 + $0x139] sm:$0xff]  ;;  %v4842_v47 = vpop.f32.mrf.mxu3 }
 0x1d4   : > { %5530 = vst [vmem:[#allocation55_spill] sm:$0xff] %v4842_v47  ;;  %v1078_v25 = vpack.c.bf16 %v1046_v43, %v1046_v43  ;;  %v4848_v15 = vpop.f32.mrf.mxu0 }
 0x1d5   : > { %v4825_v35 = vpop.f32.mrf.mxu1  ;;  %v4835_v34 = vpack.c.b16 %v1782_v26, %v1781_v46  ;;  %v1254_v46 = vpack.c.bf16 %v1222_v6, %v1222_v6  ;;  %v1253_v26 = vpack.c.bf16 %v1221_v62, %v1221_v62  ;;  %5533 = vst [vmem:[#allocation58_spill] sm:$0xff] %v4848_v15  ;;  %v4069_v6 = vld [vmem:[#allocation3 + $0x160] sm:$0xff] }
 0x1d6   : > { %5523 = vst [vmem:[#allocation48_spill] sm:$0xff] %v4825_v35  ;;  %3231 = vmatpush.bf16.msra.mxu2 %v4069_v6  ;;  %v1048_v62 = vld [vmem:[#allocation2 + $0x151] sm:$0xff] }
 0x1d7   : > { %v2054_v36 = vunpack.c.l.b16 %v1254_v46  ;;  %v2053_v58 = vunpack.c.l.b16 %v1253_v26 }
 0x1d9   : > { %v2082_v43 = vpack.c.b16 %v2054_v36, %v2053_v58  ;;  %v1080_v58 = vpack.c.bf16 %v1048_v62, %v1048_v62 }
 0x1da   : > { %v4829_v59 = vpop.f32.mrf.mxu2 }
 0x1db   : > { %5525 = vst [vmem:[#allocation50_spill] sm:$0xff] %v4829_v59  ;;  %v1785_v6 = vunpack.c.l.b16 %v1080_v58  ;;  %v1164_v58 = vld [vmem:[#allocation2 + $0xc8] sm:$0xff] }
 0x1dd   : > { %v4833_v61 = vpop.f32.mrf.mxu1 }
 0x1de   : > { %5527 = vst [vmem:[#allocation52_spill] sm:$0xff] %v4833_v61 }
 0x1df   : > { %2895 = vmatmul.bf16.gmra.mxu2 %v2080_v45  ;;  %3424 = vmatmul.bf16.gmra.mxu0 %v2081_v29  ;;  %v1079_v45 = vpack.c.bf16 %v1047_v1, %v1047_v1  ;;  %v4854_v1 = vpop.f32.mrf.mxu3 }
 0x1e0   : > { %3340 = vmatmul.bf16.gmra.mxu3 %v1986_v18  ;;  %3202 = vmatmul.bf16.gmra.mxu1 %v4835_v34  ;;  %v1960_v18 = vunpack.c.l.b16 %v1192_v56  ;;  %5535 = vst [vmem:[#allocation60_spill] sm:$0xff] %v4854_v1  ;;  %v1162_v56 = vld [vmem:[#allocation2 + $0xb0] sm:$0xff] }
 0x1e1   : > { %v1784_v55 = vunpack.c.l.b16 %v1079_v45  ;;  %v1161_v45 = vld [vmem:[#allocation2 + $0xa8] sm:$0xff]  ;;  %v1194_v46 = vpack.c.bf16 %v1162_v56, %v1162_v56 }
 0x1e2   : > { %v4840_v20 = vpop.f32.mrf.mxu2  ;;  %v1987_v47 = vpack.c.b16 %v1960_v18, %v1959_v23  ;;  %v1224_v23 = vld [vmem:[#allocation2 + $0x99] sm:$0xff] }
 0x1e3   : > { %5529 = vst [vmem:[#allocation54_spill] sm:$0xff] %v4840_v20  ;;  %v1783_v20 = vunpack.c.l.b16 %v1078_v25  ;;  %v1049_v25 = vld [vmem:[#allocation2 + $0x159] sm:$0xff] }
 0x1e4   : > { %v1081_v36 = vpack.c.bf16 %v1049_v25, %v1049_v25 }
 0x1e5   : > { %v4844_v51 = vpop.f32.mrf.mxu1  ;;  %v4852_v24 = vpack.c.b16 %v1784_v55, %v1783_v20  ;;  %v1223_v55 = vld [vmem:[#allocation2 + $0x91] sm:$0xff]  ;;  %v4859_v20 = vpop.f32.mrf.mxu0 }
 0x1e6   : > { %5531 = vst [vmem:[#allocation56_spill] sm:$0xff] %v4844_v51  ;;  %v1255_v26 = vpack.c.bf16 %v1223_v55, %v1223_v55  ;;  %v1786_v1 = vunpack.c.l.b16 %v1081_v36 }
 0x1e7   : > { %5537 = vst [vmem:[#allocation62_spill] sm:$0xff] %v4859_v20  ;;  %v4863_v18 = vpop.f32.mrf.mxu3 }
 0x1e8   : > { %5539 = vst [vmem:[#allocation64_spill] sm:$0xff] %v4863_v18  ;;  %v4867_v62 = vpack.c.b16 %v1786_v1, %v1785_v6  ;;  %v1051_v1 = vld [vmem:[#allocation2 + $0x171] sm:$0xff] }
 0x1ea   : > { %v4846_v59 = vpop.f32.mrf.mxu2 }
 0x1eb   : > { %5532 = vst [vmem:[#allocation57_spill] sm:$0xff] %v4846_v59 }
 0x1ed   : > { %v4850_v39 = vpop.f32.mrf.mxu1 }
 0x1ee   : > { %5534 = vst [vmem:[#allocation59_spill] sm:$0xff] %v4850_v39  ;;  %v2055_v39 = vunpack.c.l.b16 %v1255_v26 }
 0x1ef   : > { %2900 = vmatmul.bf16.gmra.mxu2 %v2081_v29  ;;  %3429 = vmatmul.bf16.gmra.mxu0 %v2082_v43  ;;  %v1256_v29 = vpack.c.bf16 %v1224_v23, %v1224_v23  ;;  %v4869_v23 = vpop.f32.mrf.mxu0  ;;  %v4876_v36 = vpop.f32.mrf.mxu3 }
 0x1f0   : > { %3345 = vmatmul.bf16.gmra.mxu3 %v1987_v47  ;;  %3207 = vmatmul.bf16.gmra.mxu1 %v4852_v24  ;;  %v1193_v47 = vpack.c.bf16 %v1161_v45, %v1161_v45  ;;  %5541 = vst [vmem:[#allocation66_spill] sm:$0xff] %v4869_v23  ;;  %v4092_v45 = vld [vmem:[#allocation3 + $0x218] sm:$0xff] }
 0x1f1   : > { %v2056_v15 = vunpack.c.l.b16 %v1256_v29  ;;  %3499 = vmatpush.bf16.msra.mxu1 %v4092_v45  ;;  %5544 = vst [vmem:[#allocation69_spill] sm:$0xff] %v4876_v36  ;;  %v1082_v29 = vpack.c.bf16 %v1050_v41, %v1050_v41 }
 0x1f2   : > { %v4857_v3 = vpop.f32.mrf.mxu2  ;;  %v1961_v56 = vunpack.c.l.b16 %v1193_v47  ;;  %v1083_v47 = vpack.c.bf16 %v1051_v1, %v1051_v1 }
 0x1f3   : > { %5536 = vst [vmem:[#allocation61_spill] sm:$0xff] %v4857_v3  ;;  %v1962_v3 = vunpack.c.l.b16 %v1194_v46  ;;  %v2083_v25 = vpack.c.b16 %v2056_v15, %v2055_v39  ;;  %v1163_v15 = vld [vmem:[#allocation2 + $0xc0] sm:$0xff]  ;;  %v1196_v39 = vpack.c.bf16 %v1164_v58, %v1164_v58  ;;  %v1787_v36 = vunpack.c.l.b16 %v1082_v29  ;;  %v1053_v29 = vld [vmem:[#allocation2 + $0x189] sm:$0xff] }
 0x1f4   : > { %v1195_v6 = vpack.c.bf16 %v1163_v15, %v1163_v15  ;;  %v1788_v23 = vunpack.c.l.b16 %v1083_v47 }
 0x1f5   : > { %v4861_v49 = vpop.f32.mrf.mxu1  ;;  %v1988_v20 = vpack.c.b16 %v1962_v3, %v1961_v56  ;;  %v1226_v3 = vld [vmem:[#allocation2 + $0xb1] sm:$0xff]  ;;  %v1964_v18 = vunpack.c.l.b16 %v1196_v39  ;;  %v4068_v39 = vld [vmem:[#allocation3 + $0x158] sm:$0xff] }
 0x1f6   : > { %5538 = vst [vmem:[#allocation63_spill] sm:$0xff] %v4861_v49  ;;  %v1258_v26 = vpack.c.bf16 %v1226_v3, %v1226_v3  ;;  %v4090_v56 = vld [vmem:[#allocation3 + $0x208] sm:$0xff]  ;;  %v1963_v49 = vunpack.c.l.b16 %v1195_v6  ;;  %v4089_v3 = vld [vmem:[#allocation3 + $0x200] sm:$0xff]  ;;  %v4886_v15 = vpack.c.b16 %v1788_v23, %v1787_v36  ;;  %3232 = vmatpush.bf16.msra.mxu2 %v4068_v39 }
 0x1f7   : > { %v4884_v41 = vpop.f32.mrf.mxu3  ;;  %v1165_v23 = vld [vmem:[#allocation2 + $0xd8] sm:$0xff] }
 0x1f8   : > { %5548 = vst [vmem:[#allocation73_spill] sm:$0xff] %v4884_v41  ;;  %v1989_v1 = vpack.c.b16 %v1964_v18, %v1963_v49  ;;  %v1085_v18 = vpack.c.bf16 %v1053_v29, %v1053_v29 }
 0x1fa   : > { %v4865_v59 = vpop.f32.mrf.mxu2 }
 0x1fb   : > { %5540 = vst [vmem:[#allocation65_spill] sm:$0xff] %v4865_v59 }
 0x1fd   : > { %v4872_v46 = vpop.f32.mrf.mxu1 }
 0x1fe   : > { %5542 = vst [vmem:[#allocation67_spill] sm:$0xff] %v4872_v46  ;;  %v2058_v46 = vunpack.c.l.b16 %v1258_v26  ;;  %v1228_v26 = vld [vmem:[#allocation2 + $0xc9] sm:$0xff] }
 0x1ff   : > { %2905 = vmatmul.bf16.gmra.mxu2 %v2082_v43  ;;  %3434 = vmatmul.bf16.gmra.mxu0 %v2083_v25  ;;  %v1225_v43 = vld [vmem:[#allocation2 + $0xa9] sm:$0xff]  ;;  %v1260_v36 = vpack.c.bf16 %v1228_v26, %v1228_v26 }
 0x200   : > { %3350 = vmatmul.bf16.gmra.mxu3 %v1988_v20  ;;  %3212 = vmatmul.bf16.gmra.mxu1 %v4867_v62  ;;  %v4091_v20 = vld [vmem:[#allocation3 + $0x210] sm:$0xff]  ;;  %v1257_v59 = vpack.c.bf16 %v1225_v43, %v1225_v43 }
 0x201   : > { %3500 = vmatpush.bf16.msra.mxu1 %v4091_v20  ;;  %v1052_v20 = vld [vmem:[#allocation2 + $0x181] sm:$0xff] }
 0x202   : > { %v4874_v55 = vpop.f32.mrf.mxu2  ;;  %v2057_v37 = vunpack.c.l.b16 %v1257_v59  ;;  %v1166_v59 = vld [vmem:[#allocation2 + $0xe0] sm:$0xff]  ;;  %v1084_v49 = vpack.c.bf16 %v1052_v20, %v1052_v20 }
 0x203   : > { %5543 = vst [vmem:[#allocation68_spill] sm:$0xff] %v4874_v55  ;;  %v4878_v55 = vpop.f32.mrf.mxu0 }
 0x204   : > { %5545 = vst [vmem:[#allocation70_spill] sm:$0xff] %v4878_v55  ;;  %v2084_v43 = vpack.c.b16 %v2058_v46, %v2057_v37  ;;  %v1198_v37 = vpack.c.bf16 %v1166_v59, %v1166_v59  ;;  %v2060_v55 = vunpack.c.l.b16 %v1260_v36  ;;  %v1280_v36 = vld [vmem:[#allocation2 + $0x3a] sm:$0xff] }
 0x205   : > { %3501 = vmatpush.bf16.msra.mxu1 %v4090_v56  ;;  %v4882_v58 = vpop.f32.mrf.mxu1  ;;  %v4895_v56 = vpop.f32.mrf.mxu3 }
 0x206   : > { %5547 = vst [vmem:[#allocation72_spill] sm:$0xff] %v4882_v58  ;;  %v1966_v41 = vunpack.c.l.b16 %v1198_v37  ;;  %v1168_v37 = vld [vmem:[#allocation2 + $0xf8] sm:$0xff] }
 0x207   : > { %5552 = vst [vmem:[#allocation77_spill] sm:$0xff] %v4895_v56 }
 0x209   : > { %3502 = vmatpush.bf16.msra.mxu1 %v4089_v3  ;;  %v1790_v3 = vunpack.c.l.b16 %v1085_v18 }
 0x20a   : > { %v4880_v45 = vpop.f32.mrf.mxu2 }
 0x20b   : > { %5546 = vst [vmem:[#allocation71_spill] sm:$0xff] %v4880_v45  ;;  %v4891_v6 = vpop.f32.mrf.mxu0  ;;  %v1789_v45 = vunpack.c.l.b16 %v1084_v49 }
 0x20c   : > { %5550 = vst [vmem:[#allocation75_spill] sm:$0xff] %v4891_v6 }
 0x20d   : > { %v4893_v46 = vpop.f32.mrf.mxu1  ;;  %v4899_v6 = vpack.c.b16 %v1790_v3, %v1789_v45  ;;  %v4906_v49 = vpop.f32.mrf.mxu3  ;;  %v1230_v45 = vld [vmem:[#allocation2 + $0xe1] sm:$0xff]  ;;  %v1312_v3 = vpack.c.bf16 %v1280_v36, %v1280_v36 }
 0x20e   : > { %5551 = vst [vmem:[#allocation76_spill] sm:$0xff] %v4893_v46 }
 0x20f   : > { %2910 = vmatmul.bf16.gmra.mxu2 %v2083_v25  ;;  %3439 = vmatmul.bf16.gmra.mxu0 %v2084_v43  ;;  %v1227_v25 = vld [vmem:[#allocation2 + $0xc1] sm:$0xff]  ;;  %5556 = vst [vmem:[#allocation81_spill] sm:$0xff] %v4906_v49 }
 0x210   : > { %3355 = vmatmul.bf16.gmra.mxu3 %v1989_v1  ;;  %3217 = vmatmul.bf16.gmra.mxu1 %v4886_v15  ;;  %v1197_v1 = vpack.c.bf16 %v1165_v23, %v1165_v23  ;;  %v1259_v39 = vpack.c.bf16 %v1227_v25, %v1227_v25  ;;  %v1167_v23 = vld [vmem:[#allocation2 + $0xf0] sm:$0xff] }
 0x211   : > { %v1279_v25 = vld [vmem:[#allocation2 + $0x32] sm:$0xff] }
 0x212   : > { %v4889_v47 = vpop.f32.mrf.mxu2  ;;  %v1965_v58 = vunpack.c.l.b16 %v1197_v1  ;;  %v2059_v20 = vunpack.c.l.b16 %v1259_v39  ;;  %v1229_v1 = vld [vmem:[#allocation2 + $0xd9] sm:$0xff] }
 0x213   : > { %5549 = vst [vmem:[#allocation74_spill] sm:$0xff] %v4889_v47  ;;  %v4901_v59 = vpop.f32.mrf.mxu0 }
 0x214   : > { %v1990_v29 = vpack.c.b16 %v1966_v41, %v1965_v58  ;;  %5554 = vst [vmem:[#allocation79_spill] sm:$0xff] %v4901_v59  ;;  %v2085_v5 = vpack.c.b16 %v2060_v55, %v2059_v20  ;;  %v1199_v58 = vpack.c.bf16 %v1167_v23, %v1167_v23  ;;  %v1200_v41 = vpack.c.bf16 %v1168_v37, %v1168_v37 }
 0x215   : > { %v4903_v26 = vpop.f32.mrf.mxu1  ;;  %v1262_v55 = vpack.c.bf16 %v1230_v45, %v1230_v45  ;;  %v1261_v20 = vpack.c.bf16 %v1229_v1, %v1229_v1  ;;  %v4916_v46 = vpop.f32.mrf.mxu3  ;;  %v1170_v1 = vld [vmem:[#allocation2 + $0x110] sm:$0xff] }
 0x216   : > { %5555 = vst [vmem:[#allocation80_spill] sm:$0xff] %v4903_v26  ;;  %v2144_v26 = vunpack.c.l.b16 %v1312_v3 }
 0x217   : > { %5561 = vst [vmem:[#allocation86_spill] sm:$0xff] %v4916_v46  ;;  %v2061_v23 = vunpack.c.l.b16 %v1261_v20 }
 0x21a   : > { %v4897_v47 = vpop.f32.mrf.mxu2 }
 0x21b   : > { %5553 = vst [vmem:[#allocation78_spill] sm:$0xff] %v4897_v47  ;;  %v4910_v39 = vpop.f32.mrf.mxu0  ;;  %v1968_v47 = vunpack.c.l.b16 %v1200_v41  ;;  %v1169_v41 = vld [vmem:[#allocation2 + $0x108] sm:$0xff] }
 0x21c   : > { %5558 = vst [vmem:[#allocation83_spill] sm:$0xff] %v4910_v39 }
 0x21d   : > { %v4912_v56 = vpop.f32.mrf.mxu1 }
 0x21e   : > { %5559 = vst [vmem:[#allocation84_spill] sm:$0xff] %v4912_v56 }
 0x21f   : > { %2915 = vmatmul.bf16.gmra.mxu2 %v2084_v43  ;;  %3444 = vmatmul.bf16.gmra.mxu0 %v2085_v5  ;;  %v1311_v43 = vpack.c.bf16 %v1279_v25, %v1279_v25  ;;  %v4067_v25 = vld [vmem:[#allocation3 + $0x150] sm:$0xff] }
 0x220   : > { %3360 = vmatmul.bf16.gmra.mxu3 %v1990_v29  ;;  %3222 = vmatmul.bf16.gmra.mxu1 %v4899_v6  ;;  %v1967_v29 = vunpack.c.l.b16 %v1199_v58 }
 0x221   : > { %v2143_v59 = vunpack.c.l.b16 %v1311_v43  ;;  %3233 = vmatpush.bf16.msra.mxu2 %v4067_v25  ;;  %v1282_v43 = vld [vmem:[#allocation2 + $0x52] sm:$0xff] }
 0x222   : > { %v4908_v18 = vpop.f32.mrf.mxu2  ;;  %v1991_v37 = vpack.c.b16 %v1968_v47, %v1967_v29  ;;  %v4927_v47 = vpop.f32.mrf.mxu3 }
 0x223   : > { %5557 = vst [vmem:[#allocation82_spill] sm:$0xff] %v4908_v18  ;;  %v2062_v18 = vunpack.c.l.b16 %v1262_v55  ;;  %v4918_v45 = vpack.c.b16 %v2144_v26, %v2143_v59  ;;  %v4921_v36 = vpop.f32.mrf.mxu0  ;;  %v1281_v55 = vld [vmem:[#allocation2 + $0x4a] sm:$0xff]  ;;  %v1201_v59 = vpack.c.bf16 %v1169_v41, %v1169_v41 }
 0x224   : > { %5562 = vst [vmem:[#allocation87_spill] sm:$0xff] %v4921_v36  ;;  %v1313_v26 = vpack.c.bf16 %v1281_v55, %v1281_v55  ;;  %v1172_v55 = vld [vmem:[#allocation2 + $0x128] sm:$0xff] }
 0x225   : > { %v2086_v11 = vpack.c.b16 %v2062_v18, %v2061_v23  ;;  %v4925_v3 = vpop.f32.mrf.mxu1  ;;  %5564 = vst [vmem:[#allocation89_spill] sm:$0xff] %v4927_v47  ;;  %v1314_v18 = vpack.c.bf16 %v1282_v43, %v1282_v43  ;;  %v1969_v20 = vunpack.c.l.b16 %v1201_v59  ;;  %v1283_v43 = vld [vmem:[#allocation2 + $0x62] sm:$0xff]  ;;  %v1284_v59 = vld [vmem:[#allocation2 + $0x6a] sm:$0xff] }
 0x226   : > { %5563 = vst [vmem:[#allocation88_spill] sm:$0xff] %v4925_v3 }
 0x227   : > { %v2146_v25 = vunpack.c.l.b16 %v1314_v18 }
 0x22a   : > { %v4914_v49 = vpop.f32.mrf.mxu2  ;;  %v4937_v3 = vpop.f32.mrf.mxu3 }
 0x22b   : > { %5560 = vst [vmem:[#allocation85_spill] sm:$0xff] %v4914_v49  ;;  %v4931_v49 = vpop.f32.mrf.mxu0 }
 0x22c   : > { %5565 = vst [vmem:[#allocation90_spill] sm:$0xff] %v4931_v49 }
 0x22d   : > { %v4933_v36 = vpop.f32.mrf.mxu1  ;;  %5567 = vst [vmem:[#allocation92_spill] sm:$0xff] %v4937_v3 }
 0x22e   : > { %5566 = vst [vmem:[#allocation91_spill] sm:$0xff] %v4933_v36 }
 0x22f   : > { %2920 = vmatmul.bf16.gmra.mxu2 %v2085_v5  ;;  %3449 = vmatmul.bf16.gmra.mxu0 %v2086_v11  ;;  %v1202_v5 = vpack.c.bf16 %v1170_v1, %v1170_v1  ;;  %v1171_v1 = vld [vmem:[#allocation2 + $0x120] sm:$0xff] }
 0x230   : > { %3365 = vmatmul.bf16.gmra.mxu3 %v1991_v37  ;;  %3503 = vmatmul.bf16.vlgmr.msra.gmra.mxu1 %v4918_v45  ;;  %v2145_v37 = vunpack.c.l.b16 %v1313_v26  ;;  %v1204_v26 = vpack.c.bf16 %v1172_v55, %v1172_v55 }
 0x231   : > { %v1970_v29 = vunpack.c.l.b16 %v1202_v5  ;;  %v1203_v5 = vpack.c.bf16 %v1171_v1, %v1171_v1  ;;  %v4066_v1 = vld [vmem:[#allocation3 + $0x148] sm:$0xff] }
 0x232   : > { %v4923_v58 = vpop.f32.mrf.mxu2  ;;  %v4935_v39 = vpack.c.b16 %v2146_v25, %v2145_v37  ;;  %v1972_v25 = vunpack.c.l.b16 %v1204_v26  ;;  %3234 = vmatpush.bf16.msra.mxu2 %v4066_v1  ;;  %v1174_v26 = vld [vmem:[#allocation2 + $0x140] sm:$0xff] }
 0x233   : > { %v1992_v46 = vpack.c.b16 %v1970_v29, %v1969_v20  ;;  %v4943_v18 = vpop.f32.mrf.mxu0  ;;  %v1315_v20 = vpack.c.bf16 %v1283_v43, %v1283_v43  ;;  %v1316_v29 = vpack.c.bf16 %v1284_v59, %v1284_v59 }
 0x234   : > { %5568 = vst [vmem:[#allocation93_spill] sm:$0xff] %v4943_v18 }
 0x235   : > { %v4945_v37 = vpop.f32.mrf.mxu1  ;;  %v2147_v47 = vunpack.c.l.b16 %v1315_v20  ;;  %v2148_v49 = vunpack.c.l.b16 %v1316_v29 }
 0x236   : > { %5569 = vst [vmem:[#allocation94_spill] sm:$0xff] %v4945_v37 }
 0x237   : > { %v4951_v56 = vpack.c.b16 %v2148_v49, %v2147_v47  ;;  %v1285_v49 = vld [vmem:[#allocation2 + $0x7a] sm:$0xff]  ;;  %v1286_v47 = vld [vmem:[#allocation2 + $0x82] sm:$0xff] }
 0x238   : > { %v1317_v29 = vpack.c.bf16 %v1285_v49, %v1285_v49  ;;  %v1176_v49 = vld [vmem:[#allocation2 + $0x158] sm:$0xff] }
 0x23a   : > { %v4929_v23 = vpop.f32.mrf.mxu2  ;;  %v2149_v1 = vunpack.c.l.b16 %v1317_v29 }
 0x23b   : > { %v4954_v55 = vpop.f32.mrf.mxu0 }
 0x23c   : > { %5571 = vst [vmem:[#allocation96_spill] sm:$0xff] %v4954_v55 }
 0x23d   : > { %v4958_v43 = vpop.f32.mrf.mxu1 }
 0x23e   : > { %5572 = vst [vmem:[#allocation97_spill] sm:$0xff] %v4958_v43 }
 0x23f   : > { %2925 = vmatmul.bf16.gmra.mxu2 %v2086_v11  ;;  %3454 = vmatmul.bf16.gmra.mxu0 %v4801_v50  ;;  %v4947_v11 = vpop.f32.mrf.mxu3 }
 0x240   : > { %3370 = vmatmul.bf16.gmra.mxu3 %v1992_v46  ;;  %3508 = vmatmul.bf16.gmra.mxu1 %v4935_v39  ;;  %5570 = vst [vmem:[#allocation95_spill] sm:$0xff] %v4947_v11  ;;  %v1971_v46 = vunpack.c.l.b16 %v1203_v5  ;;  %v1173_v5 = vld [vmem:[#allocation2 + $0x138] sm:$0xff] }
 0x242   : > { %v4941_v41 = vpop.f32.mrf.mxu2  ;;  %v1993_v36 = vpack.c.b16 %v1972_v25, %v1971_v46  ;;  %v1318_v46 = vpack.c.bf16 %v1286_v47, %v1286_v47  ;;  %v1287_v47 = vld [vmem:[#allocation2 + $0x92] sm:$0xff] }
 0x243   : > { %v4964_v55 = vpop.f32.mrf.mxu0 }
 0x244   : > { %5574 = vst [vmem:[#allocation99_spill] sm:$0xff] %v4964_v55  ;;  %v2150_v43 = vunpack.c.l.b16 %v1318_v46  ;;  %v1208_v46 = vpack.c.bf16 %v1176_v49, %v1176_v49 }
 0x245   : > { %v4968_v37 = vpop.f32.mrf.mxu1 }
 0x246   : > { %5575 = vst [vmem:[#allocation100_spill] sm:$0xff] %v4968_v37 }
 0x247   : > { %v4962_v20 = vpop.f32.mrf.mxu3 }
 0x248   : > { %5573 = vst [vmem:[#allocation98_spill] sm:$0xff] %v4962_v20  ;;  %v4972_v20 = vpack.c.b16 %v2150_v43, %v2149_v1  ;;  %v1319_v43 = vpack.c.bf16 %v1287_v47, %v1287_v47  ;;  %v1976_v1 = vunpack.c.l.b16 %v1208_v46  ;;  %v1178_v46 = vld [vmem:[#allocation2 + $0x170] sm:$0xff] }
 0x24a   : > { %v4949_v3 = vpop.f32.mrf.mxu2  ;;  %v2151_v37 = vunpack.c.l.b16 %v1319_v43  ;;  %v1289_v43 = vld [vmem:[#allocation2 + $0xaa] sm:$0xff] }
 0x24f   : > { %2930 = vmatmul.bf16.gmra.mxu2 %v4801_v50  ;;  %3459 = vmatmul.bf16.gmra.mxu0 %v4818_v57  ;;  %v1205_v50 = vpack.c.bf16 %v1173_v5, %v1173_v5  ;;  %v4970_v51 = vpop.f32.mrf.mxu3 }
 0x250   : > { %3375 = vmatmul.bf16.gmra.mxu3 %v1993_v36  ;;  %3513 = vmatmul.bf16.gmra.mxu1 %v4951_v56  ;;  %v1206_v36 = vpack.c.bf16 %v1174_v26, %v1174_v26  ;;  %v1175_v26 = vld [vmem:[#allocation2 + $0x150] sm:$0xff] }
 0x251   : > { %v1973_v25 = vunpack.c.l.b16 %v1205_v50  ;;  %v1288_v50 = vld [vmem:[#allocation2 + $0x9a] sm:$0xff]  ;;  %v1207_v29 = vpack.c.bf16 %v1175_v26, %v1175_v26  ;;  %v4065_v26 = vld [vmem:[#allocation3 + $0x140] sm:$0xff] }
 0x252   : > { %v4960_v59 = vpop.f32.mrf.mxu2  ;;  %v1974_v11 = vunpack.c.l.b16 %v1206_v36  ;;  %v4979_v36 = vpop.f32.mrf.mxu0  ;;  %3235 = vmatpush.bf16.msra.mxu2 %v4065_v26 }
 0x253   : > { %5577 = vst [vmem:[#allocation102_spill] sm:$0xff] %v4979_v36 }
 0x254   : > { %v1994_v60 = vpack.c.b16 %v1974_v11, %v1973_v25  ;;  %v4981_v11 = vpop.f32.mrf.mxu1  ;;  %v1320_v25 = vpack.c.bf16 %v1288_v50, %v1288_v50 }
 0x255   : > { %5578 = vst [vmem:[#allocation103_spill] sm:$0xff] %v4981_v11 }
 0x256   : > { %v2152_v13 = vunpack.c.l.b16 %v1320_v25  ;;  %v1210_v25 = vpack.c.bf16 %v1178_v46, %v1178_v46 }
 0x258   : > { %v4989_v2 = vpack.c.b16 %v2152_v13, %v2151_v37  ;;  %v1290_v13 = vld [vmem:[#allocation2 + $0xb2] sm:$0xff]  ;;  %v1978_v36 = vunpack.c.l.b16 %v1210_v25  ;;  %v1292_v25 = vld [vmem:[#allocation2 + $0xca] sm:$0xff] }
 0x25a   : > { %v4966_v18 = vpop.f32.mrf.mxu2  ;;  %v4987_v61 = vpop.f32.mrf.mxu0 }
 0x25c   : > { %v4992_v49 = vpop.f32.mrf.mxu1 }
 0x25d   : > { %5580 = vst [vmem:[#allocation105_spill] sm:$0xff] %v4992_v49 }
 0x25f   : > { %2935 = vmatmul.bf16.gmra.mxu2 %v4818_v57  ;;  %3464 = vmatmul.bf16.gmra.mxu0 %v4835_v34  ;;  %v4983_v57 = vpop.f32.mrf.mxu3 }
 0x260   : > { %3380 = vmatmul.bf16.gmra.mxu3 %v1994_v60  ;;  %3518 = vmatmul.bf16.gmra.mxu1 %v4972_v20  ;;  %v1975_v60 = vunpack.c.l.b16 %v1207_v29  ;;  %v1177_v29 = vld [vmem:[#allocation2 + $0x168] sm:$0xff] }
 0x261   : > { %v1209_v37 = vpack.c.bf16 %v1177_v29, %v1177_v29 }
 0x262   : > { %v4977_v5 = vpop.f32.mrf.mxu2  ;;  %v1995_v7 = vpack.c.b16 %v1976_v1, %v1975_v60  ;;  %v5000_v60 = vpop.f32.mrf.mxu0 }
 0x263   : > { %5576 = vst [vmem:[#allocation101_spill] sm:$0xff] %v4977_v5  ;;  %v1977_v1 = vunpack.c.l.b16 %v1209_v37  ;;  %v1291_v37 = vld [vmem:[#allocation2 + $0xc2] sm:$0xff] }
 0x264   : > { %v5002_v49 = vpop.f32.mrf.mxu1 }
 0x265   : > { %5582 = vst [vmem:[#allocation107_spill] sm:$0xff] %v5002_v49 }
 0x267   : > { %v4996_v47 = vpop.f32.mrf.mxu3 }
 0x26a   : > { %v4985_v55 = vpop.f32.mrf.mxu2  ;;  %v5013_v29 = vpop.f32.mrf.mxu0 }
 0x26b   : > { %5579 = vst [vmem:[#allocation104_spill] sm:$0xff] %v4985_v55 }
 0x26f   : > { %2940 = vmatmul.bf16.gmra.mxu2 %v4835_v34  ;;  %3469 = vmatmul.bf16.gmra.mxu0 %v4852_v24  ;;  %v1321_v34 = vpack.c.bf16 %v1289_v43, %v1289_v43  ;;  %v5006_v55 = vpop.f32.mrf.mxu3  ;;  %v1179_v43 = vld [vmem:[#allocation2 + $0x180] sm:$0xff] }
 0x270   : > { %3385 = vmatmul.bf16.gmra.mxu3 %v1995_v7  ;;  %3523 = vmatmul.bf16.gmra.mxu1 %v4989_v2  ;;  %v1322_v7 = vpack.c.bf16 %v1290_v13, %v1290_v13  ;;  %v1180_v13 = vld [vmem:[#allocation2 + $0x188] sm:$0xff] }
 0x271   : > { %v2153_v53 = vunpack.c.l.b16 %v1321_v34  ;;  %v5017_v34 = vpop.f32.mrf.mxu1 }
 0x272   : > { %v4998_v50 = vpop.f32.mrf.mxu2  ;;  %v2154_v26 = vunpack.c.l.b16 %v1322_v7  ;;  %5585 = vst [vmem:[#allocation110_spill] sm:$0xff] %v5017_v34  ;;  %v1212_v7 = vpack.c.bf16 %v1180_v13, %v1180_v13  ;;  %v5023_v19 = vpop.f32.mrf.mxu0  ;;  %v1293_v13 = vld [vmem:[#allocation2 + $0xda] sm:$0xff] }
 0x273   : > { %5581 = vst [vmem:[#allocation106_spill] sm:$0xff] %v4998_v50  ;;  %v1996_v50 = vpack.c.b16 %v1978_v36, %v1977_v1 }
 0x274   : > { %v5008_v32 = vpack.c.b16 %v2154_v26, %v2153_v53  ;;  %v1211_v53 = vpack.c.bf16 %v1179_v43, %v1179_v43  ;;  %v1980_v26 = vunpack.c.l.b16 %v1212_v7 }
 0x276   : > { %v1979_v1 = vunpack.c.l.b16 %v1211_v53  ;;  %v1325_v53 = vpack.c.bf16 %v1293_v13, %v1293_v13  ;;  %v1086_v13 = vld [vmem:[#allocation2 + $0x1a] sm:$0xff] }
 0x277   : > { %v5019_v36 = vpop.f32.mrf.mxu3 }
 0x279   : > { %v5025_v33 = vpop.f32.mrf.mxu1 }
 0x27a   : > { %v5004_v11 = vpop.f32.mrf.mxu2  ;;  %5587 = vst [vmem:[#allocation112_spill] sm:$0xff] %v5025_v33  ;;  %v1296_v33 = vld [vmem:[#allocation2 + $0xfa] sm:$0xff] }
 0x27b   : > { %5583 = vst [vmem:[#allocation108_spill] sm:$0xff] %v5004_v11 }
 0x27f   : > { %2945 = vmatmul.bf16.gmra.mxu2 %v4852_v24  ;;  %3474 = vmatmul.bf16.gmra.mxu0 %v4867_v62  ;;  %v1323_v24 = vpack.c.bf16 %v1291_v37, %v1291_v37  ;;  %v5029_v34 = vpop.f32.mrf.mxu3  ;;  %v1294_v37 = vld [vmem:[#allocation2 + $0xe2] sm:$0xff] }
 0x280   : > { %3390 = vmatmul.bf16.gmra.mxu3 %v1996_v50  ;;  %3528 = vmatmul.bf16.gmra.mxu1 %v5008_v32  ;;  %v1324_v50 = vpack.c.bf16 %v1292_v25, %v1292_v25  ;;  %5588 = vst [vmem:[#allocation113_spill] sm:$0xff] %v5029_v34  ;;  %v5036_v25 = vpop.f32.mrf.mxu0  ;;  %v1326_v7 = vpack.c.bf16 %v1294_v37, %v1294_v37  ;;  %v1087_v37 = vld [vmem:[#allocation2 + $0x22] sm:$0xff] }
 0x281   : > { %v2155_v11 = vunpack.c.l.b16 %v1323_v24  ;;  %v5038_v24 = vpop.f32.mrf.mxu1 }
 0x282   : > { %v5015_v46 = vpop.f32.mrf.mxu2  ;;  %v2156_v35 = vunpack.c.l.b16 %v1324_v50  ;;  %5590 = vst [vmem:[#allocation115_spill] sm:$0xff] %v5038_v24  ;;  %v2158_v50 = vunpack.c.l.b16 %v1326_v7  ;;  %v1295_v24 = vld [vmem:[#allocation2 + $0xf2] sm:$0xff]  ;;  %v1119_v7 = vpack.c.bf16 %v1087_v37, %v1087_v37 }
 0x283   : > { %5584 = vst [vmem:[#allocation109_spill] sm:$0xff] %v5015_v46  ;;  %v1997_v46 = vpack.c.b16 %v1980_v26, %v1979_v1  ;;  %v1298_v37 = vld [vmem:[#allocation2 + $0x112] sm:$0xff] }
 0x284   : > { %v5027_v5 = vpack.c.b16 %v2156_v35, %v2155_v11  ;;  %v2157_v11 = vunpack.c.l.b16 %v1325_v53  ;;  %v1118_v53 = vpack.c.bf16 %v1086_v13, %v1086_v13  ;;  %v1297_v13 = vld [vmem:[#allocation2 + $0x10a] sm:$0xff] }
 0x289   : > { %v5049_v1 = vpop.f32.mrf.mxu1 }
 0x28a   : > { %v5021_v49 = vpop.f32.mrf.mxu2  ;;  %5593 = vst [vmem:[#allocation118_spill] sm:$0xff] %v5049_v1 }
 0x28b   : > { %5586 = vst [vmem:[#allocation111_spill] sm:$0xff] %v5021_v49 }
 0x28f   : > { %2950 = vmatmul.bf16.gmra.mxu2 %v4867_v62  ;;  %3479 = vmatmul.bf16.gmra.mxu0 %v4886_v15  ;;  %v5042_v62 = vpack.c.b16 %v2158_v50, %v2157_v11  ;;  %v1327_v11 = vpack.c.bf16 %v1295_v24, %v1295_v24  ;;  %v1328_v50 = vpack.c.bf16 %v1296_v33, %v1296_v33 }
 0x290   : > { %3395 = vmatmul.bf16.gmra.mxu3 %v1997_v46  ;;  %3533 = vmatmul.bf16.gmra.mxu1 %v5027_v5  ;;  %v5045_v46 = vpop.f32.mrf.mxu0  ;;  %v1329_v33 = vpack.c.bf16 %v1297_v13, %v1297_v13 }
 0x291   : > { %5592 = vst [vmem:[#allocation117_spill] sm:$0xff] %v5045_v46  ;;  %v2159_v49 = vunpack.c.l.b16 %v1327_v11  ;;  %v5055_v46 = vpop.f32.mrf.mxu1 }
 0x292   : > { %v5034_v43 = vpop.f32.mrf.mxu2  ;;  %5596 = vst [vmem:[#allocation121_spill] sm:$0xff] %v5055_v46  ;;  %v2161_v11 = vunpack.c.l.b16 %v1329_v33 }
 0x293   : > { %5589 = vst [vmem:[#allocation114_spill] sm:$0xff] %v5034_v43 }
 0x299   : > { %v5062_v24 = vpop.f32.mrf.mxu1 }
 0x29a   : > { %v5040_v35 = vpop.f32.mrf.mxu2  ;;  %5598 = vst [vmem:[#allocation123_spill] sm:$0xff] %v5062_v24 }
 0x29b   : > { %5591 = vst [vmem:[#allocation116_spill] sm:$0xff] %v5040_v35  ;;  %v1855_v35 = vunpack.c.l.b16 %v1118_v53  ;;  %v1330_v53 = vpack.c.bf16 %v1298_v37, %v1298_v37 }
 0x29f   : > { %2955 = vmatmul.bf16.gmra.mxu2 %v4886_v15  ;;  %3484 = vmatmul.bf16.gmra.mxu0 %v4899_v6  ;;  %v1856_v15 = vunpack.c.l.b16 %v1119_v7  ;;  %v2160_v6 = vunpack.c.l.b16 %v1328_v50  ;;  %v2162_v50 = vunpack.c.l.b16 %v1330_v53 }
 0x2a0   : > { %3538 = vmatmul.bf16.gmra.mxu1 %v5042_v62 }
 0x2a1   : > { %v1887_v34 = vpack.c.b16 %v1856_v15, %v1855_v35  ;;  %v5057_v1 = vpack.c.b16 %v2160_v6, %v2159_v49  ;;  %v5069_v49 = vpop.f32.mrf.mxu1  ;;  %v1299_v35 = vld [vmem:[#allocation2 + $0x122] sm:$0xff]  ;;  %v1300_v15 = vld [vmem:[#allocation2 + $0x12a] sm:$0xff] }
 0x2a2   : > { %v5051_v26 = vpop.f32.mrf.mxu2  ;;  %5600 = vst [vmem:[#allocation125_spill] sm:$0xff] %v5069_v49  ;;  %v1331_v6 = vpack.c.bf16 %v1299_v35, %v1299_v35  ;;  %v1332_v24 = vpack.c.bf16 %v1300_v15, %v1300_v15  ;;  %v1302_v49 = vld [vmem:[#allocation2 + $0x142] sm:$0xff] }
 0x2a3   : > { %5594 = vst [vmem:[#allocation119_spill] sm:$0xff] %v5051_v26  ;;  %v1334_v15 = vpack.c.bf16 %v1302_v49, %v1302_v49 }
 0x2a4   : > { %v2163_v33 = vunpack.c.l.b16 %v1331_v6  ;;  %v2164_v53 = vunpack.c.l.b16 %v1332_v24 }
 0x2a9   : > { %v5074_v13 = vpop.f32.mrf.mxu1 }
 0x2aa   : > { %v5053_v43 = vpop.f32.mrf.mxu2  ;;  %5602 = vst [vmem:[#allocation127_spill] sm:$0xff] %v5074_v13 }
 0x2ab   : > { %5595 = vst [vmem:[#allocation120_spill] sm:$0xff] %v5053_v43  ;;  %v5066_v43 = vpack.c.b16 %v2162_v50, %v2161_v11  ;;  %v5078_v11 = vpack.c.b16 %v2164_v53, %v2163_v33  ;;  %v1301_v50 = vld [vmem:[#allocation2 + $0x13a] sm:$0xff]  ;;  %v1303_v33 = vld [vmem:[#allocation2 + $0x152] sm:$0xff] }
 0x2ac   : > { %v1333_v35 = vpack.c.bf16 %v1301_v50, %v1301_v50  ;;  %v1304_v53 = vld [vmem:[#allocation2 + $0x15a] sm:$0xff] }
 0x2ae   : > { %v2165_v13 = vunpack.c.l.b16 %v1333_v35 }
 0x2af   : > { %3236 = vmatmul.bf16.vlgmr.msra.gmra.mxu2 %v1887_v34 }
 0x2b0   : > { %3543 = vmatmul.bf16.gmra.mxu1 %v5057_v1 }
 0x2b1   : > { %v5084_v46 = vpop.f32.mrf.mxu1 }
 0x2b2   : > { %v5060_v26 = vpop.f32.mrf.mxu2  ;;  %5605 = vst [vmem:[#allocation130_spill] sm:$0xff] %v5084_v46  ;;  %v1336_v46 = vpack.c.bf16 %v1304_v53, %v1304_v53 }
 0x2b3   : > { %5597 = vst [vmem:[#allocation122_spill] sm:$0xff] %v5060_v26 }
 0x2b9   : > { %v5088_v6 = vpop.f32.mrf.mxu1 }
 0x2ba   : > { %v5064_v7 = vpop.f32.mrf.mxu2 }
 0x2bb   : > { %5599 = vst [vmem:[#allocation124_spill] sm:$0xff] %v5064_v7 }
 0x2bf   : > { %3241 = vmatmul.bf16.gmra.mxu2 %v4918_v45 }
 0x2c0   : > { %3548 = vmatmul.bf16.gmra.mxu1 %v5066_v43 }
 0x2c1   : > { %v5096_v50 = vpop.f32.mrf.mxu1 }
 0x2c2   : > { %v5072_v34 = vpop.f32.mrf.mxu2 }
 0x2c3   : > { %5601 = vst [vmem:[#allocation126_spill] sm:$0xff] %v5072_v34 }
 0x2ca   : > { %v5076_v37 = vpop.f32.mrf.mxu2 }
 0x2cb   : > { %5603 = vst [vmem:[#allocation128_spill] sm:$0xff] %v5076_v37  ;;  %v2166_v37 = vunpack.c.l.b16 %v1334_v15  ;;  %v2168_v15 = vunpack.c.l.b16 %v1336_v46 }
 0x2cd   : > { %v5090_v24 = vpack.c.b16 %v2166_v37, %v2165_v13  ;;  %v1305_v37 = vld [vmem:[#allocation2 + $0x16a] sm:$0xff] }
 0x2cf   : > { %3246 = vmatmul.bf16.gmra.mxu2 %v4935_v39 }
 0x2d0   : > { %3553 = vmatmul.bf16.gmra.mxu1 %v5078_v11 }
 0x2d2   : > { %v5082_v45 = vpop.f32.mrf.mxu2 }
 0x2d3   : > { %5604 = vst [vmem:[#allocation129_spill] sm:$0xff] %v5082_v45  ;;  %v1335_v45 = vpack.c.bf16 %v1303_v33, %v1303_v33  ;;  %v1337_v33 = vpack.c.bf16 %v1305_v37, %v1305_v37 }
 0x2d5   : > { %v2167_v35 = vunpack.c.l.b16 %v1335_v45  ;;  %v2169_v26 = vunpack.c.l.b16 %v1337_v33 }
 0x2da   : > { %v5086_v34 = vpop.f32.mrf.mxu2 }
 0x2db   : > { %5606 = vst [vmem:[#allocation131_spill] sm:$0xff] %v5086_v34  ;;  %v5100_v34 = vpack.c.b16 %v2168_v15, %v2167_v35  ;;  %v1307_v35 = vld [vmem:[#allocation2 + $0x182] sm:$0xff]  ;;  %v1308_v15 = vld [vmem:[#allocation2 + $0x18a] sm:$0xff] }
 0x2dc   : > { %v1339_v37 = vpack.c.bf16 %v1307_v35, %v1307_v35 }
 0x2dd   : > { %5609 = vst [vmem:[#allocation134_spill] sm:$0xff] %v5100_v34 }
 0x2de   : > { %v2171_v33 = vunpack.c.l.b16 %v1339_v37 }
 0x2df   : > { %3251 = vmatmul.bf16.gmra.mxu2 %v4951_v56  ;;  %v5104_v56 = vpop.f32.mrf.mxu1 }
 0x2e0   : > { %3558 = vmatmul.bf16.gmra.mxu1 %v5090_v24 }
 0x2e2   : > { %v5094_v39 = vpop.f32.mrf.mxu2 }
 0x2e3   : > { %5607 = vst [vmem:[#allocation132_spill] sm:$0xff] %v5094_v39  ;;  %v1306_v39 = vld [vmem:[#allocation2 + $0x172] sm:$0xff] }
 0x2e4   : > { %v1338_v53 = vpack.c.bf16 %v1306_v39, %v1306_v39  ;;  %v1340_v39 = vpack.c.bf16 %v1308_v15, %v1308_v15  ;;  %v2882_v15 = vadd.f32 %v4923_v58, %v4660_v12  ;;  %v2887_v12 = vadd.f32 %v4941_v41, %v4679_v63 }
 0x2e6   : > { %v2971_v37 = vadd.f32 %v4664_v40, %v2882_v15 }
 0x2e7   : > { %v5110_v45 = vpop.f32.mrf.mxu1 }
 0x2ea   : > { %v5098_v49 = vpop.f32.mrf.mxu2 }
 0x2eb   : > { %5608 = vst [vmem:[#allocation133_spill] sm:$0xff] %v5098_v49  ;;  %v2170_v49 = vunpack.c.l.b16 %v1338_v53  ;;  %v2172_v53 = vunpack.c.l.b16 %v1340_v39 }
 0x2ed   : > { %v5112_v46 = vpack.c.b16 %v2170_v49, %v2169_v26 }
 0x2ef   : > { %3256 = vmatmul.bf16.gmra.mxu2 %v4972_v20 }
 0x2f0   : > { %3563 = vmatmul.bf16.gmra.mxu1 %v5100_v34 }
 0x2f2   : > { %v5106_v13 = vpop.f32.mrf.mxu2 }
 0x2f3   : > { %5610 = vst [vmem:[#allocation135_spill] sm:$0xff] %v5106_v13  ;;  %v5118_v13 = vpop.f32.mrf.mxu1 }
 0x2fa   : > { %v5108_v7 = vpop.f32.mrf.mxu2 }
 0x2fb   : > { %5611 = vst [vmem:[#allocation136_spill] sm:$0xff] %v5108_v7  ;;  %v5122_v7 = vpack.c.b16 %v2172_v53, %v2171_v33  ;;  %v3060_v33 = vadd.f32 %v4681_v0, %v2971_v37  ;;  %v5155_v0 = vpop.f32.mrf.mxu0 }
 0x2ff   : > { %3261 = vmatmul.bf16.gmra.mxu2 %v4989_v2  ;;  %v5125_v2 = vpop.f32.mrf.mxu1 }
 0x300   : > { %3568 = vmatmul.bf16.gmra.mxu1 %v5112_v46 }
 0x302   : > { %v5116_v20 = vpop.f32.mrf.mxu2 }
 0x307   : > { %v5158_v58 = vpop.f32.mrf.mxu1 }
 0x30a   : > { %v5120_v34 = vpop.f32.mrf.mxu2 }
 0x30f   : > { %3266 = vmatmul.bf16.gmra.mxu2 %v5008_v32  ;;  %v2884_v32 = vadd.f32 %v4929_v23, %v4669_v44 }
 0x310   : > { %3573 = vmatmul.bf16.gmra.mxu1 %v5122_v7 }
 0x311   : > { %v2973_v53 = vadd.f32 %v4677_v54, %v2884_v32 }
 0x312   : > { %v5128_v26 = vpop.f32.mrf.mxu2 }
 0x313   : > { %5612 = vst [vmem:[#allocation137_spill] sm:$0xff] %v5128_v26  ;;  %v5147_v26 = vpop.f32.mrf.mxu3  ;;  %v3062_v44 = vadd.f32 %v4690_v22, %v2973_v53  ;;  %v2889_v22 = vadd.f32 %v4949_v3, %v4688_v21  ;;  %v5179_v21 = vpop.f32.mrf.mxu1 }
 0x31a   : > { %v5130_v49 = vpop.f32.mrf.mxu2 }
 0x31b   : > { %5613 = vst [vmem:[#allocation138_spill] sm:$0xff] %v5130_v49  ;;  %v5170_v41 = vpop.f32.mrf.mxu3 }
 0x31f   : > { %3271 = vmatmul.bf16.gmra.mxu2 %v5027_v5  ;;  %v3149_v5 = vadd.f32 %v4780_v27, %v3060_v33  ;;  %v2976_v27 = vadd.f32 %v4686_v14, %v2887_v12 }
 0x322   : > { %v5133_v35 = vpop.f32.mrf.mxu2 }
 0x323   : > { %5614 = vst [vmem:[#allocation139_spill] sm:$0xff] %v5133_v35 }
 0x32a   : > { %v5138_v39 = vpop.f32.mrf.mxu2 }
 0x32f   : > { %3276 = vmatmul.bf16.gmra.mxu2 %v5042_v62  ;;  %v3151_v62 = vadd.f32 %v4791_v42, %v3062_v44  ;;  %v5174_v42 = vpop.f32.mrf.mxu0 }
 0x332   : > { %v3237_v35 = vpop.f32.mrf.mxu2 }
 0x333   : > { %v3238_v49 = vadd.f32 %v3237_v35, %v3149_v5 }
 0x335   : > { %v3327_v40 = vadd.f32 %v4970_v51, %v3238_v49  ;;  %v3065_v51 = vadd.f32 %v4696_v38, %v2976_v27 }
 0x337   : > { %v3416_v54 = vadd.f32 %v4987_v61, %v3327_v40  ;;  %v3154_v15 = vadd.f32 %v4799_v30, %v3065_v51  ;;  %v5192_v33 = vpop.f32.mrf.mxu0  ;;  %v5621_v51 = vld [vmem:[#allocation113_spill] sm:$0xff] }
 0x339   : > { %v3505_v23 = vadd.f32 %v5088_v6, %v3416_v54  ;;  %v2978_v6 = vadd.f32 %v4692_v52, %v2889_v22  ;;  %v5187_v52 = vpop.f32.mrf.mxu3  ;;  %v5617_v54 = vld [vmem:[#allocation9_spill] sm:$0xff] }
 0x33a   : > { %v3239_v35 = vpop.f32.mrf.mxu2 }
 0x33b   : > { %3584 = vst [vmem:[%s5163_s23] sm:$0xff] %v3505_v23  ;;  %v3240_v63 = vadd.f32 %v3239_v35, %v3151_v62  ;;  %v5618_v23 = vld [vmem:[#allocation48_spill] sm:$0xff] }
 0x33d   : > { %v3329_v61 = vadd.f32 %v4983_v57, %v3240_v63  ;;  %v2892_v57 = vadd.f32 %v4960_v59, %v4694_v4  ;;  %v5195_v59 = vpop.f32.mrf.mxu1 }
 0x33f   : > { %v3418_v14 = vadd.f32 %v5000_v60, %v3329_v61  ;;  %3281 = vmatmul.bf16.gmra.mxu2 %v5057_v1  ;;  %v3067_v1 = vadd.f32 %v4705_v17, %v2978_v6  ;;  %v2894_v17 = vadd.f32 %v4966_v18, %v4703_v16  ;;  %v5209_v18 = vpop.f32.mrf.mxu0  ;;  %v5622_v6 = vld [vmem:[#allocation14_spill] sm:$0xff] }
 0x341   : > { %v3507_v49 = vadd.f32 %v5096_v50, %v3418_v14  ;;  %v2981_v50 = vadd.f32 %v4701_v48, %v2892_v57  ;;  %v3156_v32 = vadd.f32 %v4808_v8, %v3067_v1  ;;  %v2983_v8 = vadd.f32 %v4707_v28, %v2894_v17  ;;  %v5206_v12 = vpop.f32.mrf.mxu3  ;;  %v5625_v1 = vld [vmem:[#allocation52_spill] sm:$0xff] }
 0x342   : > { %v3242_v3 = vpop.f32.mrf.mxu2 }
 0x343   : > { %3585 = vst [vmem:[%s5163_s23 + $0x8] sm:$0xff] %v3507_v49  ;;  %v3243_v38 = vadd.f32 %v3242_v3, %v3154_v15  ;;  %v5623_v15 = vld [vmem:[#allocation117_spill] sm:$0xff] }
 0x345   : > { %v3332_v60 = vadd.f32 %v4996_v47, %v3243_v38  ;;  %v5215_v28 = vpop.f32.mrf.mxu1  ;;  %v5624_v38 = vld [vmem:[#allocation12_spill] sm:$0xff] }
 0x347   : > { %v3421_v37 = vadd.f32 %v5013_v29, %v3332_v60  ;;  %v3070_v29 = vadd.f32 %v4711_v10, %v2981_v50  ;;  %v5615_v10 = vld [vmem:[#allocation101_spill] sm:$0xff] }
 0x349   : > { %v3510_v30 = vadd.f32 %v5104_v56, %v3421_v37  ;;  %v3159_v5 = vadd.f32 %v4814_v9, %v3070_v29  ;;  %v5222_v22 = vpop.f32.mrf.mxu3 }
 0x34a   : > { %v3244_v53 = vpop.f32.mrf.mxu2 }
 0x34b   : > { %3586 = vst [vmem:[%s5163_s23 + $0x10] sm:$0xff] %v3510_v30  ;;  %v3245_v4 = vadd.f32 %v3244_v53, %v3156_v32  ;;  %v5626_v32 = vld [vmem:[#allocation13_spill] sm:$0xff]  ;;  %v5627_v53 = vld [vmem:[#allocation106_spill] sm:$0xff] }
 0x34d   : > { %v3334_v47 = vadd.f32 %v5006_v55, %v3245_v4  ;;  %v2897_v55 = vadd.f32 %v5615_v10, %v4709_v31  ;;  %v5619_v31 = vld [vmem:[#allocation10_spill] sm:$0xff]  ;;  %v2902_v4 = vadd.f32 %v5627_v53, %v5626_v32 }
 0x34e   : > { %v5641_v53 = vld [vmem:[#allocation22_spill] sm:$0xff] }
 0x34f   : > { %v3423_v48 = vadd.f32 %v5023_v19, %v3334_v47  ;;  %3286 = vmatmul.bf16.gmra.mxu2 %v5066_v43  ;;  %v5616_v43 = vld [vmem:[#allocation11_spill] sm:$0xff]  ;;  %v2986_v9 = vadd.f32 %v5617_v54, %v2897_v55  ;;  %v5628_v47 = vld [vmem:[#allocation17_spill] sm:$0xff] }
 0x350   : > { %v3072_v44 = vadd.f32 %v5616_v43, %v2983_v8  ;;  %v5632_v43 = vld [vmem:[#allocation108_spill] sm:$0xff] }
 0x351   : > { %v3512_v56 = vadd.f32 %v5110_v45, %v3423_v48  ;;  %v3075_v49 = vadd.f32 %v5622_v6, %v2986_v9  ;;  %v5638_v6 = vld [vmem:[#allocation23_spill] sm:$0xff] }
 0x352   : > { %v3247_v40 = vpop.f32.mrf.mxu2  ;;  %v3161_v62 = vadd.f32 %v5618_v23, %v3072_v44 }
 0x353   : > { %3587 = vst [vmem:[%s5163_s23 + $0x18] sm:$0xff] %v3512_v56  ;;  %v3248_v16 = vadd.f32 %v3247_v40, %v3159_v5  ;;  %v3164_v37 = vadd.f32 %v5625_v1, %v3075_v49  ;;  %v5630_v40 = vld [vmem:[#allocation56_spill] sm:$0xff] }
 0x355   : > { %v3337_v19 = vadd.f32 %v5019_v36, %v3248_v16  ;;  %v5620_v36 = vld [vmem:[#allocation104_spill] sm:$0xff] }
 0x356   : > { %v2899_v61 = vadd.f32 %v5620_v36, %v5619_v31 }
 0x357   : > { %v3426_v45 = vadd.f32 %v5036_v25, %v3337_v19  ;;  %v5228_v25 = vpop.f32.mrf.mxu0  ;;  %v5631_v19 = vld [vmem:[#allocation16_spill] sm:$0xff] }
 0x358   : > { %v2988_v57 = vadd.f32 %v5624_v38, %v2899_v61  ;;  %v2904_v44 = vadd.f32 %v5632_v43, %v5631_v19 }
 0x359   : > { %v3515_v27 = vadd.f32 %v5118_v13, %v3426_v45  ;;  %v5232_v13 = vpop.f32.mrf.mxu1 }
 0x35a   : > { %v3249_v35 = vpop.f32.mrf.mxu2  ;;  %v3077_v29 = vadd.f32 %v5628_v47, %v2988_v57  ;;  %v5640_v57 = vld [vmem:[#allocation63_spill] sm:$0xff]  ;;  %v5643_v47 = vld [vmem:[#allocation26_spill] sm:$0xff] }
 0x35b   : > { %3588 = vst [vmem:[%s5163_s23 + $0x20] sm:$0xff] %v3515_v27  ;;  %v3250_v63 = vadd.f32 %v3249_v35, %v3161_v62  ;;  %v5634_v27 = vld [vmem:[#allocation18_spill] sm:$0xff]  ;;  %v5635_v35 = vld [vmem:[#allocation59_spill] sm:$0xff] }
 0x35c   : > { %v3166_v16 = vadd.f32 %v5630_v40, %v3077_v29  ;;  %v2993_v23 = vadd.f32 %v5634_v27, %v2904_v44  ;;  %v5645_v40 = vld [vmem:[#allocation24_spill] sm:$0xff]  ;;  %v1245_v44 = vld [vmem:[#allocation2 + $0x199] sm:$0xff] }
 0x35d   : > { %v3339_v14 = vadd.f32 %v5621_v51, %v3250_v63  ;;  %v5636_v51 = vld [vmem:[#allocation19_spill] sm:$0xff] }
 0x35e   : > { %v3082_v49 = vadd.f32 %v5638_v6, %v2993_v23  ;;  %v5648_v23 = vld [vmem:[#allocation25_spill] sm:$0xff] }
 0x35f   : > { %v3428_v3 = vadd.f32 %v5623_v15, %v3339_v14  ;;  %3291 = vmatmul.bf16.gmra.mxu2 %v5078_v11  ;;  %v5242_v11 = vpop.f32.mrf.mxu3  ;;  %v5245_v8 = vpop.f32.mrf.mxu0 }
 0x361   : > { %v3517_v60 = vadd.f32 %v5125_v2, %v3428_v3  ;;  %v5629_v2 = vld [vmem:[#allocation15_spill] sm:$0xff]  ;;  %v5250_v10 = vpop.f32.mrf.mxu1 }
 0x362   : > { %v3252_v50 = vpop.f32.mrf.mxu2  ;;  %v2991_v56 = vadd.f32 %v5629_v2, %v2902_v4 }
 0x363   : > { %3589 = vst [vmem:[%s5163_s23 + $0x28] sm:$0xff] %v3517_v60  ;;  %v3253_v30 = vadd.f32 %v3252_v50, %v3164_v37  ;;  %v3171_v60 = vadd.f32 %v5640_v57, %v3082_v49 }
 0x365   : > { %v3342_v17 = vadd.f32 %v5147_v26, %v3253_v30  ;;  %v4166_v30 = vld [vmem:[#allocation2] sm:$0xff] }
 0x366   : > { %v1213_v32 = vpack.c.bf16 %v4166_v30, %v4166_v30 }
 0x367   : > { %v3431_v48 = vadd.f32 %v5155_v0, %v3342_v17  ;;  %v5633_v0 = vld [vmem:[#allocation20_spill] sm:$0xff]  ;;  %v5264_v31 = vpop.f32.mrf.mxu0 }
 0x368   : > { %v3080_v54 = vadd.f32 %v5633_v0, %v2991_v56  ;;  %v5644_v56 = vld [vmem:[#allocation134_spill] sm:$0xff] }
 0x369   : > { %v3520_v5 = vadd.f32 %v5158_v58, %v3431_v48  ;;  %v5259_v58 = vpop.f32.mrf.mxu3  ;;  %v5267_v61 = vpop.f32.mrf.mxu1 }
 0x36a   : > { %v3254_v55 = vpop.f32.mrf.mxu2  ;;  %v3169_v63 = vadd.f32 %v5635_v35, %v3080_v54  ;;  %v5647_v54 = vld [vmem:[#allocation29_spill] sm:$0xff] }
 0x36b   : > { %3590 = vst [vmem:[%s5163_s23 + $0x30] sm:$0xff] %v3520_v5  ;;  %v3255_v26 = vadd.f32 %v3254_v55, %v3166_v16 }
 0x36d   : > { %v3344_v45 = vadd.f32 %v5170_v41, %v3255_v26  ;;  %v5646_v26 = vld [vmem:[#allocation67_spill] sm:$0xff] }
 0x36f   : > { %v3433_v9 = vadd.f32 %v5174_v42, %v3344_v45  ;;  %3296 = vmatmul.bf16.gmra.mxu2 %v5090_v24  ;;  %v5637_v42 = vld [vmem:[#allocation109_spill] sm:$0xff]  ;;  %v5282_v17 = vpop.f32.mrf.mxu0  ;;  %v1246_v45 = vld [vmem:[#allocation2 + $0x1a1] sm:$0xff] }
 0x370   : > { %v2907_v14 = vadd.f32 %v5637_v42, %v5636_v51  ;;  %v1278_v27 = vpack.c.bf16 %v1246_v45, %v1246_v45  ;;  %v1309_v51 = vld [vmem:[#allocation2 + $0x19a] sm:$0xff]  ;;  %v1310_v42 = vld [vmem:[#allocation2 + $0x1a2] sm:$0xff] }
 0x371   : > { %v3522_v62 = vadd.f32 %v5179_v21, %v3433_v9  ;;  %v5639_v21 = vld [vmem:[#allocation21_spill] sm:$0xff]  ;;  %v5277_v1 = vpop.f32.mrf.mxu3  ;;  %v5286_v48 = vpop.f32.mrf.mxu1  ;;  %v1342_v6 = vpack.c.bf16 %v1310_v42, %v1310_v42 }
 0x372   : > { %v3257_v36 = vpop.f32.mrf.mxu2  ;;  %v2996_v3 = vadd.f32 %v5639_v21, %v2907_v14 }
 0x373   : > { %3591 = vst [vmem:[%s5163_s23 + $0x38] sm:$0xff] %v3522_v62  ;;  %v3258_v41 = vadd.f32 %v3257_v36, %v3169_v63  ;;  %v5649_v62 = vld [vmem:[#allocation114_spill] sm:$0xff] }
 0x374   : > { %v3085_v29 = vadd.f32 %v5643_v47, %v2996_v3  ;;  %v2912_v35 = vadd.f32 %v5649_v62, %v5648_v23 }
 0x375   : > { %v3347_v24 = vadd.f32 %v5187_v52, %v3258_v41  ;;  %v5642_v52 = vld [vmem:[#allocation111_spill] sm:$0xff]  ;;  %v2078_v41 = vunpack.c.l.b16 %v1278_v27  ;;  %v5661_v27 = vld [vmem:[#allocation80_spill] sm:$0xff] }
 0x376   : > { %v2909_v4 = vadd.f32 %v5642_v52, %v5641_v53  ;;  %v3174_v19 = vadd.f32 %v5646_v26, %v3085_v29  ;;  %v5652_v53 = vld [vmem:[#allocation27_spill] sm:$0xff] }
 0x377   : > { %v3436_v15 = vadd.f32 %v5192_v33, %v3347_v24  ;;  %v1341_v24 = vpack.c.bf16 %v1309_v51, %v1309_v51  ;;  %v5663_v51 = vld [vmem:[#allocation120_spill] sm:$0xff] }
 0x378   : > { %v2998_v16 = vadd.f32 %v5645_v40, %v2909_v4  ;;  %v5656_v40 = vld [vmem:[#allocation76_spill] sm:$0xff] }
 0x379   : > { %v3525_v38 = vadd.f32 %v5195_v59, %v3436_v15  ;;  %v1981_v59 = vunpack.c.l.b16 %v1213_v32  ;;  %v5294_v0 = vpop.f32.mrf.mxu3  ;;  %v3539_v49 = vpop.f32.mrf.mxu1  ;;  %v5650_v15 = vld [vmem:[#allocation72_spill] sm:$0xff] }
 0x37a   : > { %v3259_v37 = vpop.f32.mrf.mxu2  ;;  %v3087_v9 = vadd.f32 %v5647_v54, %v2998_v16 }
 0x37b   : > { %3592 = vst [vmem:[%s5163_s23 + $0x40] sm:$0xff] %v3525_v38  ;;  %v3260_v50 = vadd.f32 %v3259_v37, %v3171_v60  ;;  %v1998_v5 = vpack.c.b16 %v1981_v59, %v1981_v59  ;;  %v5651_v38 = vld [vmem:[#allocation28_spill] sm:$0xff]  ;;  %v2174_v37 = vunpack.c.l.b16 %v1342_v6 }
 0x37c   : > { %v3176_v21 = vadd.f32 %v5650_v15, %v3087_v9  ;;  %v3001_v57 = vadd.f32 %v5651_v38, %v2912_v35  ;;  %v5660_v9 = vld [vmem:[#allocation34_spill] sm:$0xff] }
 0x37d   : > { %v3349_v33 = vadd.f32 %v5206_v12, %v3260_v50  ;;  %3400 = vmatmul.bf16.gmra.mxu3 %v1998_v5 }
 0x37f   : > { %v3438_v2 = vadd.f32 %v5209_v18, %v3349_v33  ;;  %3301 = vmatmul.bf16.gmra.mxu2 %v5644_v56  ;;  %v1277_v18 = vpack.c.bf16 %v1245_v44, %v1245_v44  ;;  %v5654_v33 = vld [vmem:[#allocation33_spill] sm:$0xff] }
 0x380   : > { %v3090_v47 = vadd.f32 %v5654_v33, %v3001_v57 }
 0x381   : > { %v3527_v55 = vadd.f32 %v5215_v28, %v3438_v2  ;;  %v5300_v28 = vpop.f32.mrf.mxu0  ;;  %v2077_v36 = vunpack.c.l.b16 %v1277_v18  ;;  %v3363_v29 = vpop.f32.mrf.mxu3  ;;  %v5655_v2 = vld [vmem:[#allocation31_spill] sm:$0xff] }
 0x382   : > { %v3262_v43 = vpop.f32.mrf.mxu2  ;;  %v3179_v16 = vadd.f32 %v5656_v40, %v3090_v47 }
 0x383   : > { %3593 = vst [vmem:[%s5163_s23 + $0x48] sm:$0xff] %v3527_v55  ;;  %v3263_v12 = vadd.f32 %v3262_v43, %v3174_v19  ;;  %v2094_v3 = vpack.c.b16 %v2078_v41, %v2077_v36  ;;  %v3541_v55 = vpop.f32.mrf.mxu1  ;;  %v5657_v19 = vld [vmem:[#allocation30_spill] sm:$0xff]  ;;  %v5658_v43 = vld [vmem:[#allocation119_spill] sm:$0xff]  ;;  %v5662_v41 = vld [vmem:[#allocation32_spill] sm:$0xff] }
 0x385   : > { %v3352_v63 = vadd.f32 %v5222_v22, %v3263_v12  ;;  %v2173_v22 = vunpack.c.l.b16 %v1341_v24  ;;  %3489 = vmatmul.bf16.gmra.mxu0 %v2094_v3  ;;  %v2917_v12 = vadd.f32 %v5658_v43, %v5657_v19 }
 0x387   : > { %v3441_v14 = vadd.f32 %v5228_v25, %v3352_v63  ;;  %v2190_v32 = vpack.c.b16 %v2174_v37, %v2173_v22  ;;  %v5653_v25 = vld [vmem:[#allocation116_spill] sm:$0xff]  ;;  %v3006_v18 = vadd.f32 %v5660_v9, %v2917_v12  ;;  %v5677_v9 = vld [vmem:[#allocation41_spill] sm:$0xff] }
 0x388   : > { %v2914_v52 = vadd.f32 %v5653_v25, %v5652_v53  ;;  %v5667_v37 = vld [vmem:[#allocation36_spill] sm:$0xff] }
 0x389   : > { %v3530_v60 = vadd.f32 %v5232_v13, %v3441_v14  ;;  %3578 = vmatmul.bf16.gmra.mxu1 %v2190_v32  ;;  %v3452_v13 = vpop.f32.mrf.mxu0  ;;  %v3366_v54 = vpop.f32.mrf.mxu3  ;;  %v5664_v14 = vld [vmem:[#allocation38_spill] sm:$0xff]  ;;  %v5670_v25 = vld [vmem:[#allocation40_spill] sm:$0xff] }
 0x38a   : > { %v3264_v50 = vpop.f32.mrf.mxu2  ;;  %v3003_v56 = vadd.f32 %v5655_v2, %v2914_v52 }
 0x38b   : > { %3594 = vst [vmem:[%s5163_s23 + $0x50] sm:$0xff] %v3530_v60  ;;  %v3265_v30 = vadd.f32 %v3264_v50, %v3176_v21  ;;  %v3544_v36 = vpop.f32.mrf.mxu1  ;;  %v5666_v21 = vld [vmem:[#allocation84_spill] sm:$0xff] }
 0x38d   : > { %v3354_v4 = vadd.f32 %v5242_v11, %v3265_v30 }
 0x38f   : > { %v3443_v59 = vadd.f32 %v5245_v8, %v3354_v4  ;;  %3306 = vmatmul.bf16.gmra.mxu2 %v5112_v46  ;;  %v5659_v8 = vld [vmem:[#allocation35_spill] sm:$0xff]  ;;  %v5671_v4 = vld [vmem:[#allocation88_spill] sm:$0xff] }
 0x390   : > { %v3092_v45 = vadd.f32 %v5659_v8, %v3003_v56  ;;  %v5672_v56 = vld [vmem:[#allocation39_spill] sm:$0xff] }
 0x391   : > { %v3532_v5 = vadd.f32 %v5250_v10, %v3443_v59  ;;  %v3455_v62 = vpop.f32.mrf.mxu0  ;;  %v3368_v38 = vpop.f32.mrf.mxu3 }
 0x392   : > { %v3267_v26 = vpop.f32.mrf.mxu2  ;;  %v3181_v23 = vadd.f32 %v5661_v27, %v3092_v45 }
 0x393   : > { %3595 = vst [vmem:[%s5163_s23 + $0x58] sm:$0xff] %v3532_v5  ;;  %v3268_v11 = vadd.f32 %v3267_v26, %v3179_v16  ;;  %v5673_v5 = vld [vmem:[#allocation124_spill] sm:$0xff] }
 0x394   : > { %v2924_v40 = vadd.f32 %v5673_v5, %v5672_v56  ;;  %v5691_v5 = vld [vmem:[#allocation100_spill] sm:$0xff] }
 0x395   : > { %v3357_v44 = vadd.f32 %v5259_v58, %v3268_v11  ;;  %v2919_v58 = vadd.f32 %v5663_v51, %v5662_v41 }
 0x397   : > { %v3446_v46 = vadd.f32 %v5264_v31, %v3357_v44  ;;  %v3095_v31 = vadd.f32 %v5664_v14, %v3006_v18  ;;  %v5678_v18 = vld [vmem:[#allocation126_spill] sm:$0xff] }
 0x399   : > { %v3535_v10 = vadd.f32 %v5267_v61, %v3446_v46  ;;  %v5665_v61 = vld [vmem:[#allocation37_spill] sm:$0xff]  ;;  %v3184_v3 = vadd.f32 %v5666_v21, %v3095_v31  ;;  %v3457_v22 = vpop.f32.mrf.mxu0  ;;  %v3371_v2 = vpop.f32.mrf.mxu3 }
 0x39a   : > { %v3269_v35 = vpop.f32.mrf.mxu2  ;;  %v3008_v6 = vadd.f32 %v5665_v61, %v2919_v58  ;;  %v5682_v61 = vld [vmem:[#allocation44_spill] sm:$0xff] }
 0x39b   : > { %3596 = vst [vmem:[%s5163_s23 + $0x60] sm:$0xff] %v3535_v10  ;;  %v3270_v63 = vadd.f32 %v3269_v35, %v3181_v23  ;;  %v2927_v10 = vadd.f32 %v5678_v18, %v5677_v9  ;;  %v5679_v23 = vld [vmem:[#allocation49_spill] sm:$0xff] }
 0x39d   : > { %v3359_v42 = vadd.f32 %v5277_v1, %v3270_v63  ;;  %v5668_v1 = vld [vmem:[#allocation122_spill] sm:$0xff] }
 0x39e   : > { %v2922_v50 = vadd.f32 %v5668_v1, %v5667_v37 }
 0x39f   : > { %v3448_v24 = vadd.f32 %v5282_v17, %v3359_v42  ;;  %3311 = vmatmul.bf16.gmra.mxu2 %v5122_v7  ;;  %v5669_v17 = vld [vmem:[#allocation42_spill] sm:$0xff]  ;;  %v3546_v7 = vpop.f32.mrf.mxu1 }
 0x3a0   : > { %v3097_v32 = vadd.f32 %v5669_v17, %v3008_v6  ;;  %v5681_v42 = vld [vmem:[#allocation94_spill] sm:$0xff]  ;;  %v5683_v6 = vld [vmem:[#allocation128_spill] sm:$0xff] }
 0x3a1   : > { %v3537_v15 = vadd.f32 %v5286_v48, %v3448_v24  ;;  %v3011_v48 = vadd.f32 %v5670_v25, %v2922_v50  ;;  %v3460_v11 = vpop.f32.mrf.mxu0  ;;  %v3373_v35 = vpop.f32.mrf.mxu3  ;;  %v5686_v50 = vld [vmem:[#allocation97_spill] sm:$0xff]  ;;  %v5687_v25 = vld [vmem:[#allocation47_spill] sm:$0xff] }
 0x3a2   : > { %v3272_v57 = vpop.f32.mrf.mxu2  ;;  %v3186_v33 = vadd.f32 %v5671_v4, %v3097_v32 }
 0x3a3   : > { %3597 = vst [vmem:[%s5163_s23 + $0x68] sm:$0xff] %v3537_v15  ;;  %v3273_v60 = vadd.f32 %v3272_v57, %v3184_v3  ;;  %v2929_v15 = vadd.f32 %v5683_v6, %v5682_v61 }
 0x3a5   : > { %v3362_v30 = vadd.f32 %v5294_v0, %v3273_v60  ;;  %v5674_v0 = vld [vmem:[#allocation45_spill] sm:$0xff] }
 0x3a6   : > { %v3100_v26 = vadd.f32 %v5674_v0, %v3011_v48  ;;  %v5688_v48 = vld [vmem:[#allocation129_spill] sm:$0xff] }
 0x3a7   : > { %v3451_v53 = vadd.f32 %v5300_v28, %v3362_v30  ;;  %v3549_v43 = vpop.f32.mrf.mxu1  ;;  %v5675_v28 = vld [vmem:[#allocation43_spill] sm:$0xff] }
 0x3a8   : > { %v3013_v12 = vadd.f32 %v5675_v28, %v2924_v40  ;;  %v5693_v28 = vld [vmem:[#allocation131_spill] sm:$0xff] }
 0x3a9   : > { %v3540_v52 = vadd.f32 %v3539_v49, %v3451_v53  ;;  %v5676_v49 = vld [vmem:[#allocation91_spill] sm:$0xff]  ;;  %v3462_v41 = vpop.f32.mrf.mxu0  ;;  %v3376_v60 = vpop.f32.mrf.mxu3 }
 0x3aa   : > { %v3274_v47 = vpop.f32.mrf.mxu2  ;;  %v3189_v8 = vadd.f32 %v5676_v49, %v3100_v26  ;;  %v5694_v49 = vld [vmem:[#allocation62_spill] sm:$0xff] }
 0x3ab   : > { %3598 = vst [vmem:[%s5163_s23 + $0x70] sm:$0xff] %v3540_v52  ;;  %v3275_v59 = vadd.f32 %v3274_v47, %v3186_v33  ;;  %v2932_v52 = vadd.f32 %v5688_v48, %v5687_v25  ;;  %v5706_v25 = vld [vmem:[#allocation107_spill] sm:$0xff] }
 0x3ad   : > { %v3364_v16 = vadd.f32 %v3363_v29, %v3275_v59  ;;  %v3102_v29 = vadd.f32 %v5679_v23, %v3013_v12 }
 0x3af   : > { %v3453_v19 = vadd.f32 %v3452_v13, %v3364_v16  ;;  %v5680_v13 = vld [vmem:[#allocation46_spill] sm:$0xff]  ;;  %v3551_v14 = vpop.f32.mrf.mxu1 }
 0x3b0   : > { %v3016_v51 = vadd.f32 %v5680_v13, %v2927_v10 }
 0x3b1   : > { %v3542_v44 = vadd.f32 %v3541_v55, %v3453_v19  ;;  %v3191_v55 = vadd.f32 %v5681_v42, %v3102_v29  ;;  %v3465_v30 = vpop.f32.mrf.mxu0  ;;  %v3378_v40 = vpop.f32.mrf.mxu3  ;;  %v5692_v19 = vld [vmem:[#allocation50_spill] sm:$0xff] }
 0x3b2   : > { %v3277_v45 = vpop.f32.mrf.mxu2  ;;  %v2934_v12 = vadd.f32 %v5693_v28, %v5692_v19  ;;  %v5697_v29 = vld [vmem:[#allocation54_spill] sm:$0xff] }
 0x3b3   : > { %3599 = vst [vmem:[%s5163_s23 + $0x78] sm:$0xff] %v3542_v44  ;;  %v3278_v46 = vadd.f32 %v3277_v45, %v3189_v8 }
 0x3b5   : > { %v3367_v27 = vadd.f32 %v3366_v54, %v3278_v46  ;;  %v5684_v54 = vld [vmem:[#allocation53_spill] sm:$0xff] }
 0x3b6   : > { %v3105_v3 = vadd.f32 %v5684_v54, %v3016_v51  ;;  %v5702_v54 = vld [vmem:[#allocation57_spill] sm:$0xff] }
 0x3b7   : > { %v3456_v63 = vadd.f32 %v3455_v62, %v3367_v27  ;;  %v5685_v62 = vld [vmem:[#allocation51_spill] sm:$0xff]  ;;  %v3554_v53 = vpop.f32.mrf.mxu1 }
 0x3b8   : > { %v3018_v37 = vadd.f32 %v5685_v62, %v2929_v15 }
 0x3b9   : > { %v3545_v58 = vadd.f32 %v3544_v36, %v3456_v63  ;;  %v3194_v36 = vadd.f32 %v5686_v50, %v3105_v3  ;;  %v3467_v26 = vpop.f32.mrf.mxu0  ;;  %v3381_v23 = vpop.f32.mrf.mxu3  ;;  %v5698_v63 = vld [vmem:[#allocation132_spill] sm:$0xff]  ;;  %v5703_v3 = vld [vmem:[#allocation133_spill] sm:$0xff] }
 0x3ba   : > { %v3279_v31 = vpop.f32.mrf.mxu2  ;;  %v2937_v13 = vadd.f32 %v5698_v63, %v5697_v29 }
 0x3bb   : > { %3600 = vst [vmem:[%s5163_s23 + $0x80] sm:$0xff] %v3545_v58  ;;  %v3280_v24 = vadd.f32 %v3279_v31, %v3191_v55  ;;  %v5699_v58 = vld [vmem:[#allocation66_spill] sm:$0xff] }
 0x3bd   : > { %v3369_v21 = vadd.f32 %v3368_v38, %v3280_v24  ;;  %v5689_v38 = vld [vmem:[#allocation58_spill] sm:$0xff] }
 0x3be   : > { %v3107_v33 = vadd.f32 %v5689_v38, %v3018_v37  ;;  %v5704_v37 = vld [vmem:[#allocation70_spill] sm:$0xff]  ;;  %v5707_v38 = vld [vmem:[#allocation61_spill] sm:$0xff] }
 0x3bf   : > { %v3458_v57 = vadd.f32 %v3457_v22, %v3369_v21  ;;  %v5690_v22 = vld [vmem:[#allocation55_spill] sm:$0xff]  ;;  %v3556_v8 = vpop.f32.mrf.mxu1 }
 0x3c0   : > { %v3021_v59 = vadd.f32 %v5690_v22, %v2932_v52 }
 0x3c1   : > { %v3547_v1 = vadd.f32 %v3546_v7, %v3458_v57  ;;  %v3196_v7 = vadd.f32 %v5691_v5, %v3107_v33  ;;  %v3470_v42 = vpop.f32.mrf.mxu0  ;;  %v2939_v57 = vadd.f32 %v5703_v3, %v5702_v54  ;;  %v5708_v33 = vld [vmem:[#allocation135_spill] sm:$0xff] }
 0x3c2   : > { %v3282_v17 = vpop.f32.mrf.mxu2 }
 0x3c3   : > { %3601 = vst [vmem:[%s5163_s23 + $0x88] sm:$0xff] %v3547_v1  ;;  %v3283_v32 = vadd.f32 %v3282_v17, %v3194_v36  ;;  %v3383_v1 = vpop.f32.mrf.mxu3 }
 0x3c5   : > { %v3372_v4 = vadd.f32 %v3371_v2, %v3283_v32  ;;  %v3110_v2 = vadd.f32 %v5694_v49, %v3021_v59  ;;  %v5709_v59 = vld [vmem:[#allocation75_spill] sm:$0xff] }
 0x3c7   : > { %v3461_v47 = vadd.f32 %v3460_v11, %v3372_v4  ;;  %v5695_v11 = vld [vmem:[#allocation60_spill] sm:$0xff]  ;;  %v3559_v31 = vpop.f32.mrf.mxu1 }
 0x3c8   : > { %v3023_v46 = vadd.f32 %v5695_v11, %v2934_v12 }
 0x3c9   : > { %v3550_v56 = vadd.f32 %v3549_v43, %v3461_v47  ;;  %v5696_v43 = vld [vmem:[#allocation103_spill] sm:$0xff]  ;;  %v3472_v36 = vpop.f32.mrf.mxu0  ;;  %v2942_v47 = vadd.f32 %v5708_v33, %v5707_v38  ;;  %v5725_v33 = vld [vmem:[#allocation74_spill] sm:$0xff] }
 0x3ca   : > { %v3284_v16 = vpop.f32.mrf.mxu2  ;;  %v3199_v18 = vadd.f32 %v5696_v43, %v3110_v2  ;;  %v5712_v2 = vld [vmem:[#allocation65_spill] sm:$0xff] }
 0x3cb   : > { %3602 = vst [vmem:[%s5163_s23 + $0x90] sm:$0xff] %v3550_v56  ;;  %v3285_v0 = vadd.f32 %v3284_v16, %v3196_v7  ;;  %v3386_v7 = vpop.f32.mrf.mxu3 }
 0x3cd   : > { %v3374_v44 = vadd.f32 %v3373_v35, %v3285_v0  ;;  %v3112_v35 = vadd.f32 %v5699_v58, %v3023_v46  ;;  %v5714_v46 = vld [vmem:[#allocation79_spill] sm:$0xff] }
 0x3cf   : > { %v3463_v45 = vadd.f32 %v3462_v41, %v3374_v44  ;;  %v5700_v41 = vld [vmem:[#allocation64_spill] sm:$0xff]  ;;  %v3561_v48 = vpop.f32.mrf.mxu1 }
 0x3d0   : > { %v3026_v24 = vadd.f32 %v5700_v41, %v2937_v13 }
 0x3d1   : > { %v3552_v9 = vadd.f32 %v3551_v14, %v3463_v45  ;;  %v5701_v14 = vld [vmem:[#allocation105_spill] sm:$0xff]  ;;  %v3475_v28 = vpop.f32.mrf.mxu0 }
 0x3d2   : > { %v3287_v10 = vpop.f32.mrf.mxu2  ;;  %v3201_v6 = vadd.f32 %v5701_v14, %v3112_v35  ;;  %v5717_v35 = vld [vmem:[#allocation68_spill] sm:$0xff]  ;;  %v5719_v14 = vld [vmem:[#allocation81_spill] sm:$0xff] }
 0x3d3   : > { %3603 = vst [vmem:[%s5163_s23 + $0x98] sm:$0xff] %v3552_v9  ;;  %v3288_v27 = vadd.f32 %v3287_v10, %v3199_v18  ;;  %v5715_v18 = vld [vmem:[#allocation77_spill] sm:$0xff]  ;;  %v3388_v63 = vpop.f32.mrf.mxu3 }
 0x3d5   : > { %v3377_v51 = vadd.f32 %v3376_v60, %v3288_v27  ;;  %v3115_v60 = vadd.f32 %v5704_v37, %v3026_v24  ;;  %v5721_v37 = vld [vmem:[#allocation71_spill] sm:$0xff] }
 0x3d7   : > { %v3466_v55 = vadd.f32 %v3465_v30, %v3377_v51  ;;  %v5705_v30 = vld [vmem:[#allocation69_spill] sm:$0xff]  ;;  %v3564_v49 = vpop.f32.mrf.mxu1 }
 0x3d8   : > { %v3028_v17 = vadd.f32 %v5705_v30, %v2939_v57 }
 0x3d9   : > { %v3555_v61 = vadd.f32 %v3554_v53, %v3466_v55  ;;  %v3204_v53 = vadd.f32 %v5706_v25, %v3115_v60  ;;  %v3477_v58 = vpop.f32.mrf.mxu0  ;;  %v2949_v60 = vadd.f32 %v5120_v34, %v5721_v37  ;;  %v5727_v34 = vld [vmem:[#allocation90_spill] sm:$0xff] }
 0x3da   : > { %v3289_v15 = vpop.f32.mrf.mxu2  ;;  %v3117_v56 = vadd.f32 %v5709_v59, %v3028_v17 }
 0x3db   : > { %3604 = vst [vmem:[%s5163_s23 + $0xa0] sm:$0xff] %v3555_v61  ;;  %v3290_v21 = vadd.f32 %v3289_v15, %v3201_v6 }
 0x3dd   : > { %v3379_v62 = vadd.f32 %v3378_v40, %v3290_v21  ;;  %v5710_v40 = vld [vmem:[#allocation73_spill] sm:$0xff]  ;;  %v5720_v21 = vld [vmem:[#allocation115_spill] sm:$0xff] }
 0x3de   : > { %v3031_v16 = vadd.f32 %v5710_v40, %v2942_v47  ;;  %v5726_v47 = vld [vmem:[#allocation137_spill] sm:$0xff] }
 0x3df   : > { %v3468_v50 = vadd.f32 %v3467_v26, %v3379_v62  ;;  %v5711_v26 = vld [vmem:[#allocation110_spill] sm:$0xff]  ;;  %v3566_v24 = vpop.f32.mrf.mxu1  ;;  %v3391_v62 = vpop.f32.mrf.mxu3 }
 0x3e0   : > { %v3206_v19 = vadd.f32 %v5711_v26, %v3117_v56  ;;  %v3120_v9 = vadd.f32 %v5714_v46, %v3031_v16  ;;  %v5728_v16 = vld [vmem:[#allocation89_spill] sm:$0xff] }
 0x3e1   : > { %v3557_v32 = vadd.f32 %v3556_v8, %v3468_v50  ;;  %v5713_v8 = vld [vmem:[#allocation136_spill] sm:$0xff]  ;;  %v5732_v46 = vld [vmem:[#allocation93_spill] sm:$0xff] }
 0x3e2   : > { %v3292_v52 = vpop.f32.mrf.mxu2  ;;  %v2944_v45 = vadd.f32 %v5713_v8, %v5712_v2  ;;  %v5730_v2 = vld [vmem:[#allocation78_spill] sm:$0xff] }
 0x3e3   : > { %3605 = vst [vmem:[%s5163_s23 + $0xa8] sm:$0xff] %v3557_v32  ;;  %v3293_v4 = vadd.f32 %v3292_v52, %v3204_v53  ;;  %v5723_v32 = vld [vmem:[#allocation86_spill] sm:$0xff] }
 0x3e4   : > { %v3033_v10 = vadd.f32 %v5715_v18, %v2944_v45  ;;  %v3038_v25 = vadd.f32 %v5723_v32, %v2949_v60  ;;  %v5731_v8 = vld [vmem:[#allocation138_spill] sm:$0xff] }
 0x3e5   : > { %v3382_v22 = vadd.f32 %v3381_v23, %v3293_v4  ;;  %v5716_v23 = vld [vmem:[#allocation112_spill] sm:$0xff]  ;;  %v2954_v45 = vadd.f32 %v5731_v8, %v5730_v2 }
 0x3e6   : > { %v3209_v29 = vadd.f32 %v5716_v23, %v3120_v9  ;;  %v3127_v56 = vadd.f32 %v5727_v34, %v3038_v25  ;;  %v5742_v25 = vld [vmem:[#allocation98_spill] sm:$0xff] }
 0x3e7   : > { %v3471_v5 = vadd.f32 %v3470_v42, %v3382_v22  ;;  %v2947_v42 = vadd.f32 %v5116_v20, %v5717_v35  ;;  %v5722_v20 = vld [vmem:[#allocation87_spill] sm:$0xff]  ;;  %v3569_v17 = vpop.f32.mrf.mxu1  ;;  %v2952_v22 = vadd.f32 %v5726_v47, %v5725_v33 }
 0x3e9   : > { %v3560_v0 = vadd.f32 %v3559_v31, %v3471_v5  ;;  %v5718_v31 = vld [vmem:[#allocation83_spill] sm:$0xff]  ;;  %v3036_v6 = vadd.f32 %v5719_v14, %v2947_v42  ;;  %v3393_v5 = vpop.f32.mrf.mxu3  ;;  %v5735_v42 = vld [vmem:[#allocation82_spill] sm:$0xff] }
 0x3ea   : > { %v3294_v12 = vpop.f32.mrf.mxu2  ;;  %v3122_v41 = vadd.f32 %v5718_v31, %v3033_v10  ;;  %v5733_v10 = vld [vmem:[#allocation92_spill] sm:$0xff] }
 0x3eb   : > { %3606 = vst [vmem:[%s5163_s23 + $0xb0] sm:$0xff] %v3560_v0  ;;  %v3295_v44 = vadd.f32 %v3294_v12, %v3206_v19  ;;  %v3125_v50 = vadd.f32 %v5722_v20, %v3036_v6  ;;  %v3041_v0 = vadd.f32 %v5728_v16, %v2952_v22  ;;  %v5729_v19 = vld [vmem:[#allocation121_spill] sm:$0xff]  ;;  %v5738_v6 = vld [vmem:[#allocation95_spill] sm:$0xff] }
 0x3ec   : > { %v3211_v54 = vadd.f32 %v5720_v21, %v3122_v41 }
 0x3ed   : > { %v3384_v11 = vadd.f32 %v3383_v1, %v3295_v44  ;;  %v3130_v9 = vadd.f32 %v5732_v46, %v3041_v0 }
 0x3ef   : > { %v3473_v43 = vadd.f32 %v3472_v36, %v3384_v11  ;;  %v3480_v36 = vpop.f32.mrf.mxu0  ;;  %v3571_v12 = vpop.f32.mrf.mxu1 }
 0x3f1   : > { %v3562_v27 = vadd.f32 %v3561_v48, %v3473_v43  ;;  %v5724_v48 = vld [vmem:[#allocation118_spill] sm:$0xff]  ;;  %v3396_v18 = vpop.f32.mrf.mxu3 }
 0x3f2   : > { %v3297_v13 = vpop.f32.mrf.mxu2  ;;  %v3214_v52 = vadd.f32 %v5724_v48, %v3125_v50 }
 0x3f3   : > { %3607 = vst [vmem:[%s5163_s23 + $0xb8] sm:$0xff] %v3562_v27  ;;  %v3298_v51 = vadd.f32 %v3297_v13, %v3209_v29  ;;  %v3043_v27 = vadd.f32 %v5733_v10, %v2954_v45  ;;  %v5734_v29 = vld [vmem:[#allocation123_spill] sm:$0xff] }
 0x3f5   : > { %v3387_v55 = vadd.f32 %v3386_v7, %v3298_v51 }
 0x3f7   : > { %v3476_v61 = vadd.f32 %v3475_v28, %v3387_v55  ;;  %v3482_v40 = vpop.f32.mrf.mxu0  ;;  %v3216_v28 = vadd.f32 %v5729_v19, %v3127_v56  ;;  %v3574_v35 = vpop.f32.mrf.mxu1  ;;  %v5736_v55 = vld [vmem:[#allocation139_spill] sm:$0xff] }
 0x3f8   : > { %v2957_v31 = vadd.f32 %v5736_v55, %v5735_v42 }
 0x3f9   : > { %v3565_v15 = vadd.f32 %v3564_v49, %v3476_v61 }
 0x3fa   : > { %v3299_v3 = vpop.f32.mrf.mxu2 }
 0x3fb   : > { %3608 = vst [vmem:[%s5163_s23 + $0xc0] sm:$0xff] %v3565_v15  ;;  %v3300_v57 = vadd.f32 %v3299_v3, %v3211_v54  ;;  %v3046_v15 = vadd.f32 %v5738_v6, %v2957_v31  ;;  %v5739_v54 = vld [vmem:[#allocation125_spill] sm:$0xff] }
 0x3fd   : > { %v3389_v1 = vadd.f32 %v3388_v63, %v3300_v57  ;;  %v3219_v63 = vadd.f32 %v5734_v29, %v3130_v9  ;;  %v3398_v57 = vpop.f32.mrf.mxu3 }
 0x3ff   : > { %v3478_v30 = vadd.f32 %v3477_v58, %v3389_v1  ;;  %v3485_v13 = vpop.f32.mrf.mxu0  ;;  %v5740_v1 = vld [vmem:[#allocation85_spill] sm:$0xff] }
 0x400   : > { %v2959_v20 = vadd.f32 %v5138_v39, %v5740_v1  ;;  %v5744_v39 = vld [vmem:[#allocation102_spill] sm:$0xff] }
 0x401   : > { %v3567_v53 = vadd.f32 %v3566_v24, %v3478_v30  ;;  %v5737_v24 = vld [vmem:[#allocation96_spill] sm:$0xff] }
 0x402   : > { %v3302_v4 = vpop.f32.mrf.mxu2  ;;  %v3132_v61 = vadd.f32 %v5737_v24, %v3043_v27 }
 0x403   : > { %3609 = vst [vmem:[%s5163_s23 + $0xc8] sm:$0xff] %v3567_v53  ;;  %v3303_v38 = vadd.f32 %v3302_v4, %v3214_v52  ;;  %v3048_v53 = vadd.f32 %v5742_v25, %v2959_v20  ;;  %v5743_v52 = vld [vmem:[#allocation127_spill] sm:$0xff] }
 0x404   : > { %v3221_v3 = vadd.f32 %v5739_v54, %v3132_v61 }
 0x405   : > { %v3392_v59 = vadd.f32 %v3391_v62, %v3303_v38  ;;  %v3401_v38 = vpop.f32.mrf.mxu3  ;;  %v3137_v34 = vadd.f32 %v5744_v39, %v3048_v53 }
 0x407   : > { %v3481_v7 = vadd.f32 %v3480_v36, %v3392_v59  ;;  %v3487_v60 = vpop.f32.mrf.mxu0  ;;  %v5741_v36 = vld [vmem:[#allocation99_spill] sm:$0xff] }
 0x408   : > { %v3135_v30 = vadd.f32 %v5741_v36, %v3046_v15 }
 0x409   : > { %v3570_v26 = vadd.f32 %v3569_v17, %v3481_v7  ;;  %v3576_v17 = vpop.f32.mrf.mxu1 }
 0x40a   : > { %v3304_v44 = vpop.f32.mrf.mxu2  ;;  %v3224_v4 = vadd.f32 %v5743_v52, %v3135_v30 }
 0x40b   : > { %3610 = vst [vmem:[%s5163_s23 + $0xd0] sm:$0xff] %v3570_v26  ;;  %v3305_v49 = vadd.f32 %v3304_v44, %v3216_v28 }
 0x40d   : > { %v3394_v11 = vadd.f32 %v3393_v5, %v3305_v49  ;;  %v3403_v19 = vpop.f32.mrf.mxu3 }
 0x40f   : > { %v3483_v43 = vadd.f32 %v3482_v40, %v3394_v11  ;;  %v3490_v22 = vpop.f32.mrf.mxu0  ;;  %v5745_v40 = vld [vmem:[#allocation130_spill] sm:$0xff] }
 0x410   : > { %v3226_v16 = vadd.f32 %v5745_v40, %v3137_v34 }
 0x411   : > { %v3572_v23 = vadd.f32 %v3571_v12, %v3483_v43  ;;  %v3579_v56 = vpop.f32.mrf.mxu1 }
 0x412   : > { %v3307_v51 = vpop.f32.mrf.mxu2 }
 0x413   : > { %3611 = vst [vmem:[%s5163_s23 + $0xd8] sm:$0xff] %v3572_v23  ;;  %v3308_v58 = vadd.f32 %v3307_v51, %v3219_v63 }
 0x415   : > { %v3397_v41 = vadd.f32 %v3396_v18, %v3308_v58 }
 0x417   : > { %v3486_v14 = vadd.f32 %v3485_v13, %v3397_v41  ;;  %v3492_v12 = vpop.f32.mrf.mxu0 }
 0x419   : > { %v3575_v21 = vadd.f32 %v3574_v35, %v3486_v14  ;;  %v3581_v49 = vpop.f32.mrf.mxu1 }
 0x41a   : > { %v3309_v62 = vpop.f32.mrf.mxu2 }
 0x41b   : > { %3612 = vst [vmem:[%s5163_s23 + $0xe0] sm:$0xff] %v3575_v21  ;;  %v3310_v37 = vadd.f32 %v3309_v62, %v3221_v3 }
 0x41d   : > { %v3399_v50 = vadd.f32 %v3398_v57, %v3310_v37 }
 0x41f   : > { %v3488_v32 = vadd.f32 %v3487_v60, %v3399_v50 }
 0x421   : > { %v3577_v48 = vadd.f32 %v3576_v17, %v3488_v32 }
 0x422   : > { %v3312_v33 = vpop.f32.mrf.mxu2 }
 0x423   : > { %3613 = vst [vmem:[%s5163_s23 + $0xe8] sm:$0xff] %v3577_v48  ;;  %v3313_v47 = vadd.f32 %v3312_v33, %v3224_v4 }
 0x425   : > { %v3402_v59 = vadd.f32 %v3401_v38, %v3313_v47 }
 0x427   : > { %v3491_v5 = vadd.f32 %v3490_v22, %v3402_v59 }
 0x429   : > { %v3580_v7 = vadd.f32 %v3579_v56, %v3491_v5 }
 0x42a   : > { %v3314_v0 = vpop.f32.mrf.mxu2 }
 0x42b   : > { %3614 = vst [vmem:[%s5163_s23 + $0xf0] sm:$0xff] %v3580_v7  ;;  %v3315_v26 = vadd.f32 %v3314_v0, %v3226_v16 }
 0x42d   : > { %v3404_v28 = vadd.f32 %v3403_v19, %v3315_v26 }
 0x42f   : > { %v3493_v44 = vadd.f32 %v3492_v12, %v3404_v28 }
 0x431   : > { %v3582_v2 = vadd.f32 %v3581_v49, %v3493_v44 }
 0x433   : > { %3615 = vst [vmem:[%s5163_s23 + $0xf8] sm:$0xff] %v3582_v2 }
 0x434   : > { %4224 = shalt.err (!%p4221_p8)
}
 0x435   : > { %s4270_s21 = smov 128   ;;  %s4271_s23 = smov 8  }
 0x436   : > { %4111 = dma.vmem_to_hbm [thread:$0]  (%p4350_p5), %s3630_s14, 4096, %s3632_s15, %s3617_s28, %s4270_s21, %s4270_s21, %s4271_s23  }
 0x437 PF: > { %p4123_p9 = scmp.ge.s32.totalorder %s4263_s27, 2  ;;  %s3646_s8 = sand.u32 1, %s4251_s24  }
 0x438   : > { %s3647_s9 = scalar_lea.sflag [#allocation5], %s3646_s8 }
 0x439   : > { %p4118_p10 = pnand %p4123_p9, %p4354_p6 }
 0x43b   : > { %p4119_p11 = pneg %p4118_p10 }
 0x43d   : > { %4246 = dma.done.wait (%p4119_p11), %s3647_s9, 4096  }
 0x43e   : > { %4248 = vsyncadd (%p4119_p11), %s3647_s9, 4294963200  ;;  %p18_p12 = scmp.ge.s32.totalorder %s4337_s30, 4   ;;  %s5746_s24 = smov %s4255_s25 }
 0x43f   : > { %s5747_s25 = smov %s4259_s26  ;;  %s5748_s26 = smov %s4348_s10 }
 0x440   : > { %s5749_s27 = smov %s4337_s30  ;;  %20 = sbr.rel (!%p18_p12) target bundleno = 4 (0x4), region = 91 }
 0x445   :  { %3653 = vsyncpa [#allocation4], 1 }
 0x446   :  { %3655 = vsyncpa [#allocation4 + $0x1], 1 }
 0x447   :  { %3656 = vsyncpa [#allocation5], 1 }
 0x448   :  { %3658 = vsyncpa [#allocation5 + $0x1], 1 }

</bundles_post_ra>
